<compile_context>
chip_gen: v7x
topology: tpu7x:2x2x1
jax: 0.10.0
libtpu: 0.0.40
codegen_flags: <defaults>
</compile_context>

<pallas_src>
import functools

import jax
import jax.numpy as jnp
from jax.experimental import pallas as pl
from jax.experimental.pallas import tpu as pltpu

EPS_LN = 1e-5
LANE = 128
HEAD_OUT = 128  # fused output slab width: probs in lanes [0, O), value in lane O


def _round_up(x, m):
    return (x + m - 1) // m * m


def _masked_layernorm(h, gamma, beta, mask, inv_dim):
    """LayerNorm over the last axis using only the unmasked (true) lanes.

    Every call site guarantees the padded lanes of `h` are exactly zero
    (padded weight columns and biases are zero), so sum(h)*inv_dim is the
    exact mean.  The centered values are masked so padded lanes do not pollute
    the variance; gamma/beta are zero in padded lanes so the output stays zero
    there.
    """
    mu = jnp.sum(h, axis=-1, keepdims=True) * inv_dim      # multiply, not divide
    c = (h - mu) * mask
    var = jnp.sum(c * c, axis=-1, keepdims=True) * inv_dim
    return c * jax.lax.rsqrt(var + EPS_LN) * gamma + beta   # rsqrt -> EUP


# ----------------------------- pass 1: GCN layer 1 ---------------------------
def _gcn_layer1_kernel(a_ref, xw1_ref, w2_ref, vec_ref, x1_ref, xw2_ref, *,
                       hidden_dim, hidden_pad):
    vec = vec_ref[...]
    b1 = vec[0:1, :hidden_pad]
    g1 = vec[1:2, :hidden_pad]
    be1 = vec[2:3, :hidden_pad]

    # Row tile of the aggregation:  A_hat[tile, :] @ (X W1) + b1
    h1 = jnp.dot(a_ref[...], xw1_ref[...],
                 preferred_element_type=jnp.float32) + b1
    lane = jax.lax.broadcasted_iota(jnp.int32, h1.shape, 1)
    mask = (lane < hidden_dim).astype(jnp.float32)
    inv_h = 1.0 / float(hidden_dim)
    x1 = jnp.maximum(_masked_layernorm(h1, g1, be1, mask, inv_h), 0.0)
    x1_ref[...] = x1.astype(x1_ref.dtype)

    # Row-independent epilogue: XW2[tile] = x1[tile] @ W2, consumed by pass 2's
    # aggregation.  Computing it here removes the serialized step-0 matmul and
    # lets both grids stay fully row-parallel.
    xw2 = jnp.dot(x1.astype(jnp.bfloat16), w2_ref[...],
                  preferred_element_type=jnp.float32)
    xw2_ref[...] = xw2.astype(xw2_ref.dtype)


# -------------------- pass 2: GCN layer 2 + residual + heads -----------------
def _gcn_layer2_heads_kernel(a_ref, xw2_ref, x1_ref, wac_ref, wh2_ref, vec_ref,
                             out_ref, *, hidden_dim, hidden_pad, output_dim):
    vec = vec_ref[...]
    b2 = vec[3:4, :hidden_pad]
    g2 = vec[4:5, :hidden_pad]
    be2 = vec[5:6, :hidden_pad]
    b_ac = vec[6:7, :]                         # [ba1 | bc1], width 2*hidden_pad
    ga, bea = vec[7:8, :hidden_pad], vec[8:9, :hidden_pad]
    gc, bec = vec[9:10, :hidden_pad], vec[10:11, :hidden_pad]
    b_out = vec[11:12, :HEAD_OUT]

    # --- GCN layer 2 (row tile):  A_hat[tile, :] @ (x1 W2) + b2 ---
    h2 = jnp.dot(a_ref[...], xw2_ref[...],
                 preferred_element_type=jnp.float32) + b2
    lane = jax.lax.broadcasted_iota(jnp.int32, h2.shape, 1)
    mask = (lane < hidden_dim).astype(jnp.float32)   # reused by all 3 LN calls
    inv_h = 1.0 / float(hidden_dim)
    x2 = jnp.maximum(_masked_layernorm(h2, g2, be2, mask, inv_h), 0.0)

    # --- residual: x = x2 + x1[tile] (row-tiled, auto-pipelined input) ---
    xr = x2 + x1_ref[...].astype(jnp.float32)

    # --- fused actor+critic first linear: one [H, 2H] matmul ---
    hh = jnp.dot(xr.astype(jnp.bfloat16), wac_ref[...],
                 preferred_element_type=jnp.float32)
    hh = jnp.maximum(hh + b_ac, 0.0)
    ha = _masked_layernorm(hh[:, :hidden_pad], ga, bea, mask, inv_h)
    hc = _masked_layernorm(hh[:, hidden_pad:], gc, bec, mask, inv_h)

    # --- fused second linear: block-diagonal [2H, HEAD_OUT] matmul ---
    hcat = jnp.concatenate([ha, hc], axis=1).astype(jnp.bfloat16)
    raw = jnp.dot(hcat, wh2_ref[...],
                  preferred_element_type=jnp.float32) + b_out

    # --- masked softmax over actor lanes; critic value rides in lane O ---
    out_lane = jax.lax.broadcasted_iota(jnp.int32, raw.shape, 1)
    is_logit = out_lane < output_dim
    masked_logits = jnp.where(is_logit, raw, jnp.float32(-jnp.inf))
    m = jnp.max(masked_logits, axis=-1, keepdims=True)
    e = jnp.exp(masked_logits - m)                 # exp(-inf) = 0 on pad lanes
    denom = jnp.sum(e, axis=-1, keepdims=True)
    probs = e / denom                              # exact divide: rows sum to 1
    out_ref[...] = jnp.where(is_logit, probs,
                             jnp.where(out_lane == output_dim, raw, 0.0))


# --------------------------------- wrappers ----------------------------------
def build_normalized_adjacency(edge_index, num_nodes):
    """A_hat = D^{-1/2}(A + I)D^{-1/2}, dense, float32.  Plain-JAX glue."""
    src, dst = edge_index[0], edge_index[1]
    adj = jnp.zeros((num_nodes, num_nodes), jnp.float32)
    adj = adj.at[dst, src].add(1.0)                 # row = dst aggregates src
    adj = adj + jnp.eye(num_nodes, dtype=jnp.float32)
    deg = jnp.sum(adj, axis=1)
    dinv = jnp.where(deg > 0, jax.lax.rsqrt(deg), 0.0)
    return adj * dinv[:, None] * dinv[None, :]


def prepare_params(params, node_features, hidden_dim, output_dim):
    """Pad, pack and bf16-cast the parameters once (wrapper-side plumbing)."""
    (w1, b1, g1, be1,
     w2, b2, g2, be2,
     wa1, ba1, ga, bea, wa2, ba2,
     wc1, bc1, gc, bec, wc2, bc2) = params

    assert output_dim + 1 <= HEAD_OUT
    f_pad = _round_up(node_features, LANE)
    h_pad = _round_up(hidden_dim, LANE)

    def pad2(a, r, c):
        return jnp.zeros((r, c), jnp.float32).at[:a.shape[0], :a.shape[1]].set(a)

    w1_p = pad2(w1, f_pad, h_pad).astype(jnp.bfloat16)
    w2_p = pad2(w2, h_pad, h_pad).astype(jnp.bfloat16)

    # Wa1 | Wc1 share the h_pad row dim -> one packed [h_pad, 2*h_pad] weight.
    wac_p = jnp.concatenate(
        [pad2(wa1, h_pad, h_pad), pad2(wc1, h_pad, h_pad)],
        axis=1).astype(jnp.bfloat16)

    # Block-diagonal fused second head: [actor LN out | critic LN out] @ wh2.
    wh2 = jnp.zeros((2 * h_pad, HEAD_OUT), jnp.float32)
    wh2 = wh2.at[:hidden_dim, :output_dim].set(wa2)
    wh2 = wh2.at[h_pad:h_pad + hidden_dim, output_dim].set(wc2.reshape(-1))
    wh2_p = wh2.astype(jnp.bfloat16)

    # All small (1, H) vectors packed into one [16, 2*h_pad] f32 array:
    #   0:b1 1:g1 2:be1 3:b2 4:g2 5:be2 6:[ba1|bc1] 7:ga 8:bea 9:gc 10:bec
    #   11: fused head-2 bias (ba2 in lanes [0,O), bc2 in lane O)
    vec = jnp.zeros((16, 2 * h_pad), jnp.float32)
    for r, v in enumerate((b1, g1, be1, b2, g2, be2)):
        vec = vec.at[r, :v.shape[-1]].set(v.reshape(-1))
    vec = vec.at[6, :ba1.shape[-1]].set(ba1.reshape(-1))
    vec = vec.at[6, h_pad:h_pad + bc1.shape[-1]].set(bc1.reshape(-1))
    for r, v in zip((7, 8, 9, 10), (ga, bea, gc, bec)):
        vec = vec.at[r, :v.shape[-1]].set(v.reshape(-1))
    vec = vec.at[11, :output_dim].set(ba2.reshape(-1))
    vec = vec.at[11, output_dim].set(bc2.reshape(-1)[0])
    return w1_p, w2_p, wac_p, wh2_p, vec


def _vmem_capacity_bytes():
    """Trace-time VMEM capacity query with a conservative fallback."""
    try:
        info = pltpu.get_tpu_info()
        for name in ("vmem_capacity_bytes", "vmem_size_bytes", "vmem_bytes"):
            v = getattr(info, name, None)
            if v:
                return int(v)
    except Exception:
        pass
    return 64 << 20   # conservative: v7x per-TensorCore VMEM


@functools.partial(jax.jit, static_argnames=("hidden_dim", "output_dim"))
def gnn_ppo_forward(a_hat, x, prep, hidden_dim, output_dim):
    w1_p, w2_p, wac_p, wh2_p, vec_p = prep
    n, f = x.shape
    f_pad, h_pad = w1_p.shape

    # Per-generation row tiling: A_hat is streamed as (tile_m, n_pad) row
    # tiles; 512-row tiles on 128-MiB-VMEM parts (v5e/v6e), 256 on v7x.
    vmem_cap = _vmem_capacity_bytes()
    tile_cap = 512 if vmem_cap >= (96 << 20) else 256
    tile_m = min(tile_cap, _round_up(n, LANE))
    n_pad = _round_up(n, tile_m)
    num_tiles = n_pad // tile_m
    # TODO(synk): add a K-reduction grid axis over A's column blocks (f32
    # accumulator + pl.when init/finalize) once tile_m*n_pad*2B*2buffers
    # exceeds ~24 MiB (n_pad >~ 16-32K), so v7x's 64 MiB VMEM still fits.

    # Pad directly in bf16 with lax.pad (no f32 [n_pad, n_pad] temp in HBM).
    zero_bf16 = jnp.array(0, jnp.bfloat16)
    a_p = jax.lax.pad(a_hat.astype(jnp.bfloat16), zero_bf16,
                      ((0, n_pad - n, 0), (0, n_pad - n, 0)))
    x_p = jax.lax.pad(x.astype(jnp.bfloat16), zero_bf16,
                      ((0, n_pad - n, 0), (0, f_pad - f, 0)))

    # X @ W1 is A-independent -> hoisted out of the row-tiled kernels.
    xw1 = jnp.dot(x_p, w1_p,
                  preferred_element_type=jnp.float32).astype(jnp.bfloat16)

    def row_tile(width):
        return pl.BlockSpec((tile_m, width), lambda i: (i, 0))

    def resident(shape):
        # Constant-index-map input (weights / full XW products).
        # TODO(synk): pipeline_mode=pl.Buffered(1) here would drop the second
        # buffer on v7x at very large N; left at default for portability.
        return pl.BlockSpec(shape, lambda i: (0, 0))

    ceiling = (112 << 20) if vmem_cap >= (96 << 20) else (52 << 20)

    def vmem_limit(per_step_bytes):
        return int(min(max(per_step_bytes + (8 << 20), 16 << 20), ceiling))

    # -------- pass 1: x1 = relu(LN1(A @ XW1 + b1)); XW2 = x1 @ W2 ------------
    step1 = (2 * tile_m * n_pad * 2            # A row tile (double-buffered)
             + 2 * n_pad * h_pad * 2           # XW1 resident
             + 2 * h_pad * h_pad * 2 + 2 * 16 * 2 * h_pad * 4
             + 2 * 2 * tile_m * h_pad * 2)     # two row-tiled outputs
    bytes1 = (n_pad * n_pad * 2 + n_pad * h_pad * 2 + h_pad * h_pad * 2
              + 16 * 2 * h_pad * 4 + 2 * n_pad * h_pad * 2)
    flops1 = 2 * n_pad * n_pad * h_pad + 2 * n_pad * h_pad * h_pad
    x1_full, xw2_full = pl.pallas_call(
        functools.partial(_gcn_layer1_kernel, hidden_dim=hidden_dim,
                          hidden_pad=h_pad),
        out_shape=(jax.ShapeDtypeStruct((n_pad, h_pad), jnp.bfloat16),
                   jax.ShapeDtypeStruct((n_pad, h_pad), jnp.bfloat16)),
        grid=(num_tiles,),
        in_specs=[row_tile(n_pad),              # A_hat row tile (bf16)
                  resident((n_pad, h_pad)),     # XW1
                  resident((h_pad, h_pad)),     # W2
                  resident((16, 2 * h_pad))],   # packed small vectors
        out_specs=(row_tile(h_pad), row_tile(h_pad)),
        compiler_params=pltpu.CompilerParams(
            dimension_semantics=("parallel",),
            vmem_limit_bytes=vmem_limit(step1)),
        cost_estimate=pl.CostEstimate(flops=flops1, transcendentals=n_pad,
                                      bytes_accessed=bytes1),
    )(a_p, xw1, w2_p, vec_p)

    # ---------- pass 2: layer 2 + residual + fused actor/critic heads --------
    step2 = (2 * tile_m * n_pad * 2
             + 2 * n_pad * h_pad * 2           # XW2 resident
             + 2 * tile_m * h_pad * 2          # x1 row tile
             + 2 * h_pad * 2 * h_pad * 2 + 2 * 2 * h_pad * HEAD_OUT * 2
             + 2 * 16 * 2 * h_pad * 4
             + 2 * tile_m * HEAD_OUT * 4)
    bytes2 = (n_pad * n_pad * 2 + 2 * n_pad * h_pad * 2
              + h_pad * 2 * h_pad * 2 + 2 * h_pad * HEAD_OUT * 2
              + 16 * 2 * h_pad * 4 + n_pad * HEAD_OUT * 4)
    flops2 = (2 * n_pad * n_pad * h_pad + 2 * n_pad * h_pad * 2 * h_pad
              + 2 * n_pad * 2 * h_pad * HEAD_OUT)
    slab = pl.pallas_call(
        functools.partial(_gcn_layer2_heads_kernel, hidden_dim=hidden_dim,
                          hidden_pad=h_pad, output_dim=output_dim),
        out_shape=jax.ShapeDtypeStruct((n_pad, HEAD_OUT), jnp.float32),
        grid=(num_tiles,),
        in_specs=[row_tile(n_pad),                  # A_hat row tile (bf16)
                  resident((n_pad, h_pad)),         # XW2
                  row_tile(h_pad),                  # x1 row tile (residual)
                  resident((h_pad, 2 * h_pad)),     # Wa1 | Wc1
                  resident((2 * h_pad, HEAD_OUT)),  # block-diag Wa2 / Wc2
                  resident((16, 2 * h_pad))],
        out_specs=row_tile(HEAD_OUT),
        compiler_params=pltpu.CompilerParams(
            dimension_semantics=("parallel",),
            vmem_limit_bytes=vmem_limit(step2)),
        cost_estimate=pl.CostEstimate(
            flops=flops2, transcendentals=n_pad * (HEAD_OUT + 3),
            bytes_accessed=bytes2),
    )(a_p, xw2_full, x1_full, wac_p, wh2_p, vec_p)

    action_probs = slab[:n, :output_dim]
    values = slab[:n, output_dim:output_dim + 1]
    return action_probs, values


def init_params(key, node_features, hidden_dim, output_dim):
    """Deterministic synthetic parameters (shapes match the nn.Module)."""
    ks = jax.random.split(key, 8)

    def lin(k, fan_in, fan_out):
        scale = 1.0 / jnp.sqrt(fan_in)
        w = jax.random.uniform(k, (fan_in, fan_out), jnp.float32, -scale, scale)
        b = jnp.zeros((1, fan_out), jnp.float32)
        return w, b

    w1, b1 = lin(ks[0], node_features, hidden_dim)      # conv1
    w2, b2 = lin(ks[1], hidden_dim, hidden_dim)         # conv2
    g1 = jnp.ones((1, hidden_dim), jnp.float32); be1 = jnp.zeros((1, hidden_dim), jnp.float32)
    g2 = jnp.ones((1, hidden_dim), jnp.float32); be2 = jnp.zeros((1, hidden_dim), jnp.float32)

    wa1, ba1 = lin(ks[2], hidden_dim, hidden_dim)       # actor[0]
    ga = jnp.ones((1, hidden_dim), jnp.float32); bea = jnp.zeros((1, hidden_dim), jnp.float32)
    wa2, ba2 = lin(ks[3], hidden_dim, output_dim)       # actor[3]

    wc1, bc1 = lin(ks[4], hidden_dim, hidden_dim)       # critic[0]
    gc = jnp.ones((1, hidden_dim), jnp.float32); bec = jnp.zeros((1, hidden_dim), jnp.float32)
    wc2, bc2 = lin(ks[5], hidden_dim, 1)                # critic[3]

    return (w1, b1, g1, be1,
            w2, b2, g2, be2,
            wa1, ba1, ga, bea, wa2, ba2,
            wc1, bc1, gc, bec, wc2, bc2)


if __name__ == "__main__":
    node_features = 16
    hidden_dim = 32
    num_partitions = 4          # output_dim == num_partitions
    output_dim = num_partitions
    num_nodes = 8

    key = jax.random.PRNGKey(0)
    k_x, k_p = jax.random.split(key)

    x = jax.random.normal(k_x, (num_nodes, node_features), jnp.float32)
    # Simple bidirectional ring graph, edge_index shape [2, E].
    src = jnp.arange(num_nodes, dtype=jnp.int32)
    dst = (src + 1) % num_nodes
    edge_index = jnp.stack(
        [jnp.concatenate([src, dst]), jnp.concatenate([dst, src])], axis=0)

    a_hat = build_normalized_adjacency(edge_index, num_nodes)
    params = init_params(k_p, node_features, hidden_dim, output_dim)
    prep = prepare_params(params, node_features, hidden_dim, output_dim)

    action_probs, values = gnn_ppo_forward(
        a_hat, x, prep, hidden_dim=hidden_dim, output_dim=output_dim)
    jax.block_until_ready((action_probs, values))

    assert action_probs.shape == (num_nodes, output_dim)
    assert values.shape == (num_nodes, 1)
    assert bool(jnp.all(jnp.isfinite(action_probs)))
    assert bool(jnp.all(jnp.isfinite(values)))
    # Softmax rows must sum to 1 (exact divide kept in-kernel).
    assert jnp.allclose(jnp.sum(action_probs, axis=-1), 1.0, atol=1e-5)

    print("KERNEL_OK")
</pallas_src>

<mosaic_0001>
module attributes {stable_mosaic.version = 11 : i64} {
  func.func @_gcn_layer1_kernel(%arg0: i32, %arg1: memref<128x128xbf16, #tpu.memory_space<vmem>>, %arg2: memref<128x128xbf16, #tpu.memory_space<vmem>>, %arg3: memref<128x128xbf16, #tpu.memory_space<vmem>>, %arg4: memref<16x256xf32, #tpu.memory_space<vmem>>, %arg5: memref<128x128xbf16, #tpu.memory_space<vmem>>, %arg6: memref<128x128xbf16, #tpu.memory_space<vmem>>) attributes {dimension_semantics = [#tpu.dimension_semantics<parallel>], iteration_bounds = array<i64: 1>, scalar_prefetch = 0 : i64, scratch_operands = 0 : i64, tpu.core_type = #tpu.core_type<tc>, window_params = [{transform_indices = @transform_0, window_bounds = array<i64: 128, 128>}, {pipeline_mode = #tpu.pipeline_mode<synchronous>, transform_indices = @transform_1, window_bounds = array<i64: 128, 128>}, {pipeline_mode = #tpu.pipeline_mode<synchronous>, transform_indices = @transform_2, window_bounds = array<i64: 128, 128>}, {pipeline_mode = #tpu.pipeline_mode<synchronous>, transform_indices = @transform_3, window_bounds = array<i64: 16, 256>}, {transform_indices = @transform_4, window_bounds = array<i64: 128, 128>}, {transform_indices = @transform_5, window_bounds = array<i64: 128, 128>}]} {
    %c0 = arith.constant 0 : index
    %c0_0 = arith.constant 0 : index
    %0 = vector.load %arg4[%c0, %c0_0] : memref<16x256xf32, #tpu.memory_space<vmem>>, vector<16x256xf32>
    %1 = vector.extract_strided_slice %0 {offsets = [0, 0], sizes = [1, 128], strides = [1, 1]} : vector<16x256xf32> to vector<1x128xf32>
    %2 = vector.extract_strided_slice %0 {offsets = [1, 0], sizes = [1, 128], strides = [1, 1]} : vector<16x256xf32> to vector<1x128xf32>
    %3 = vector.extract_strided_slice %0 {offsets = [2, 0], sizes = [1, 128], strides = [1, 1]} : vector<16x256xf32> to vector<1x128xf32>
    %c0_1 = arith.constant 0 : index
    %c0_2 = arith.constant 0 : index
    %4 = vector.load %arg1[%c0_1, %c0_2] : memref<128x128xbf16, #tpu.memory_space<vmem>>, vector<128x128xbf16>
    %c0_3 = arith.constant 0 : index
    %c0_4 = arith.constant 0 : index
    %5 = vector.load %arg2[%c0_3, %c0_4] : memref<128x128xbf16, #tpu.memory_space<vmem>>, vector<128x128xbf16>
    %cst = arith.constant dense<0.000000e+00> : vector<128x128xf32>
    %6 = tpu.matmul %4, %5, %cst {dimension_numbers = #tpu.dot_dimension_numbers<[1], [0], [0], [1], [0, 0, 1, 1], [], []>} : vector<128x128xbf16>, vector<128x128xbf16>, vector<128x128xf32> -> vector<128x128xf32>
    %7 = vector.broadcast %1 : vector<1x128xf32> to vector<128x128xf32>
    %8 = arith.addf %6, %7 : vector<128x128xf32>
    %9 = tpu.iota {dimensions = array<i32: 1>} : vector<128x128xi32>
    %c32_i32 = arith.constant 32 : i32
    %10 = vector.broadcast %c32_i32 : i32 to vector<128x128xi32>
    %11 = arith.cmpi slt, %9, %10 : vector<128x128xi32>
    %12 = arith.extui %11 : vector<128x128xi1> to vector<128x128xi32>
    %13 = arith.sitofp %12 : vector<128x128xi32> to vector<128x128xf32>
    %cst_5 = arith.constant dense<0.000000e+00> : vector<128xf32>
    %14 = vector.multi_reduction <add>, %8, %cst_5 [1] : vector<128x128xf32> to vector<128xf32>
    %15 = vector.shape_cast %14 : vector<128xf32> to vector<128x1xf32>
    %cst_6 = arith.constant 3.125000e-02 : f32
    %16 = vector.broadcast %cst_6 : f32 to vector<128x1xf32>
    %17 = arith.mulf %15, %16 : vector<128x1xf32>
    %18 = vector.broadcast %17 : vector<128x1xf32> to vector<128x128xf32>
    %19 = arith.subf %8, %18 : vector<128x128xf32>
    %20 = arith.mulf %19, %13 : vector<128x128xf32>
    %21 = arith.mulf %20, %20 : vector<128x128xf32>
    %cst_7 = arith.constant dense<0.000000e+00> : vector<128xf32>
    %22 = vector.multi_reduction <add>, %21, %cst_7 [1] : vector<128x128xf32> to vector<128xf32>
    %23 = vector.shape_cast %22 : vector<128xf32> to vector<128x1xf32>
    %cst_8 = arith.constant 3.125000e-02 : f32
    %24 = vector.broadcast %cst_8 : f32 to vector<128x1xf32>
    %25 = arith.mulf %23, %24 : vector<128x1xf32>
    %cst_9 = arith.constant 9.99999974E-6 : f32
    %26 = vector.broadcast %cst_9 : f32 to vector<128x1xf32>
    %27 = arith.addf %25, %26 : vector<128x1xf32>
    %28 = math.rsqrt %27 : vector<128x1xf32>
    %29 = vector.broadcast %28 : vector<128x1xf32> to vector<128x128xf32>
    %30 = arith.mulf %20, %29 : vector<128x128xf32>
    %31 = vector.broadcast %2 : vector<1x128xf32> to vector<128x128xf32>
    %32 = arith.mulf %30, %31 : vector<128x128xf32>
    %33 = vector.broadcast %3 : vector<1x128xf32> to vector<128x128xf32>
    %34 = arith.addf %32, %33 : vector<128x128xf32>
    %cst_10 = arith.constant 0.000000e+00 : f32
    %35 = vector.broadcast %cst_10 : f32 to vector<128x128xf32>
    %36 = arith.maximumf %34, %35 : vector<128x128xf32>
    %37 = arith.truncf %36 : vector<128x128xf32> to vector<128x128xbf16>
    %c0_11 = arith.constant 0 : index
    %c0_12 = arith.constant 0 : index
    %38 = vector.load %arg5[%c0_11, %c0_12] : memref<128x128xbf16, #tpu.memory_space<vmem>>, vector<128x128xbf16>
    tpu.vector_store %arg5[%c0_11, %c0_12], %37 {strides = array<i32>} : memref<128x128xbf16, #tpu.memory_space<vmem>>, vector<128x128xbf16>,
    %39 = arith.truncf %36 : vector<128x128xf32> to vector<128x128xbf16>
    %c0_13 = arith.constant 0 : index
    %c0_14 = arith.constant 0 : index
    %40 = vector.load %arg3[%c0_13, %c0_14] : memref<128x128xbf16, #tpu.memory_space<vmem>>, vector<128x128xbf16>
    %cst_15 = arith.constant dense<0.000000e+00> : vector<128x128xf32>
    %41 = tpu.matmul %39, %40, %cst_15 {dimension_numbers = #tpu.dot_dimension_numbers<[1], [0], [0], [1], [0, 0, 1, 1], [], []>} : vector<128x128xbf16>, vector<128x128xbf16>, vector<128x128xf32> -> vector<128x128xf32>
    %42 = arith.truncf %41 : vector<128x128xf32> to vector<128x128xbf16>
    %c0_16 = arith.constant 0 : index
    %c0_17 = arith.constant 0 : index
    %43 = vector.load %arg6[%c0_16, %c0_17] : memref<128x128xbf16, #tpu.memory_space<vmem>>, vector<128x128xbf16>
    tpu.vector_store %arg6[%c0_16, %c0_17], %42 {strides = array<i32>} : memref<128x128xbf16, #tpu.memory_space<vmem>>, vector<128x128xbf16>,
    return
  }
  func.func @transform_0(%arg0: i32) -> (i32, i32) {
    %c0_i32 = arith.constant 0 : i32
    %c0_i32_0 = arith.constant 0 : i32
    return %arg0, %c0_i32 : i32, i32
  }
  func.func @transform_1(%arg0: i32) -> (i32, i32) {
    %c0_i32 = arith.constant 0 : i32
    %c0_i32_0 = arith.constant 0 : i32
    %c0_i32_1 = arith.constant 0 : i32
    return %c0_i32, %c0_i32_0 : i32, i32
  }
  func.func @transform_2(%arg0: i32) -> (i32, i32) {
    %c0_i32 = arith.constant 0 : i32
    %c0_i32_0 = arith.constant 0 : i32
    %c0_i32_1 = arith.constant 0 : i32
    return %c0_i32, %c0_i32_0 : i32, i32
  }
  func.func @transform_3(%arg0: i32) -> (i32, i32) {
    %c0_i32 = arith.constant 0 : i32
    %c0_i32_0 = arith.constant 0 : i32
    %c0_i32_1 = arith.constant 0 : i32
    return %c0_i32, %c0_i32_0 : i32, i32
  }
  func.func @transform_4(%arg0: i32) -> (i32, i32) {
    %c0_i32 = arith.constant 0 : i32
    %c0_i32_0 = arith.constant 0 : i32
    return %arg0, %c0_i32 : i32, i32
  }
  func.func @transform_5(%arg0: i32) -> (i32, i32) {
    %c0_i32 = arith.constant 0 : i32
    %c0_i32_0 = arith.constant 0 : i32
    return %arg0, %c0_i32 : i32, i32
  }
}

module attributes {stable_mosaic.version = 11 : i64} {
  func.func @_gcn_layer2_heads_kernel(%arg0: i32, %arg1: memref<128x128xbf16, #tpu.memory_space<vmem>>, %arg2: memref<128x128xbf16, #tpu.memory_space<vmem>>, %arg3: memref<128x128xbf16, #tpu.memory_space<vmem>>, %arg4: memref<128x256xbf16, #tpu.memory_space<vmem>>, %arg5: memref<256x128xbf16, #tpu.memory_space<vmem>>, %arg6: memref<16x256xf32, #tpu.memory_space<vmem>>, %arg7: memref<128x128xf32, #tpu.memory_space<vmem>>) attributes {dimension_semantics = [#tpu.dimension_semantics<parallel>], iteration_bounds = array<i64: 1>, scalar_prefetch = 0 : i64, scratch_operands = 0 : i64, tpu.core_type = #tpu.core_type<tc>, window_params = [{transform_indices = @transform_0, window_bounds = array<i64: 128, 128>}, {pipeline_mode = #tpu.pipeline_mode<synchronous>, transform_indices = @transform_1, window_bounds = array<i64: 128, 128>}, {transform_indices = @transform_2, window_bounds = array<i64: 128, 128>}, {pipeline_mode = #tpu.pipeline_mode<synchronous>, transform_indices = @transform_3, window_bounds = array<i64: 128, 256>}, {pipeline_mode = #tpu.pipeline_mode<synchronous>, transform_indices = @transform_4, window_bounds = array<i64: 256, 128>}, {pipeline_mode = #tpu.pipeline_mode<synchronous>, transform_indices = @transform_5, window_bounds = array<i64: 16, 256>}, {transform_indices = @transform_6, window_bounds = array<i64: 128, 128>}]} {
    %c0 = arith.constant 0 : index
    %c0_0 = arith.constant 0 : index
    %0 = vector.load %arg6[%c0, %c0_0] : memref<16x256xf32, #tpu.memory_space<vmem>>, vector<16x256xf32>
    %1 = vector.extract_strided_slice %0 {offsets = [3, 0], sizes = [1, 128], strides = [1, 1]} : vector<16x256xf32> to vector<1x128xf32>
    %2 = vector.extract_strided_slice %0 {offsets = [4, 0], sizes = [1, 128], strides = [1, 1]} : vector<16x256xf32> to vector<1x128xf32>
    %3 = vector.extract_strided_slice %0 {offsets = [5, 0], sizes = [1, 128], strides = [1, 1]} : vector<16x256xf32> to vector<1x128xf32>
    %4 = vector.extract_strided_slice %0 {offsets = [6, 0], sizes = [1, 256], strides = [1, 1]} : vector<16x256xf32> to vector<1x256xf32>
    %5 = vector.extract_strided_slice %0 {offsets = [7, 0], sizes = [1, 128], strides = [1, 1]} : vector<16x256xf32> to vector<1x128xf32>
    %6 = vector.extract_strided_slice %0 {offsets = [8, 0], sizes = [1, 128], strides = [1, 1]} : vector<16x256xf32> to vector<1x128xf32>
    %7 = vector.extract_strided_slice %0 {offsets = [9, 0], sizes = [1, 128], strides = [1, 1]} : vector<16x256xf32> to vector<1x128xf32>
    %8 = vector.extract_strided_slice %0 {offsets = [10, 0], sizes = [1, 128], strides = [1, 1]} : vector<16x256xf32> to vector<1x128xf32>
    %9 = vector.extract_strided_slice %0 {offsets = [11, 0], sizes = [1, 128], strides = [1, 1]} : vector<16x256xf32> to vector<1x128xf32>
    %c0_1 = arith.constant 0 : index
    %c0_2 = arith.constant 0 : index
    %10 = vector.load %arg1[%c0_1, %c0_2] : memref<128x128xbf16, #tpu.memory_space<vmem>>, vector<128x128xbf16>
    %c0_3 = arith.constant 0 : index
    %c0_4 = arith.constant 0 : index
    %11 = vector.load %arg2[%c0_3, %c0_4] : memref<128x128xbf16, #tpu.memory_space<vmem>>, vector<128x128xbf16>
    %cst = arith.constant dense<0.000000e+00> : vector<128x128xf32>
    %12 = tpu.matmul %10, %11, %cst {dimension_numbers = #tpu.dot_dimension_numbers<[1], [0], [0], [1], [0, 0, 1, 1], [], []>} : vector<128x128xbf16>, vector<128x128xbf16>, vector<128x128xf32> -> vector<128x128xf32>
    %13 = vector.broadcast %1 : vector<1x128xf32> to vector<128x128xf32>
    %14 = arith.addf %12, %13 : vector<128x128xf32>
    %15 = tpu.iota {dimensions = array<i32: 1>} : vector<128x128xi32>
    %c32_i32 = arith.constant 32 : i32
    %16 = vector.broadcast %c32_i32 : i32 to vector<128x128xi32>
    %17 = arith.cmpi slt, %15, %16 : vector<128x128xi32>
    %18 = arith.extui %17 : vector<128x128xi1> to vector<128x128xi32>
    %19 = arith.sitofp %18 : vector<128x128xi32> to vector<128x128xf32>
    %cst_5 = arith.constant dense<0.000000e+00> : vector<128xf32>
    %20 = vector.multi_reduction <add>, %14, %cst_5 [1] : vector<128x128xf32> to vector<128xf32>
    %21 = vector.shape_cast %20 : vector<128xf32> to vector<128x1xf32>
    %cst_6 = arith.constant 3.125000e-02 : f32
    %22 = vector.broadcast %cst_6 : f32 to vector<128x1xf32>
    %23 = arith.mulf %21, %22 : vector<128x1xf32>
    %24 = vector.broadcast %23 : vector<128x1xf32> to vector<128x128xf32>
    %25 = arith.subf %14, %24 : vector<128x128xf32>
    %26 = arith.mulf %25, %19 : vector<128x128xf32>
    %27 = arith.mulf %26, %26 : vector<128x128xf32>
    %cst_7 = arith.constant dense<0.000000e+00> : vector<128xf32>
    %28 = vector.multi_reduction <add>, %27, %cst_7 [1] : vector<128x128xf32> to vector<128xf32>
    %29 = vector.shape_cast %28 : vector<128xf32> to vector<128x1xf32>
    %cst_8 = arith.constant 3.125000e-02 : f32
    %30 = vector.broadcast %cst_8 : f32 to vector<128x1xf32>
    %31 = arith.mulf %29, %30 : vector<128x1xf32>
    %cst_9 = arith.constant 9.99999974E-6 : f32
    %32 = vector.broadcast %cst_9 : f32 to vector<128x1xf32>
    %33 = arith.addf %31, %32 : vector<128x1xf32>
    %34 = math.rsqrt %33 : vector<128x1xf32>
    %35 = vector.broadcast %34 : vector<128x1xf32> to vector<128x128xf32>
    %36 = arith.mulf %26, %35 : vector<128x128xf32>
    %37 = vector.broadcast %2 : vector<1x128xf32> to vector<128x128xf32>
    %38 = arith.mulf %36, %37 : vector<128x128xf32>
    %39 = vector.broadcast %3 : vector<1x128xf32> to vector<128x128xf32>
    %40 = arith.addf %38, %39 : vector<128x128xf32>
    %cst_10 = arith.constant 0.000000e+00 : f32
    %41 = vector.broadcast %cst_10 : f32 to vector<128x128xf32>
    %42 = arith.maximumf %40, %41 : vector<128x128xf32>
    %c0_11 = arith.constant 0 : index
    %c0_12 = arith.constant 0 : index
    %43 = vector.load %arg3[%c0_11, %c0_12] : memref<128x128xbf16, #tpu.memory_space<vmem>>, vector<128x128xbf16>
    %44 = arith.extf %43 : vector<128x128xbf16> to vector<128x128xf32>
    %45 = arith.addf %42, %44 : vector<128x128xf32>
    %46 = arith.truncf %45 : vector<128x128xf32> to vector<128x128xbf16>
    %c0_13 = arith.constant 0 : index
    %c0_14 = arith.constant 0 : index
    %47 = vector.load %arg4[%c0_13, %c0_14] : memref<128x256xbf16, #tpu.memory_space<vmem>>, vector<128x256xbf16>
    %cst_15 = arith.constant dense<0.000000e+00> : vector<128x256xf32>
    %48 = tpu.matmul %46, %47, %cst_15 {dimension_numbers = #tpu.dot_dimension_numbers<[1], [0], [0], [1], [0, 0, 1, 1], [], []>} : vector<128x128xbf16>, vector<128x256xbf16>, vector<128x256xf32> -> vector<128x256xf32>
    %49 = vector.broadcast %4 : vector<1x256xf32> to vector<128x256xf32>
    %50 = arith.addf %48, %49 : vector<128x256xf32>
    %cst_16 = arith.constant 0.000000e+00 : f32
    %51 = vector.broadcast %cst_16 : f32 to vector<128x256xf32>
    %52 = arith.maximumf %50, %51 : vector<128x256xf32>
    %53 = vector.extract_strided_slice %52 {offsets = [0, 0], sizes = [128, 128], strides = [1, 1]} : vector<128x256xf32> to vector<128x128xf32>
    %cst_17 = arith.constant dense<0.000000e+00> : vector<128xf32>
    %54 = vector.multi_reduction <add>, %53, %cst_17 [1] : vector<128x128xf32> to vector<128xf32>
    %55 = vector.shape_cast %54 : vector<128xf32> to vector<128x1xf32>
    %cst_18 = arith.constant 3.125000e-02 : f32
    %56 = vector.broadcast %cst_18 : f32 to vector<128x1xf32>
    %57 = arith.mulf %55, %56 : vector<128x1xf32>
    %58 = vector.broadcast %57 : vector<128x1xf32> to vector<128x128xf32>
    %59 = arith.subf %53, %58 : vector<128x128xf32>
    %60 = arith.mulf %59, %19 : vector<128x128xf32>
    %61 = arith.mulf %60, %60 : vector<128x128xf32>
    %cst_19 = arith.constant dense<0.000000e+00> : vector<128xf32>
    %62 = vector.multi_reduction <add>, %61, %cst_19 [1] : vector<128x128xf32> to vector<128xf32>
    %63 = vector.shape_cast %62 : vector<128xf32> to vector<128x1xf32>
    %cst_20 = arith.constant 3.125000e-02 : f32
    %64 = vector.broadcast %cst_20 : f32 to vector<128x1xf32>
    %65 = arith.mulf %63, %64 : vector<128x1xf32>
    %cst_21 = arith.constant 9.99999974E-6 : f32
    %66 = vector.broadcast %cst_21 : f32 to vector<128x1xf32>
    %67 = arith.addf %65, %66 : vector<128x1xf32>
    %68 = math.rsqrt %67 : vector<128x1xf32>
    %69 = vector.broadcast %68 : vector<128x1xf32> to vector<128x128xf32>
    %70 = arith.mulf %60, %69 : vector<128x128xf32>
    %71 = vector.broadcast %5 : vector<1x128xf32> to vector<128x128xf32>
    %72 = arith.mulf %70, %71 : vector<128x128xf32>
    %73 = vector.broadcast %6 : vector<1x128xf32> to vector<128x128xf32>
    %74 = arith.addf %72, %73 : vector<128x128xf32>
    %75 = vector.extract_strided_slice %52 {offsets = [0, 128], sizes = [128, 128], strides = [1, 1]} : vector<128x256xf32> to vector<128x128xf32>
    %cst_22 = arith.constant dense<0.000000e+00> : vector<128xf32>
    %76 = vector.multi_reduction <add>, %75, %cst_22 [1] : vector<128x128xf32> to vector<128xf32>
    %77 = vector.shape_cast %76 : vector<128xf32> to vector<128x1xf32>
    %cst_23 = arith.constant 3.125000e-02 : f32
    %78 = vector.broadcast %cst_23 : f32 to vector<128x1xf32>
    %79 = arith.mulf %77, %78 : vector<128x1xf32>
    %80 = vector.broadcast %79 : vector<128x1xf32> to vector<128x128xf32>
    %81 = arith.subf %75, %80 : vector<128x128xf32>
    %82 = arith.mulf %81, %19 : vector<128x128xf32>
    %83 = arith.mulf %82, %82 : vector<128x128xf32>
    %cst_24 = arith.constant dense<0.000000e+00> : vector<128xf32>
    %84 = vector.multi_reduction <add>, %83, %cst_24 [1] : vector<128x128xf32> to vector<128xf32>
    %85 = vector.shape_cast %84 : vector<128xf32> to vector<128x1xf32>
    %cst_25 = arith.constant 3.125000e-02 : f32
    %86 = vector.broadcast %cst_25 : f32 to vector<128x1xf32>
    %87 = arith.mulf %85, %86 : vector<128x1xf32>
    %cst_26 = arith.constant 9.99999974E-6 : f32
    %88 = vector.broadcast %cst_26 : f32 to vector<128x1xf32>
    %89 = arith.addf %87, %88 : vector<128x1xf32>
    %90 = math.rsqrt %89 : vector<128x1xf32>
    %91 = vector.broadcast %90 : vector<128x1xf32> to vector<128x128xf32>
    %92 = arith.mulf %82, %91 : vector<128x128xf32>
    %93 = vector.broadcast %7 : vector<1x128xf32> to vector<128x128xf32>
    %94 = arith.mulf %92, %93 : vector<128x128xf32>
    %95 = vector.broadcast %8 : vector<1x128xf32> to vector<128x128xf32>
    %96 = arith.addf %94, %95 : vector<128x128xf32>
    %97 = tpu.concatenate %74, %96 in 1 : vector<128x128xf32>, vector<128x128xf32> -> vector<128x256xf32>
    %98 = arith.truncf %97 : vector<128x256xf32> to vector<128x256xbf16>
    %c0_27 = arith.constant 0 : index
    %c0_28 = arith.constant 0 : index
    %99 = vector.load %arg5[%c0_27, %c0_28] : memref<256x128xbf16, #tpu.memory_space<vmem>>, vector<256x128xbf16>
    %cst_29 = arith.constant dense<0.000000e+00> : vector<128x128xf32>
    %100 = tpu.matmul %98, %99, %cst_29 {dimension_numbers = #tpu.dot_dimension_numbers<[1], [0], [0], [1], [0, 0, 1, 1], [], []>} : vector<128x256xbf16>, vector<256x128xbf16>, vector<128x128xf32> -> vector<128x128xf32>
    %101 = vector.broadcast %9 : vector<1x128xf32> to vector<128x128xf32>
    %102 = arith.addf %100, %101 : vector<128x128xf32>
    %103 = tpu.iota {dimensions = array<i32: 1>} : vector<128x128xi32>
    %c4_i32 = arith.constant 4 : i32
    %104 = vector.broadcast %c4_i32 : i32 to vector<128x128xi32>
    %105 = arith.cmpi slt, %103, %104 : vector<128x128xi32>
    %cst_30 = arith.constant 0xFF800000 : f32
    %106 = vector.broadcast %cst_30 : f32 to vector<128x128xf32>
    %107 = arith.select %105, %102, %106 : vector<128x128xi1>, vector<128x128xf32>
    %cst_31 = arith.constant dense<0xFF800000> : vector<128xf32>
    %108 = vector.multi_reduction <maximumf>, %107, %cst_31 [1] : vector<128x128xf32> to vector<128xf32>
    %109 = vector.shape_cast %108 : vector<128xf32> to vector<128x1xf32>
    %110 = vector.broadcast %109 : vector<128x1xf32> to vector<128x128xf32>
    %111 = arith.subf %107, %110 : vector<128x128xf32>
    %112 = math.exp %111 : vector<128x128xf32>
    %cst_32 = arith.constant dense<0.000000e+00> : vector<128xf32>
    %113 = vector.multi_reduction <add>, %112, %cst_32 [1] : vector<128x128xf32> to vector<128xf32>
    %114 = vector.shape_cast %113 : vector<128xf32> to vector<128x1xf32>
    %115 = vector.broadcast %114 : vector<128x1xf32> to vector<128x128xf32>
    %116 = arith.divf %112, %115 : vector<128x128xf32>
    %c4_i32_33 = arith.constant 4 : i32
    %117 = vector.broadcast %c4_i32_33 : i32 to vector<128x128xi32>
    %118 = arith.cmpi eq, %103, %117 : vector<128x128xi32>
    %cst_34 = arith.constant 0.000000e+00 : f32
    %119 = vector.broadcast %cst_34 : f32 to vector<128x128xf32>
    %120 = arith.select %118, %102, %119 : vector<128x128xi1>, vector<128x128xf32>
    %121 = arith.select %105, %116, %120 : vector<128x128xi1>, vector<128x128xf32>
    %c0_35 = arith.constant 0 : index
    %c0_36 = arith.constant 0 : index
    %122 = vector.load %arg7[%c0_35, %c0_36] : memref<128x128xf32, #tpu.memory_space<vmem>>, vector<128x128xf32>
    tpu.vector_store %arg7[%c0_35, %c0_36], %121 {strides = array<i32>} : memref<128x128xf32, #tpu.memory_space<vmem>>, vector<128x128xf32>,
    return
  }
  func.func @transform_0(%arg0: i32) -> (i32, i32) {
    %c0_i32 = arith.constant 0 : i32
    %c0_i32_0 = arith.constant 0 : i32
    return %arg0, %c0_i32 : i32, i32
  }
  func.func @transform_1(%arg0: i32) -> (i32, i32) {
    %c0_i32 = arith.constant 0 : i32
    %c0_i32_0 = arith.constant 0 : i32
    %c0_i32_1 = arith.constant 0 : i32
    return %c0_i32, %c0_i32_0 : i32, i32
  }
  func.func @transform_2(%arg0: i32) -> (i32, i32) {
    %c0_i32 = arith.constant 0 : i32
    %c0_i32_0 = arith.constant 0 : i32
    return %arg0, %c0_i32 : i32, i32
  }
  func.func @transform_3(%arg0: i32) -> (i32, i32) {
    %c0_i32 = arith.constant 0 : i32
    %c0_i32_0 = arith.constant 0 : i32
    %c0_i32_1 = arith.constant 0 : i32
    return %c0_i32, %c0_i32_0 : i32, i32
  }
  func.func @transform_4(%arg0: i32) -> (i32, i32) {
    %c0_i32 = arith.constant 0 : i32
    %c0_i32_0 = arith.constant 0 : i32
    %c0_i32_1 = arith.constant 0 : i32
    return %c0_i32, %c0_i32_0 : i32, i32
  }
  func.func @transform_5(%arg0: i32) -> (i32, i32) {
    %c0_i32 = arith.constant 0 : i32
    %c0_i32_0 = arith.constant 0 : i32
    %c0_i32_1 = arith.constant 0 : i32
    return %c0_i32, %c0_i32_0 : i32, i32
  }
  func.func @transform_6(%arg0: i32) -> (i32, i32) {
    %c0_i32 = arith.constant 0 : i32
    %c0_i32_0 = arith.constant 0 : i32
    return %arg0, %c0_i32 : i32, i32
  }
}

</mosaic_0001>

<bundles_post_ra>
// kernel: gnn_ppo_forward.2
= control target key start
LH: loop header
LB: loop body
LE: loop exit
PB: predicated region body
PF: predicated region fallthrough
CT: control target
= control target key end

     0   :  { %v53_v16 = vlaneseq  ;;  %v1168_v58 = vmov 0.0   ;;  %s1522_s1 = inlined_call_operand.vmem [shape: bf16[128,128], index: 1, kind: input, shape index: {}]   ;;  %s1523_s0 = inlined_call_operand.vmem [shape: bf16[128,128], index: 0, kind: input, shape index: {}]   ;;  %s1524_s3 = inlined_call_operand.vmem [shape: f32[16,256], index: 3, kind: input, shape index: {}]   ;;  %s1525_s2 = inlined_call_operand.vmem [shape: bf16[128,128], index: 2, kind: input, shape index: {}]   ;;  %s1526_s4 = inlined_call_operand.vmem [shape: bf16[128,128], index: 4, kind: output, shape index: {0}]   ;;  %s1527_s5 = inlined_call_operand.vmem [shape: bf16[128,128], index: 5, kind: output, shape index: {1}]  }
   0x1   :  { %v1112_v0 = vld [vmem:[%s1522_s1] sm:$0xff]   ;;  %v1113_v1 = vld [vmem:[%s1522_s1 + $0x8] sm:$0xff]   ;;  %v1114_v2 = vld [vmem:[%s1522_s1 + $0x10] sm:$0xff]  }
   0x2   :  { %1047 = vmatprep.subr.bf16.mxu0 %v1112_v0  ;;  %v1115_v3 = vld [vmem:[%s1522_s1 + $0x18] sm:$0xff]   ;;  %v1120_v4 = vld [vmem:[%s1523_s0] sm:$0xff]   ;;  %v1117_v6 = vld [vmem:[%s1522_s1 + $0x28] sm:$0xff]   ;;  %v1247_v17 = vshrl.u32 %v53_v16, 7  ;;  %v251_v53 = vand.u32 127, %v53_v16 }
   0x3   :  { %1048 = vmatpush3.bf16.msra.mxu0 %v1112_v0  ;;  %1063 = vmatprep.mubr.bf16.mxu0 %v1120_v4  ;;  %v1116_v5 = vld [vmem:[%s1522_s1 + $0x20] sm:$0xff]   ;;  %v1118_v7 = vld [vmem:[%s1522_s1 + $0x30] sm:$0xff]   ;;  %v1119_v8 = vld [vmem:[%s1522_s1 + $0x38] sm:$0xff]  }
   0x4   :  { %1049 = vmatprep.subr.bf16.mxu0 %v1113_v1  ;;  %v1121_v9 = vld [vmem:[%s1523_s0 + $0x8] sm:$0xff]   ;;  %v1122_v10 = vld [vmem:[%s1523_s0 + $0x10] sm:$0xff]   ;;  %v1123_v11 = vld [vmem:[%s1523_s0 + $0x18] sm:$0xff]   ;;  %v55_v18 = vsub.s32 0, %v1247_v17  ;;  %vm252_vm0 = vcmp.lt.s32.totalorder %v251_v53, 32 }
   0x5   :  { %v1124_v12 = vld [vmem:[%s1523_s0 + $0x20] sm:$0xff]   ;;  %v1125_v13 = vld [vmem:[%s1523_s0 + $0x28] sm:$0xff]   ;;  %v1126_v14 = vld [vmem:[%s1523_s0 + $0x30] sm:$0xff]   ;;  %v1298_v59 = vsel %vm252_vm0, 1.0, %v1168_v58 }
   0x6   :  { %v1127_v15 = vld [vmem:[%s1523_s0 + $0x38] sm:$0xff]   ;;  %v1253_v19 = vld [vmem:[%s1524_s3] sm:$0xff] }
   0x7   :  { %1050 = vmatpush3.bf16.msra.mxu0 %v1113_v1  ;;  %v56_v20 = vrot.slane %v1253_v19, %v55_v18 }
   0x8   :  { %1051 = vmatprep.subr.bf16.mxu0 %v1114_v2 }
   0xb   :  { %1052 = vmatpush3.bf16.msra.mxu0 %v1114_v2 }
   0xc   :  { %1053 = vmatprep.subr.bf16.mxu0 %v1115_v3 }
   0xf   :  { %1054 = vmatpush3.bf16.msra.mxu0 %v1115_v3 }
  0x10   :  { %1055 = vmatprep.subr.bf16.mxu0 %v1116_v5 }
  0x13   :  { %1056 = vmatpush3.bf16.msra.mxu0 %v1116_v5 }
  0x14   :  { %1057 = vmatprep.subr.bf16.mxu0 %v1117_v6 }
  0x17   :  { %1058 = vmatpush3.bf16.msra.mxu0 %v1117_v6 }
  0x18   :  { %1059 = vmatprep.subr.bf16.mxu0 %v1118_v7 }
  0x1b   :  { %1060 = vmatpush3.bf16.msra.mxu0 %v1118_v7 }
  0x1c   :  { %1061 = vmatprep.subr.bf16.mxu0 %v1119_v8 }
  0x1f   :  { %1062 = vmatpush3.bf16.msra.mxu0 %v1119_v8 }
  0x22   :  { %1064 = vmatmul.mubr.bf16.vlgmr.msra.gmra.mrb[0].mxu0 %v1121_v9 }
  0x23   :  { %1067 = vmatprep.mubr.bf16.mxu0 %v1122_v10 }
  0x2a   :  { %1068 = vmatmul.mubr.bf16.gmra.mrb[4].mxu0 %v1123_v11 }
  0x2b   :  { %1071 = vmatprep.mubr.bf16.mxu0 %v1124_v12 }
  0x32   :  { %1072 = vmatmul.mubr.bf16.gmra.mrb[8].mxu0 %v1125_v13 }
  0x33   :  { %1075 = vmatprep.mubr.bf16.mxu0 %v1126_v14 }
  0x3a   :  { %1076 = vmatmul.mubr.bf16.gmra.mrb[12].mxu0 %v1127_v15 }
  0xf5   :  { %v1065_v21 = vpop.f32.mrb[0].mxu0 }
  0xf6   :  { %v1256_v22 = vadd.f32 %v1065_v21, %v56_v20  ;;  %v187_v23 = vpop.f32.mrb[1].mxu0 }
  0xf7   :  { %v188_v24 = vadd.f32 %v187_v23, %v56_v20  ;;  %v1066_v25 = vpop.f32.mrb[2].mxu0 }
  0xf8   :  { %259 = vadd.xlane.f32.xlu1 %v1256_v22  ;;  %v190_v26 = vpop.f32.mrb[3].mxu0  ;;  %v1259_v27 = vadd.f32 %v1066_v25, %v56_v20 }
  0xf9   :  { %255 = vadd.xlane.f32.xlu0 %v188_v24  ;;  %v191_v28 = vadd.f32 %v190_v26, %v56_v20 }
  0xfc   :  { %261 = vadd.xlane.f32.xlu1 %v1259_v27 }
  0xfd   :  { %v1069_v29 = vpop.f32.mrb[4].mxu0  ;;  %257 = vadd.xlane.f32.xlu0 %v191_v28 }
  0xfe   :  { %v203_v30 = vpop.f32.mrb[5].mxu0  ;;  %v1267_v35 = vadd.f32 %v1069_v29, %v56_v20 }
  0xff   :  { %v1262_v31 = vadd.f32 %v203_v30, %v56_v20  ;;  %v1070_v32 = vpop.f32.mrb[6].mxu0 }
 0x100   :  { %v206_v33 = vpop.f32.mrb[7].mxu0  ;;  %v1270_v36 = vadd.f32 %v1070_v32, %v56_v20 }
 0x101   :  { %v1264_v34 = vadd.f32 %v206_v33, %v56_v20  ;;  %263 = vadd.xlane.f32.xlu0 %v1262_v31 }
 0x103   :  { %265 = vadd.xlane.f32.xlu1 %v1264_v34 }
 0x105   :  { %v1073_v37 = vpop.f32.mrb[8].mxu0  ;;  %267 = vadd.xlane.f32.xlu0 %v1267_v35 }
 0x106   :  { %v219_v38 = vpop.f32.mrb[9].mxu0  ;;  %v1279_v43 = vadd.f32 %v1073_v37, %v56_v20 }
 0x107   :  { %v1273_v39 = vadd.f32 %v219_v38, %v56_v20  ;;  %v1074_v40 = vpop.f32.mrb[10].mxu0  ;;  %269 = vadd.xlane.f32.xlu1 %v1270_v36 }
 0x108   :  { %v222_v41 = vpop.f32.mrb[11].mxu0  ;;  %v1282_v44 = vadd.f32 %v1074_v40, %v56_v20 }
 0x109   :  { %v1276_v42 = vadd.f32 %v222_v41, %v56_v20  ;;  %271 = vadd.xlane.f32.xlu0 %v1273_v39 }
 0x10b   :  { %273 = vadd.xlane.f32.xlu1 %v1276_v42 }
 0x10d   :  { %v1077_v45 = vpop.f32.mrb[12].mxu0  ;;  %275 = vadd.xlane.f32.xlu0 %v1279_v43 }
 0x10e   :  { %v235_v46 = vpop.f32.mrb[13].mxu0  ;;  %v1291_v51 = vadd.f32 %v1077_v45, %v56_v20 }
 0x10f   :  { %v1285_v47 = vadd.f32 %v235_v46, %v56_v20  ;;  %v1078_v48 = vpop.f32.mrb[14].mxu0  ;;  %277 = vadd.xlane.f32.xlu1 %v1282_v44 }
 0x110   :  { %v238_v49 = vpop.f32.mrb[15].mxu0  ;;  %v1294_v52 = vadd.f32 %v1078_v48, %v56_v20  ;;  %v1128_v48 = vld [vmem:[%s1525_s2] sm:$0xff]  }
 0x111   :  { %v1288_v50 = vadd.f32 %v238_v49, %v56_v20  ;;  %279 = vadd.xlane.f32.xlu0 %v1285_v47  ;;  %1079 = vmatprep.subr.bf16.mxu1 %v1128_v48 }
 0x112   :  { %1080 = vmatpush3.bf16.msra.mxu1 %v1128_v48 }
 0x113   :  { %281 = vadd.xlane.f32.xlu1 %v1288_v50 }
 0x115   :  { %283 = vadd.xlane.f32.xlu0 %v1291_v51 }
 0x117   :  { %285 = vadd.xlane.f32.xlu1 %v1294_v52 }
 0x185   :  { %v260_v54 = vpop.xlane.xlu1 %259 }
 0x186   :  { %v289_v55 = vmul.f32 0.03125, %v260_v54  ;;  %v256_v56 = vpop.xlane.xlu0 %255 }
 0x187   :  { %v287_v57 = vmul.f32 0.03125, %v256_v56 }
 0x188   :  { %v305_v60 = vsub.f32 %v1256_v22, %v289_v55 }
 0x189   :  { %v303_v61 = vsub.f32 %v188_v24, %v287_v57  ;;  %v262_v62 = vpop.xlane.xlu1 %261 }
 0x18a   :  { %v290_v63 = vmul.f32 0.03125, %v262_v62  ;;  %v258_v0 = vpop.xlane.xlu0 %257  ;;  %v1308_v6 = vmul.f32 %v1298_v59, %v305_v60 }
 0x18b   :  { %v288_v1 = vmul.f32 0.03125, %v258_v0  ;;  %v1302_v2 = vmul.f32 %v1298_v59, %v303_v61 }
 0x18c   :  { %v306_v3 = vsub.f32 %v1259_v27, %v290_v63  ;;  %v337_v14 = vmul.f32 %v1308_v6, %v1308_v6 }
 0x18d   :  { %v304_v4 = vsub.f32 %v191_v28, %v288_v1  ;;  %v335_v5 = vmul.f32 %v1302_v2, %v1302_v2 }
 0x18e   :  { %v264_v7 = vpop.xlane.xlu0 %263  ;;  %v1314_v11 = vmul.f32 %v1298_v59, %v306_v3 }
 0x18f   :  { %v291_v8 = vmul.f32 0.03125, %v264_v7  ;;  %351 = vadd.xlane.f32.xlu0 %v335_v5  ;;  %v1311_v9 = vmul.f32 %v1298_v59, %v304_v4 }
 0x190   :  { %v266_v10 = vpop.xlane.xlu1 %265  ;;  %v338_v23 = vmul.f32 %v1314_v11, %v1314_v11 }
 0x191   :  { %v307_v12 = vsub.f32 %v1262_v31, %v291_v8  ;;  %v292_v13 = vmul.f32 0.03125, %v266_v10  ;;  %v336_v15 = vmul.f32 %v1311_v9, %v1311_v9 }
 0x192   :  { %v268_v16 = vpop.xlane.xlu0 %267 }
 0x193   :  { %v308_v18 = vsub.f32 %v1264_v34, %v292_v13  ;;  %v293_v20 = vmul.f32 0.03125, %v268_v16  ;;  %355 = vadd.xlane.f32.xlu0 %v337_v14  ;;  %353 = vadd.xlane.f32.xlu1 %v336_v15  ;;  %v1323_v21 = vmul.f32 %v1298_v59, %v307_v12 }
 0x194   :  { %v270_v22 = vpop.xlane.xlu1 %269 }
 0x195   :  { %v309_v24 = vsub.f32 %v1267_v35, %v293_v20  ;;  %v294_v25 = vmul.f32 0.03125, %v270_v22  ;;  %v339_v26 = vmul.f32 %v1323_v21, %v1323_v21  ;;  %v1331_v27 = vmul.f32 %v1298_v59, %v308_v18  ;;  %v1132_v22 = vld [vmem:[%s1525_s2 + $0x20] sm:$0xff]  }
 0x196   :  { %v272_v28 = vpop.xlane.xlu0 %271 }
 0x197   :  { %v310_v29 = vsub.f32 %v1270_v36, %v294_v25  ;;  %v295_v30 = vmul.f32 0.03125, %v272_v28  ;;  %357 = vadd.xlane.f32.xlu1 %v338_v23  ;;  %359 = vadd.xlane.f32.xlu0 %v339_v26  ;;  %v1335_v31 = vmul.f32 %v1298_v59, %v309_v24  ;;  %v340_v33 = vmul.f32 %v1331_v27, %v1331_v27  ;;  %v1134_v23 = vld [vmem:[%s1525_s2 + $0x30] sm:$0xff]   ;;  %v1135_v24 = vld [vmem:[%s1525_s2 + $0x38] sm:$0xff]  }
 0x198   :  { %v274_v32 = vpop.xlane.xlu1 %273 }
 0x199   :  { %v311_v34 = vsub.f32 %v1273_v39, %v295_v30  ;;  %v296_v35 = vmul.f32 0.03125, %v274_v32  ;;  %v341_v37 = vmul.f32 %v1335_v31, %v1335_v31  ;;  %v1343_v38 = vmul.f32 %v1298_v59, %v310_v29 }
 0x19a   :  { %v276_v36 = vpop.xlane.xlu0 %275 }
 0x19b   :  { %v312_v40 = vsub.f32 %v1276_v42, %v296_v35  ;;  %v297_v41 = vmul.f32 0.03125, %v276_v36  ;;  %361 = vadd.xlane.f32.xlu1 %v340_v33  ;;  %363 = vadd.xlane.f32.xlu0 %v341_v37  ;;  %v1347_v45 = vmul.f32 %v1298_v59, %v311_v34  ;;  %v342_v39 = vmul.f32 %v1343_v38, %v1343_v38 }
 0x19c   :  { %v278_v46 = vpop.xlane.xlu1 %277 }
 0x19d   :  { %v313_v49 = vsub.f32 %v1279_v43, %v297_v41  ;;  %v298_v53 = vmul.f32 0.03125, %v278_v46  ;;  %v343_v42 = vmul.f32 %v1347_v45, %v1347_v45  ;;  %v1358_v54 = vmul.f32 %v1298_v59, %v312_v40 }
 0x19e   :  { %v280_v55 = vpop.xlane.xlu0 %279  ;;  %v449_v46 = vsub.s32 1, %v1247_v17 }
 0x19f   :  { %v314_v56 = vsub.f32 %v1282_v44, %v298_v53  ;;  %v299_v57 = vmul.f32 0.03125, %v280_v55  ;;  %365 = vadd.xlane.f32.xlu1 %v342_v39  ;;  %367 = vadd.xlane.f32.xlu0 %v343_v42  ;;  %v1362_v58 = vmul.f32 %v1298_v59, %v313_v49  ;;  %v344_v43 = vmul.f32 %v1358_v54, %v1358_v54  ;;  %v1129_v44 = vld [vmem:[%s1525_s2 + $0x8] sm:$0xff]  }
 0x1a0   :  { %v282_v60 = vpop.xlane.xlu1 %281  ;;  %1081 = vmatprep.subr.bf16.mxu1 %v1129_v44  ;;  %v469_v42 = vsub.s32 2, %v1247_v17 }
 0x1a1   :  { %v315_v61 = vsub.f32 %v1285_v47, %v299_v57  ;;  %v300_v62 = vmul.f32 0.03125, %v282_v60  ;;  %v345_v63 = vmul.f32 %v1362_v58, %v1362_v58  ;;  %v1370_v0 = vmul.f32 %v1298_v59, %v314_v56  ;;  %1082 = vmatpush3.bf16.msra.mxu1 %v1129_v44 }
 0x1a2   :  { %v284_v1 = vpop.xlane.xlu0 %283  ;;  %v1421_v57 = vrot.slane %v1253_v19, %v449_v46 }
 0x1a3   :  { %v316_v3 = vsub.f32 %v1288_v50, %v300_v62  ;;  %v301_v4 = vmul.f32 0.03125, %v284_v1  ;;  %369 = vadd.xlane.f32.xlu1 %v344_v43  ;;  %371 = vadd.xlane.f32.xlu0 %v345_v63  ;;  %v1377_v5 = vmul.f32 %v1298_v59, %v315_v61  ;;  %v346_v7 = vmul.f32 %v1370_v0, %v1370_v0  ;;  %v1130_v50 = vld [vmem:[%s1525_s2 + $0x10] sm:$0xff]  }
 0x1a4   :  { %v286_v47 = vpop.xlane.xlu1 %285  ;;  %1083 = vmatprep.subr.bf16.mxu1 %v1130_v50  ;;  %v1425_v1 = vrot.slane %v1253_v19, %v469_v42 }
 0x1a5   :  { %v317_v8 = vsub.f32 %v1291_v51, %v301_v4  ;;  %v302_v10 = vmul.f32 0.03125, %v286_v47  ;;  %v347_v12 = vmul.f32 %v1377_v5, %v1377_v5  ;;  %v1385_v13 = vmul.f32 %v1298_v59, %v316_v3  ;;  %1084 = vmatpush3.bf16.msra.mxu1 %v1130_v50 }
 0x1a7   :  { %v318_v14 = vsub.f32 %v1294_v52, %v302_v10  ;;  %373 = vadd.xlane.f32.xlu1 %v346_v7  ;;  %375 = vadd.xlane.f32.xlu0 %v347_v12  ;;  %v1392_v15 = vmul.f32 %v1298_v59, %v317_v8  ;;  %v348_v51 = vmul.f32 %v1385_v13, %v1385_v13  ;;  %v1131_v52 = vld [vmem:[%s1525_s2 + $0x18] sm:$0xff]  }
 0x1a8   :  { %1085 = vmatprep.subr.bf16.mxu1 %v1131_v52 }
 0x1a9   :  { %v349_v16 = vmul.f32 %v1392_v15, %v1392_v15  ;;  %v1399_v18 = vmul.f32 %v1298_v59, %v318_v14  ;;  %1086 = vmatpush3.bf16.msra.mxu1 %v1131_v52  ;;  %v1133_v59 = vld [vmem:[%s1525_s2 + $0x28] sm:$0xff]  }
 0x1aa   :  { %1087 = vmatprep.subr.bf16.mxu1 %v1132_v22 }
 0x1ab   :  { %377 = vadd.xlane.f32.xlu1 %v348_v51  ;;  %379 = vadd.xlane.f32.xlu0 %v349_v16  ;;  %v350_v20 = vmul.f32 %v1399_v18, %v1399_v18 }
 0x1ad   :  { %1088 = vmatpush3.bf16.msra.mxu1 %v1132_v22 }
 0x1ae   :  { %1089 = vmatprep.subr.bf16.mxu1 %v1133_v59 }
 0x1af   :  { %381 = vadd.xlane.f32.xlu1 %v350_v20 }
 0x1b1   :  { %1090 = vmatpush3.bf16.msra.mxu1 %v1133_v59 }
 0x1b2   :  { %1091 = vmatprep.subr.bf16.mxu1 %v1134_v23 }
 0x1b5   :  { %1092 = vmatpush3.bf16.msra.mxu1 %v1134_v23 }
 0x1b6   :  { %1093 = vmatprep.subr.bf16.mxu1 %v1135_v24 }
 0x1b9   :  { %1094 = vmatpush3.bf16.msra.mxu1 %v1135_v24 }
 0x21c   :  { %v352_v25 = vpop.xlane.xlu0 %351 }
 0x21d   :  { %v383_v26 = vmul.f32 0.03125, %v352_v25 }
 0x21f   :  { %v399_v28 = vadd.f32 1e-05, %v383_v26 }
 0x220   :  { %v354_v29 = vpop.xlane.xlu1 %353  ;;  %v356_v30 = vpop.xlane.xlu0 %355 }
 0x221   :  { %1136 = vrsqrt.f32 %v399_v28  ;;  %v384_v32 = vmul.f32 0.03125, %v354_v29  ;;  %v385_v33 = vmul.f32 0.03125, %v356_v30 }
 0x223   :  { %v400_v34 = vadd.f32 1e-05, %v384_v32  ;;  %v401_v35 = vadd.f32 1e-05, %v385_v33 }
 0x224   :  { %v358_v37 = vpop.xlane.xlu1 %357  ;;  %v360_v36 = vpop.xlane.xlu0 %359 }
 0x225   :  { %1138 = vrsqrt.f32 %v400_v34  ;;  %v386_v40 = vmul.f32 0.03125, %v358_v37  ;;  %v387_v41 = vmul.f32 0.03125, %v360_v36 }
 0x226   :  { %1140 = vrsqrt.f32 %v401_v35 }
 0x227   :  { %v402_v39 = vadd.f32 1e-05, %v386_v40  ;;  %v403_v48 = vadd.f32 1e-05, %v387_v41 }
 0x228   :  { %v362_v49 = vpop.xlane.xlu1 %361  ;;  %v364_v53 = vpop.xlane.xlu0 %363 }
 0x229   :  { %1142 = vrsqrt.f32 %v402_v39  ;;  %v388_v55 = vmul.f32 0.03125, %v362_v49  ;;  %v389_v56 = vmul.f32 0.03125, %v364_v53 }
 0x22a   :  { %1144 = vrsqrt.f32 %v403_v48 }
 0x22b   :  { %v1137_v60 = vpop.eup %1136  ;;  %v404_v43 = vadd.f32 1e-05, %v388_v55  ;;  %v405_v61 = vadd.f32 1e-05, %v389_v56 }
 0x22c   :  { %v366_v62 = vpop.xlane.xlu1 %365  ;;  %v368_v63 = vpop.xlane.xlu0 %367  ;;  %v431_v44 = vmul.f32 %v1137_v60, %v1302_v2 }
 0x22d   :  { %1146 = vrsqrt.f32 %v404_v43  ;;  %v390_v3 = vmul.f32 0.03125, %v366_v62  ;;  %v391_v17 = vmul.f32 0.03125, %v368_v63 }
 0x22e   :  { %1148 = vrsqrt.f32 %v405_v61  ;;  %v451_v4 = vmul.f32 %v1421_v57, %v431_v44 }
 0x22f   :  { %v1139_v47 = vpop.eup %1138  ;;  %v406_v7 = vadd.f32 1e-05, %v390_v3  ;;  %v407_v8 = vadd.f32 1e-05, %v391_v17 }
 0x230   :  { %v1141_v10 = vpop.eup %1140  ;;  %v370_v12 = vpop.xlane.xlu1 %369  ;;  %v432_v14 = vmul.f32 %v1139_v47, %v1311_v9  ;;  %v471_v51 = vadd.f32 %v1425_v1, %v451_v4 }
 0x231   :  { %v372_v50 = vpop.xlane.xlu0 %371  ;;  %1150 = vrsqrt.f32 %v406_v7  ;;  %v392_v2 = vmul.f32 0.03125, %v370_v12  ;;  %v433_v16 = vmul.f32 %v1141_v10, %v1308_v6 }
 0x232   :  { %v393_v19 = vmul.f32 0.03125, %v372_v50  ;;  %1152 = vrsqrt.f32 %v407_v8  ;;  %v452_v52 = vmul.f32 %v1421_v57, %v432_v14  ;;  %v487_v28 = vmax.f32 %v471_v51, 0.0 }
 0x233   :  { %v1143_v20 = vpop.eup %1142  ;;  %v408_v22 = vadd.f32 1e-05, %v392_v2  ;;  %v453_v23 = vmul.f32 %v1421_v57, %v433_v16 }
 0x234   :  { %v409_v59 = vadd.f32 1e-05, %v393_v19  ;;  %v1145_v24 = vpop.eup %1144  ;;  %v374_v25 = vpop.xlane.xlu1 %373  ;;  %v472_v9 = vadd.f32 %v1425_v1, %v452_v52  ;;  %v434_v29 = vmul.f32 %v1143_v20, %v1314_v11 }
 0x235   :  { %v376_v26 = vpop.xlane.xlu0 %375  ;;  %1154 = vrsqrt.f32 %v408_v22  ;;  %v394_v30 = vmul.f32 0.03125, %v374_v25  ;;  %v473_v6 = vadd.f32 %v1425_v1, %v453_v23  ;;  %v435_v35 = vmul.f32 %v1145_v24, %v1323_v21 }
 0x236   :  { %v395_v32 = vmul.f32 0.03125, %v376_v26  ;;  %1156 = vrsqrt.f32 %v409_v59  ;;  %v488_v33 = vmax.f32 %v472_v9, 0.0  ;;  %v454_v34 = vmul.f32 %v1421_v57, %v434_v29 }
 0x237   :  { %v1147_v37 = vpop.eup %1146  ;;  %v410_v36 = vadd.f32 1e-05, %v394_v30  ;;  %v489_v41 = vmax.f32 %v473_v6, 0.0  ;;  %v455_v42 = vmul.f32 %v1421_v57, %v435_v35 }
 0x238   :  { %v411_v40 = vadd.f32 1e-05, %v395_v32  ;;  %v1149_v46 = vpop.eup %1148  ;;  %v378_v39 = vpop.xlane.xlu1 %377  ;;  %v503_v49 = vpack.c.bf16 %v488_v33, %v487_v28  ;;  %v474_v11 = vadd.f32 %v1425_v1, %v454_v34  ;;  %v436_v53 = vmul.f32 %v1147_v37, %v1331_v27 }
 0x239   :  { %v380_v48 = vpop.xlane.xlu0 %379  ;;  %1158 = vrsqrt.f32 %v410_v36  ;;  %v396_v55 = vmul.f32 0.03125, %v378_v39  ;;  %v437_v60 = vmul.f32 %v1149_v46, %v1335_v31  ;;  %v475_v61 = vadd.f32 %v1425_v1, %v455_v42 }
 0x23a   :  { %v397_v56 = vmul.f32 0.03125, %v380_v48  ;;  %1160 = vrsqrt.f32 %v411_v40  ;;  %925 = vst [vmem:[%s1526_s4] sm:$0xff] %v503_v49   ;;  %1095 = vmatprep.mubr.bf16.mxu1 %v503_v49  ;;  %v490_v21 = vmax.f32 %v474_v11, 0.0  ;;  %v456_v43 = vmul.f32 %v1421_v57, %v436_v53 }
 0x23b   :  { %v1151_v62 = vpop.eup %1150  ;;  %v412_v27 = vadd.f32 1e-05, %v396_v55  ;;  %v457_v44 = vmul.f32 %v1421_v57, %v437_v60  ;;  %v491_v8 = vmax.f32 %v475_v61, 0.0 }
 0x23c   :  { %v413_v63 = vadd.f32 1e-05, %v397_v56  ;;  %v1153_v3 = vpop.eup %1152  ;;  %v382_v17 = vpop.xlane.xlu1 %381  ;;  %v504_v4 = vpack.c.bf16 %v490_v21, %v489_v41  ;;  %v476_v31 = vadd.f32 %v1425_v1, %v456_v43  ;;  %v438_v47 = vmul.f32 %v1151_v62, %v1343_v38 }
 0x23d   :  { %1162 = vrsqrt.f32 %v412_v27  ;;  %v398_v7 = vmul.f32 0.03125, %v382_v17  ;;  %v439_v10 = vmul.f32 %v1153_v3, %v1347_v45  ;;  %v477_v14 = vadd.f32 %v1425_v1, %v457_v44 }
 0x23e   :  { %1164 = vrsqrt.f32 %v413_v63  ;;  %1001 = vst [vmem:[%s1526_s4 + $0x8] sm:$0xff] %v504_v4   ;;  %1096 = vmatmul.mubr.bf16.vlgmr.msra.gmra.mrb[0].mxu1 %v504_v4  ;;  %v492_v12 = vmax.f32 %v476_v31, 0.0  ;;  %v458_v50 = vmul.f32 %v1421_v57, %v438_v47 }
 0x23f   :  { %v1155_v51 = vpop.eup %1154  ;;  %v414_v2 = vadd.f32 1e-05, %v398_v7  ;;  %v459_v38 = vmul.f32 %v1421_v57, %v439_v10  ;;  %v493_v22 = vmax.f32 %v477_v14, 0.0 }
 0x240   :  { %v1157_v19 = vpop.eup %1156  ;;  %v505_v16 = vpack.c.bf16 %v492_v12, %v491_v8  ;;  %v478_v52 = vadd.f32 %v1425_v1, %v458_v50  ;;  %v440_v45 = vmul.f32 %v1155_v51, %v1358_v54 }
 0x241   :  { %1166 = vrsqrt.f32 %v414_v2  ;;  %v441_v20 = vmul.f32 %v1157_v19, %v1362_v58  ;;  %v479_v24 = vadd.f32 %v1425_v1, %v459_v38 }
 0x242   :  { %1002 = vst [vmem:[%s1526_s4 + $0x10] sm:$0xff] %v505_v16   ;;  %1099 = vmatprep.mubr.bf16.mxu1 %v505_v16  ;;  %v494_v59 = vmax.f32 %v478_v52, 0.0  ;;  %v460_v23 = vmul.f32 %v1421_v57, %v440_v45 }
 0x243   :  { %v1159_v25 = vpop.eup %1158  ;;  %v461_v26 = vmul.f32 %v1421_v57, %v441_v20  ;;  %v495_v30 = vmax.f32 %v479_v24, 0.0 }
 0x244   :  { %v1161_v9 = vpop.eup %1160  ;;  %v506_v28 = vpack.c.bf16 %v494_v59, %v493_v22  ;;  %v480_v54 = vadd.f32 %v1425_v1, %v460_v23  ;;  %v442_v58 = vmul.f32 %v1159_v25, %v1370_v0 }
 0x245   :  { %v443_v29 = vmul.f32 %v1161_v9, %v1377_v5  ;;  %v481_v33 = vadd.f32 %v1425_v1, %v461_v26 }
 0x246   :  { %1003 = vst [vmem:[%s1526_s4 + $0x18] sm:$0xff] %v506_v28   ;;  %1100 = vmatmul.mubr.bf16.gmra.mrb[4].mxu1 %v506_v28  ;;  %v496_v32 = vmax.f32 %v480_v54, 0.0  ;;  %v462_v6 = vmul.f32 %v1421_v57, %v442_v58 }
 0x247   :  { %v1163_v34 = vpop.eup %1162  ;;  %v463_v35 = vmul.f32 %v1421_v57, %v443_v29  ;;  %v497_v41 = vmax.f32 %v481_v33, 0.0 }
 0x248   :  { %v1165_v37 = vpop.eup %1164  ;;  %v507_v36 = vpack.c.bf16 %v496_v32, %v495_v30  ;;  %v482_v0 = vadd.f32 %v1425_v1, %v462_v6  ;;  %v444_v5 = vmul.f32 %v1163_v34, %v1385_v13 }
 0x249   :  { %v445_v40 = vmul.f32 %v1165_v37, %v1392_v15  ;;  %v483_v48 = vadd.f32 %v1425_v1, %v463_v35 }
 0x24a   :  { %1004 = vst [vmem:[%s1526_s4 + $0x20] sm:$0xff] %v507_v36   ;;  %1103 = vmatprep.mubr.bf16.mxu1 %v507_v36  ;;  %v498_v46 = vmax.f32 %v482_v0, 0.0  ;;  %v464_v39 = vmul.f32 %v1421_v57, %v444_v5 }
 0x24b   :  { %v1167_v49 = vpop.eup %1166  ;;  %v465_v11 = vmul.f32 %v1421_v57, %v445_v40  ;;  %v499_v15 = vmax.f32 %v483_v48, 0.0 }
 0x24c   :  { %v508_v53 = vpack.c.bf16 %v498_v46, %v497_v41  ;;  %v484_v42 = vadd.f32 %v1425_v1, %v464_v39  ;;  %v446_v13 = vmul.f32 %v1167_v49, %v1399_v18 }
 0x24d   :  { %v485_v60 = vadd.f32 %v1425_v1, %v465_v11 }
 0x24e   :  { %1005 = vst [vmem:[%s1526_s4 + $0x28] sm:$0xff] %v508_v53   ;;  %1104 = vmatmul.mubr.bf16.gmra.mrb[8].mxu1 %v508_v53  ;;  %v500_v55 = vmax.f32 %v484_v42, 0.0  ;;  %v466_v56 = vmul.f32 %v1421_v57, %v446_v13 }
 0x24f   :  { %v501_v18 = vmax.f32 %v485_v60, 0.0 }
 0x250   :  { %v509_v21 = vpack.c.bf16 %v500_v55, %v499_v15  ;;  %v486_v43 = vadd.f32 %v1425_v1, %v466_v56 }
 0x252   :  { %1006 = vst [vmem:[%s1526_s4 + $0x30] sm:$0xff] %v509_v21   ;;  %1107 = vmatprep.mubr.bf16.mxu1 %v509_v21  ;;  %v502_v61 = vmax.f32 %v486_v43, 0.0 }
 0x254   :  { %v510_v62 = vpack.c.bf16 %v502_v61, %v501_v18 }
 0x256   :  { %1007 = vst [vmem:[%s1526_s4 + $0x38] sm:$0xff] %v510_v62   ;;  %1108 = vmatmul.mubr.bf16.gmra.mrb[12].mxu1 %v510_v62 }
 0x311   :  { %v1097_v27 = vpop.f32.mrb[0].mxu1 }
 0x312   :  { %v681_v57 = vpop.f32.mrb[1].mxu1 }
 0x313   :  { %v1098_v63 = vpop.f32.mrb[2].mxu1 }
 0x314   :  { %v969_v44 = vpack.c.bf16 %v1098_v63, %v1097_v27  ;;  %v684_v3 = vpop.f32.mrb[3].mxu1 }
 0x315   :  { %v964_v17 = vpack.c.bf16 %v684_v3, %v681_v57 }
 0x316   :  { %1008 = vst [vmem:[%s1527_s5 + $0x8] sm:$0xff] %v969_v44  }
 0x317   :  { %965 = vst [vmem:[%s1527_s5] sm:$0xff] %v964_v17  }
 0x319   :  { %v1101_v1 = vpop.f32.mrb[4].mxu1 }
 0x31a   :  { %v697_v4 = vpop.f32.mrb[5].mxu1 }
 0x31b   :  { %v1102_v31 = vpop.f32.mrb[6].mxu1 }
 0x31c   :  { %v979_v47 = vpack.c.bf16 %v1102_v31, %v1101_v1  ;;  %v700_v7 = vpop.f32.mrb[7].mxu1 }
 0x31d   :  { %v974_v8 = vpack.c.bf16 %v700_v7, %v697_v4 }
 0x31e   :  { %1010 = vst [vmem:[%s1527_s5 + $0x18] sm:$0xff] %v979_v47  }
 0x31f   :  { %1009 = vst [vmem:[%s1527_s5 + $0x10] sm:$0xff] %v974_v8  }
 0x321   :  { %v1105_v10 = vpop.f32.mrb[8].mxu1 }
 0x322   :  { %v713_v12 = vpop.f32.mrb[9].mxu1 }
 0x323   :  { %v1106_v50 = vpop.f32.mrb[10].mxu1 }
 0x324   :  { %v989_v14 = vpack.c.bf16 %v1106_v50, %v1105_v10  ;;  %v716_v51 = vpop.f32.mrb[11].mxu1 }
 0x325   :  { %v984_v2 = vpack.c.bf16 %v716_v51, %v713_v12 }
 0x326   :  { %1012 = vst [vmem:[%s1527_s5 + $0x28] sm:$0xff] %v989_v14  }
 0x327   :  { %1011 = vst [vmem:[%s1527_s5 + $0x20] sm:$0xff] %v984_v2  }
 0x329   :  { %v1109_v38 = vpop.f32.mrb[12].mxu1 }
 0x32a   :  { %v729_v19 = vpop.f32.mrb[13].mxu1 }
 0x32b   :  { %v1110_v16 = vpop.f32.mrb[14].mxu1 }
 0x32c   :  { %v999_v52 = vpack.c.bf16 %v1110_v16, %v1109_v38  ;;  %v732_v45 = vpop.f32.mrb[15].mxu1 }
 0x32d   :  { %v994_v20 = vpack.c.bf16 %v732_v45, %v729_v19 }
 0x32e   :  { %1014 = vst [vmem:[%s1527_s5 + $0x38] sm:$0xff] %v999_v52  }
 0x32f   :  { %1013 = vst [vmem:[%s1527_s5 + $0x30] sm:$0xff] %v994_v20  }

// kernel: gnn_ppo_forward.3
= control target key start
LH: loop header
LB: loop body
LE: loop exit
PB: predicated region body
PF: predicated region fallthrough
CT: control target
= control target key end

     0   :  { %v59_v16 = vlaneseq  ;;  %v2172_v59 = vmov 0.0   ;;  %s3504_s1 = inlined_call_operand.vmem [shape: bf16[128,128], index: 1, kind: input, shape index: {}]   ;;  %s3505_s0 = inlined_call_operand.vmem [shape: bf16[128,128], index: 0, kind: input, shape index: {}]   ;;  %s3506_s5 = inlined_call_operand.vmem [shape: f32[16,256], index: 5, kind: input, shape index: {}]   ;;  %s3507_s3 = inlined_call_operand.vmem [shape: bf16[128,256], index: 3, kind: input, shape index: {}]   ;;  %s3508_s2 = inlined_call_operand.vmem [shape: bf16[128,128], index: 2, kind: input, shape index: {}]   ;;  %s3509_s4 = inlined_call_operand.vmem [shape: bf16[256,128], index: 4, kind: input, shape index: {}]   ;;  %s3510_s6 = inlined_call_operand.vmem [shape: f32[128,128], index: 6, kind: output, shape index: {}]  }
   0x1   :  { %v1955_v0 = vld [vmem:[%s3504_s1] sm:$0xff]   ;;  %v1956_v1 = vld [vmem:[%s3504_s1 + $0x8] sm:$0xff]   ;;  %v1957_v2 = vld [vmem:[%s3504_s1 + $0x10] sm:$0xff]  }
   0x2   :  { %1905 = vmatprep.subr.bf16.mxu0 %v1955_v0  ;;  %v1958_v3 = vld [vmem:[%s3504_s1 + $0x18] sm:$0xff]   ;;  %v1963_v4 = vld [vmem:[%s3505_s0] sm:$0xff]   ;;  %v1960_v6 = vld [vmem:[%s3504_s1 + $0x28] sm:$0xff]   ;;  %v2257_v17 = vshrl.u32 %v59_v16, 7  ;;  %v2319_v54 = vand.u32 127, %v59_v16 }
   0x3   :  { %1906 = vmatpush3.bf16.msra.mxu0 %v1955_v0  ;;  %1921 = vmatprep.mubr.bf16.mxu0 %v1963_v4  ;;  %v1959_v5 = vld [vmem:[%s3504_s1 + $0x20] sm:$0xff]   ;;  %v1961_v7 = vld [vmem:[%s3504_s1 + $0x30] sm:$0xff]   ;;  %v1962_v8 = vld [vmem:[%s3504_s1 + $0x38] sm:$0xff]  }
   0x4   :  { %1907 = vmatprep.subr.bf16.mxu0 %v1956_v1  ;;  %v1964_v9 = vld [vmem:[%s3505_s0 + $0x8] sm:$0xff]   ;;  %v1965_v10 = vld [vmem:[%s3505_s0 + $0x10] sm:$0xff]   ;;  %v1966_v11 = vld [vmem:[%s3505_s0 + $0x18] sm:$0xff]   ;;  %v3511_v18 = vsub.s32 3, %v2257_v17  ;;  %vm258_vm0 = vcmp.lt.s32.totalorder %v2319_v54, 32  ;;  %vm1523_vm1 = vcmp.lt.s32.totalorder %v2319_v54, 4 }
   0x5   :  { %v1967_v12 = vld [vmem:[%s3505_s0 + $0x20] sm:$0xff]   ;;  %v1968_v13 = vld [vmem:[%s3505_s0 + $0x28] sm:$0xff]   ;;  %v1969_v14 = vld [vmem:[%s3505_s0 + $0x30] sm:$0xff]   ;;  %v2322_v60 = vsel %vm258_vm0, 1.0, %v2172_v59  ;;  %vm1684_vm2 = vcmp.eq.s32.totalorder %v2319_v54, 4 }
   0x6   :  { %v1970_v15 = vld [vmem:[%s3505_s0 + $0x38] sm:$0xff]   ;;  %v2263_v19 = vld [vmem:[%s3506_s5] sm:$0xff] }
   0x7   :  { %1908 = vmatpush3.bf16.msra.mxu0 %v1956_v1  ;;  %v62_v20 = vrot.slane %v2263_v19, %v3511_v18  ;;  %v1971_v53 = vld [vmem:[%s3507_s3 + $0x4] ss:$8 sps:$4 sm:$0xff]   ;;  %v1974_v59 = vld [vmem:[%s3507_s3 + $0x14] ss:$8 sps:$4 sm:$0xff]  }
   0x8   :  { %1909 = vmatprep.subr.bf16.mxu0 %v1957_v2  ;;  %669 = vmatprep.subr.bf16.mxu1 %v1971_v53 }
   0xb   :  { %1910 = vmatpush3.bf16.msra.mxu0 %v1957_v2 }
   0xc   :  { %1911 = vmatprep.subr.bf16.mxu0 %v1958_v3 }
   0xf   :  { %1912 = vmatpush3.bf16.msra.mxu0 %v1958_v3 }
  0x10   :  { %1913 = vmatprep.subr.bf16.mxu0 %v1959_v5 }
  0x13   :  { %1914 = vmatpush3.bf16.msra.mxu0 %v1959_v5 }
  0x14   :  { %1915 = vmatprep.subr.bf16.mxu0 %v1960_v6 }
  0x17   :  { %1916 = vmatpush3.bf16.msra.mxu0 %v1960_v6 }
  0x18   :  { %1917 = vmatprep.subr.bf16.mxu0 %v1961_v7 }
  0x1b   :  { %1918 = vmatpush3.bf16.msra.mxu0 %v1961_v7 }
  0x1c   :  { %1919 = vmatprep.subr.bf16.mxu0 %v1962_v8 }
  0x1f   :  { %1920 = vmatpush3.bf16.msra.mxu0 %v1962_v8 }
  0x22   :  { %1922 = vmatmul.mubr.bf16.vlgmr.msra.gmra.mrb[0].mxu0 %v1964_v9 }
  0x23   :  { %1925 = vmatprep.mubr.bf16.mxu0 %v1965_v10 }
  0x2a   :  { %1926 = vmatmul.mubr.bf16.gmra.mrb[4].mxu0 %v1966_v11 }
  0x2b   :  { %1929 = vmatprep.mubr.bf16.mxu0 %v1967_v12 }
  0x32   :  { %1930 = vmatmul.mubr.bf16.gmra.mrb[8].mxu0 %v1968_v13 }
  0x33   :  { %1933 = vmatprep.mubr.bf16.mxu0 %v1969_v14 }
  0x3a   :  { %1934 = vmatmul.mubr.bf16.gmra.mrb[12].mxu0 %v1970_v15 }
  0xf5   :  { %v1923_v21 = vpop.f32.mrb[0].mxu0 }
  0xf6   :  { %v2268_v22 = vadd.f32 %v1923_v21, %v62_v20  ;;  %v193_v23 = vpop.f32.mrb[1].mxu0 }
  0xf7   :  { %v2270_v24 = vadd.f32 %v193_v23, %v62_v20  ;;  %v1924_v25 = vpop.f32.mrb[2].mxu0 }
  0xf8   :  { %265 = vadd.xlane.f32.xlu1 %v2268_v22  ;;  %v196_v26 = vpop.f32.mrb[3].mxu0  ;;  %v2274_v27 = vadd.f32 %v1924_v25, %v62_v20 }
  0xf9   :  { %261 = vadd.xlane.f32.xlu0 %v2270_v24  ;;  %v2276_v28 = vadd.f32 %v196_v26, %v62_v20 }
  0xfc   :  { %267 = vadd.xlane.f32.xlu1 %v2274_v27 }
  0xfd   :  { %v1927_v29 = vpop.f32.mrb[4].mxu0  ;;  %263 = vadd.xlane.f32.xlu0 %v2276_v28 }
  0xfe   :  { %v209_v30 = vpop.f32.mrb[5].mxu0  ;;  %v2282_v34 = vadd.f32 %v1927_v29, %v62_v20 }
  0xff   :  { %v2280_v31 = vadd.f32 %v209_v30, %v62_v20  ;;  %v1928_v32 = vpop.f32.mrb[6].mxu0 }
 0x100   :  { %v212_v33 = vpop.f32.mrb[7].mxu0  ;;  %v2287_v36 = vadd.f32 %v1928_v32, %v62_v20 }
 0x101   :  { %v2284_v35 = vadd.f32 %v212_v33, %v62_v20  ;;  %269 = vadd.xlane.f32.xlu0 %v2280_v31 }
 0x103   :  { %271 = vadd.xlane.f32.xlu1 %v2284_v35 }
 0x105   :  { %v1931_v37 = vpop.f32.mrb[8].mxu0  ;;  %273 = vadd.xlane.f32.xlu0 %v2282_v34 }
 0x106   :  { %v225_v38 = vpop.f32.mrb[9].mxu0  ;;  %v2294_v42 = vadd.f32 %v1931_v37, %v62_v20 }
 0x107   :  { %v2291_v39 = vadd.f32 %v225_v38, %v62_v20  ;;  %v1932_v40 = vpop.f32.mrb[10].mxu0  ;;  %275 = vadd.xlane.f32.xlu1 %v2287_v36 }
 0x108   :  { %v228_v41 = vpop.f32.mrb[11].mxu0  ;;  %v2299_v44 = vadd.f32 %v1932_v40, %v62_v20 }
 0x109   :  { %v2296_v43 = vadd.f32 %v228_v41, %v62_v20  ;;  %277 = vadd.xlane.f32.xlu0 %v2291_v39 }
 0x10b   :  { %279 = vadd.xlane.f32.xlu1 %v2296_v43 }
 0x10d   :  { %v1935_v45 = vpop.f32.mrb[12].mxu0  ;;  %281 = vadd.xlane.f32.xlu0 %v2294_v42 }
 0x10e   :  { %v241_v46 = vpop.f32.mrb[13].mxu0  ;;  %v2306_v50 = vadd.f32 %v1935_v45, %v62_v20 }
 0x10f   :  { %v2303_v47 = vadd.f32 %v241_v46, %v62_v20  ;;  %v1936_v48 = vpop.f32.mrb[14].mxu0  ;;  %283 = vadd.xlane.f32.xlu1 %v2299_v44 }
 0x110   :  { %v244_v49 = vpop.f32.mrb[15].mxu0  ;;  %v2311_v52 = vadd.f32 %v1936_v48, %v62_v20 }
 0x111   :  { %v2308_v51 = vadd.f32 %v244_v49, %v62_v20  ;;  %285 = vadd.xlane.f32.xlu0 %v2303_v47 }
 0x113   :  { %287 = vadd.xlane.f32.xlu1 %v2308_v51 }
 0x115   :  { %289 = vadd.xlane.f32.xlu0 %v2306_v50 }
 0x117   :  { %291 = vadd.xlane.f32.xlu1 %v2311_v52 }
 0x185   :  { %v266_v55 = vpop.xlane.xlu1 %265 }
 0x186   :  { %v295_v56 = vmul.f32 0.03125, %v266_v55  ;;  %v262_v57 = vpop.xlane.xlu0 %261 }
 0x187   :  { %v293_v58 = vmul.f32 0.03125, %v262_v57 }
 0x188   :  { %v311_v61 = vsub.f32 %v2268_v22, %v295_v56 }
 0x189   :  { %v309_v62 = vsub.f32 %v2270_v24, %v293_v58  ;;  %v268_v63 = vpop.xlane.xlu1 %267 }
 0x18a   :  { %v296_v0 = vmul.f32 0.03125, %v268_v63  ;;  %v264_v1 = vpop.xlane.xlu0 %263  ;;  %v2334_v7 = vmul.f32 %v2322_v60, %v311_v61 }
 0x18b   :  { %v294_v2 = vmul.f32 0.03125, %v264_v1  ;;  %v2327_v3 = vmul.f32 %v2322_v60, %v309_v62  ;;  %v1976_v1 = vld [vmem:[%s3507_s3 + $0x10] ss:$8 sps:$4 sm:$0xff]  }
 0x18c   :  { %v312_v4 = vsub.f32 %v2274_v27, %v296_v0  ;;  %v343_v15 = vmul.f32 %v2334_v7, %v2334_v7 }
 0x18d   :  { %v310_v5 = vsub.f32 %v2276_v28, %v294_v2  ;;  %v341_v6 = vmul.f32 %v2327_v3, %v2327_v3 }
 0x18e   :  { %v270_v8 = vpop.xlane.xlu0 %269  ;;  %v2340_v12 = vmul.f32 %v2322_v60, %v312_v4 }
 0x18f   :  { %v297_v9 = vmul.f32 0.03125, %v270_v8  ;;  %357 = vadd.xlane.f32.xlu0 %v341_v6  ;;  %v2337_v10 = vmul.f32 %v2322_v60, %v310_v5 }
 0x190   :  { %v272_v11 = vpop.xlane.xlu1 %271  ;;  %v344_v25 = vmul.f32 %v2340_v12, %v2340_v12 }
 0x191   :  { %v313_v13 = vsub.f32 %v2280_v31, %v297_v9  ;;  %v298_v14 = vmul.f32 0.03125, %v272_v11  ;;  %v342_v16 = vmul.f32 %v2337_v10, %v2337_v10 }
 0x192   :  { %v274_v20 = vpop.xlane.xlu0 %273 }
 0x193   :  { %v314_v21 = vsub.f32 %v2284_v35, %v298_v14  ;;  %v299_v22 = vmul.f32 0.03125, %v274_v20  ;;  %361 = vadd.xlane.f32.xlu0 %v343_v15  ;;  %359 = vadd.xlane.f32.xlu1 %v342_v16  ;;  %v2349_v23 = vmul.f32 %v2322_v60, %v313_v13  ;;  %v1979_v15 = vld [vmem:[%s3507_s3 + $0x20] ss:$8 sps:$4 sm:$0xff]  }
 0x194   :  { %v276_v24 = vpop.xlane.xlu1 %275 }
 0x195   :  { %v315_v26 = vsub.f32 %v2282_v34, %v299_v22  ;;  %v300_v27 = vmul.f32 0.03125, %v276_v24  ;;  %v345_v28 = vmul.f32 %v2349_v23, %v2349_v23  ;;  %v2357_v29 = vmul.f32 %v2322_v60, %v314_v21 }
 0x196   :  { %v278_v30 = vpop.xlane.xlu0 %277 }
 0x197   :  { %v316_v31 = vsub.f32 %v2287_v36, %v300_v27  ;;  %v301_v32 = vmul.f32 0.03125, %v278_v30  ;;  %363 = vadd.xlane.f32.xlu1 %v344_v25  ;;  %365 = vadd.xlane.f32.xlu0 %v345_v28  ;;  %v2361_v33 = vmul.f32 %v2322_v60, %v315_v26  ;;  %v346_v34 = vmul.f32 %v2357_v29, %v2357_v29  ;;  %v1982_v25 = vld [vmem:[%s3507_s3 + $0x30] ss:$8 sps:$4 sm:$0xff]   ;;  %v1983_v28 = vld [vmem:[%s3507_s3 + $0x44] ss:$8 sps:$4 sm:$0xff]  }
 0x198   :  { %v280_v35 = vpop.xlane.xlu1 %279  ;;  %v1985_v30 = vld [vmem:[%s3507_s3 + $0x40] ss:$8 sps:$4 sm:$0xff]  }
 0x199   :  { %v317_v37 = vsub.f32 %v2291_v39, %v301_v32  ;;  %v302_v38 = vmul.f32 0.03125, %v280_v35  ;;  %v347_v40 = vmul.f32 %v2361_v33, %v2361_v33  ;;  %v2369_v41 = vmul.f32 %v2322_v60, %v316_v31  ;;  %v1973_v39 = vld [vmem:[%s3507_s3] ss:$8 sps:$4 sm:$0xff]   ;;  %v1986_v32 = vld [vmem:[%s3507_s3 + $0x54] ss:$8 sps:$4 sm:$0xff]  }
 0x19a   :  { %v282_v36 = vpop.xlane.xlu0 %281  ;;  %670 = vmatpush1.bf16.msra.mxu1 %v1973_v39  ;;  %v1988_v35 = vld [vmem:[%s3507_s3 + $0x50] ss:$8 sps:$4 sm:$0xff]  }
 0x19b   :  { %v318_v45 = vsub.f32 %v2296_v43, %v302_v38  ;;  %v303_v46 = vmul.f32 0.03125, %v282_v36  ;;  %367 = vadd.xlane.f32.xlu1 %v346_v34  ;;  %369 = vadd.xlane.f32.xlu0 %v347_v40  ;;  %v2373_v48 = vmul.f32 %v2322_v60, %v317_v37  ;;  %v348_v53 = vmul.f32 %v2369_v41, %v2369_v41  ;;  %v1989_v34 = vld [vmem:[%s3507_s3 + $0x64] ss:$8 sps:$4 sm:$0xff]   ;;  %v1991_v37 = vld [vmem:[%s3507_s3 + $0x60] ss:$8 sps:$4 sm:$0xff]  }
 0x19c   :  { %v284_v49 = vpop.xlane.xlu1 %283  ;;  %671 = vmatprep.subr.bf16.mxu1 %v1974_v59  ;;  %v1992_v38 = vld [vmem:[%s3507_s3 + $0x74] ss:$8 sps:$4 sm:$0xff]   ;;  %v1994_v40 = vld [vmem:[%s3507_s3 + $0x70] ss:$8 sps:$4 sm:$0xff]   ;;  %v2173_v36 = vmov 0  }
 0x19d   :  { %v319_v55 = vsub.f32 %v2294_v42, %v303_v46  ;;  %v304_v56 = vmul.f32 0.03125, %v284_v49  ;;  %v349_v43 = vmul.f32 %v2373_v48, %v2373_v48  ;;  %v2384_v57 = vmul.f32 %v2322_v60, %v318_v45  ;;  %701 = vmatprep.mubr.bf16.mxu1 %v2173_v36 }
 0x19e   :  { %v286_v58 = vpop.xlane.xlu0 %285  ;;  %672 = vmatpush1.bf16.msra.mxu1 %v1976_v1 }
 0x19f   :  { %v320_v61 = vsub.f32 %v2299_v44, %v304_v56  ;;  %v305_v62 = vmul.f32 0.03125, %v286_v58  ;;  %371 = vadd.xlane.f32.xlu1 %v348_v53  ;;  %373 = vadd.xlane.f32.xlu0 %v349_v43  ;;  %v2391_v42 = vmul.f32 %v2322_v60, %v319_v55  ;;  %v350_v0 = vmul.f32 %v2384_v57, %v2384_v57 }
 0x1a0   :  { %v288_v63 = vpop.xlane.xlu1 %287 }
 0x1a1   :  { %v321_v2 = vsub.f32 %v2303_v47, %v305_v62  ;;  %v306_v4 = vmul.f32 0.03125, %v288_v63  ;;  %v351_v44 = vmul.f32 %v2391_v42, %v2391_v42  ;;  %v2402_v5 = vmul.f32 %v2322_v60, %v320_v61  ;;  %v1977_v47 = vld [vmem:[%s3507_s3 + $0x24] ss:$8 sps:$4 sm:$0xff]  }
 0x1a2   :  { %v290_v6 = vpop.xlane.xlu0 %289  ;;  %673 = vmatprep.subr.bf16.mxu1 %v1977_v47 }
 0x1a3   :  { %v322_v8 = vsub.f32 %v2308_v51, %v306_v4  ;;  %v307_v9 = vmul.f32 0.03125, %v290_v6  ;;  %375 = vadd.xlane.f32.xlu1 %v350_v0  ;;  %377 = vadd.xlane.f32.xlu0 %v351_v44  ;;  %v2406_v11 = vmul.f32 %v2322_v60, %v321_v2  ;;  %v352_v14 = vmul.f32 %v2402_v5, %v2402_v5 }
 0x1a4   :  { %v292_v13 = vpop.xlane.xlu1 %291  ;;  %674 = vmatpush1.bf16.msra.mxu1 %v1979_v15  ;;  %v455_v0 = vsub.s32 4, %v2257_v17  ;;  %v475_v6 = vsub.s32 5, %v2257_v17 }
 0x1a5   :  { %v323_v51 = vsub.f32 %v2306_v50, %v307_v9  ;;  %v308_v16 = vmul.f32 0.03125, %v292_v13  ;;  %v353_v20 = vmul.f32 %v2406_v11, %v2406_v11  ;;  %v2420_v21 = vmul.f32 %v2322_v60, %v322_v8  ;;  %v1980_v50 = vld [vmem:[%s3507_s3 + $0x34] ss:$8 sps:$4 sm:$0xff]  }
 0x1a6   :  { %675 = vmatprep.subr.bf16.mxu1 %v1980_v50  ;;  %v2469_v9 = vrot.slane %v2263_v19, %v455_v0 }
 0x1a7   :  { %v324_v22 = vsub.f32 %v2311_v52, %v308_v16  ;;  %379 = vadd.xlane.f32.xlu1 %v352_v14  ;;  %381 = vadd.xlane.f32.xlu0 %v353_v20  ;;  %v2424_v24 = vmul.f32 %v2322_v60, %v323_v51  ;;  %v354_v26 = vmul.f32 %v2420_v21, %v2420_v21 }
 0x1a8   :  { %676 = vmatpush1.bf16.msra.mxu1 %v1982_v25  ;;  %v2473_v16 = vrot.slane %v2263_v19, %v475_v6  ;;  %v1818_v6 = vld [vmem:[%s3508_s2 + $0x8] sm:$0xff]  }
 0x1a9   :  { %v355_v27 = vmul.f32 %v2424_v24, %v2424_v24  ;;  %v2437_v52 = vmul.f32 %v2322_v60, %v324_v22  ;;  %677 = vmatprep.subr.bf16.mxu1 %v1983_v28 }
 0x1ab   :  { %383 = vadd.xlane.f32.xlu1 %v354_v26  ;;  %385 = vadd.xlane.f32.xlu0 %v355_v27  ;;  %v356_v31 = vmul.f32 %v2437_v52, %v2437_v52  ;;  %v1787_v27 = vld [vmem:[%s3508_s2] sm:$0xff]  }
 0x1ac   :  { %678 = vmatpush1.bf16.msra.mxu1 %v1985_v30 }
 0x1ad   :  { %679 = vmatprep.subr.bf16.mxu1 %v1986_v32 }
 0x1af   :  { %387 = vadd.xlane.f32.xlu1 %v356_v31 }
 0x1b0   :  { %680 = vmatpush1.bf16.msra.mxu1 %v1988_v35 }
 0x1b1   :  { %681 = vmatprep.subr.bf16.mxu1 %v1989_v34 }
 0x1b4   :  { %682 = vmatpush1.bf16.msra.mxu1 %v1991_v37 }
 0x1b5   :  { %683 = vmatprep.subr.bf16.mxu1 %v1992_v38  ;;  %v1788_v38 = vunpack.c.l.bf16 %v1787_v27 }
 0x1b8   :  { %684 = vmatpush1.bf16.msra.mxu1 %v1994_v40 }
 0x21c   :  { %v358_v45 = vpop.xlane.xlu0 %357 }
 0x21d   :  { %v389_v46 = vmul.f32 0.03125, %v358_v45 }
 0x21f   :  { %v405_v39 = vadd.f32 1e-05, %v389_v46 }
 0x220   :  { %v360_v49 = vpop.xlane.xlu1 %359  ;;  %v362_v53 = vpop.xlane.xlu0 %361 }
 0x221   :  { %2011 = vrsqrt.f32 %v405_v39  ;;  %v390_v55 = vmul.f32 0.03125, %v360_v49  ;;  %v391_v56 = vmul.f32 0.03125, %v362_v53  ;;  %v1789_v53 = vunpack.c.h.bf16 %v1787_v27 }
 0x223   :  { %v406_v43 = vadd.f32 1e-05, %v390_v55  ;;  %v407_v58 = vadd.f32 1e-05, %v391_v56 }
 0x224   :  { %v364_v59 = vpop.xlane.xlu1 %363  ;;  %v366_v61 = vpop.xlane.xlu0 %365 }
 0x225   :  { %2013 = vrsqrt.f32 %v406_v43  ;;  %v392_v62 = vmul.f32 0.03125, %v364_v59  ;;  %v393_v63 = vmul.f32 0.03125, %v366_v61 }
 0x226   :  { %2015 = vrsqrt.f32 %v407_v58 }
 0x227   :  { %v408_v1 = vadd.f32 1e-05, %v392_v62  ;;  %v409_v2 = vadd.f32 1e-05, %v393_v63 }
 0x228   :  { %v368_v4 = vpop.xlane.xlu1 %367  ;;  %v370_v44 = vpop.xlane.xlu0 %369 }
 0x229   :  { %2017 = vrsqrt.f32 %v408_v1  ;;  %v394_v8 = vmul.f32 0.03125, %v368_v4  ;;  %v395_v14 = vmul.f32 0.03125, %v370_v44 }
 0x22a   :  { %2019 = vrsqrt.f32 %v409_v2 }
 0x22b   :  { %v2012_v47 = vpop.eup %2011  ;;  %v410_v13 = vadd.f32 1e-05, %v394_v8  ;;  %v411_v25 = vadd.f32 1e-05, %v395_v14 }
 0x22c   :  { %v372_v15 = vpop.xlane.xlu1 %371  ;;  %v437_v51 = vmul.f32 %v2012_v47, %v2327_v3  ;;  %v374_v30 = vpop.xlane.xlu0 %373 }
 0x22d   :  { %2021 = vrsqrt.f32 %v410_v13  ;;  %v396_v20 = vmul.f32 0.03125, %v372_v15  ;;  %v397_v45 = vmul.f32 0.03125, %v374_v30  ;;  %v1793_v13 = vunpack.c.h.bf16 %v1818_v6 }
 0x22e   :  { %v457_v22 = vmul.f32 %v2469_v9, %v437_v51 }
 0x22f   :  { %v2014_v50 = vpop.eup %2013  ;;  %v412_v26 = vadd.f32 1e-05, %v396_v20  ;;  %v413_v61 = vadd.f32 1e-05, %v397_v45 }
 0x230   :  { %v2016_v28 = vpop.eup %2015  ;;  %v376_v31 = vpop.xlane.xlu1 %375  ;;  %v438_v32 = vmul.f32 %v2014_v50, %v2337_v10  ;;  %v477_v3 = vadd.f32 %v2473_v16, %v457_v22  ;;  %v1792_v22 = vunpack.c.l.bf16 %v1818_v6 }
 0x231   :  { %2023 = vrsqrt.f32 %v412_v26  ;;  %v398_v35 = vmul.f32 0.03125, %v376_v31  ;;  %v439_v34 = vmul.f32 %v2016_v28, %v2334_v7  ;;  %v378_v0 = vpop.xlane.xlu0 %377 }
 0x232   :  { %v458_v37 = vmul.f32 %v2469_v9, %v438_v32  ;;  %2025 = vrsqrt.f32 %v411_v25  ;;  %v493_v46 = vmax.f32 %v477_v3, 0.0  ;;  %v399_v51 = vmul.f32 0.03125, %v378_v0 }
 0x233   :  { %v2018_v40 = vpop.eup %2017  ;;  %v459_v39 = vmul.f32 %v2469_v9, %v439_v34  ;;  %v414_v56 = vadd.f32 1e-05, %v398_v35 }
 0x234   :  { %v478_v49 = vadd.f32 %v2473_v16, %v458_v37  ;;  %v440_v10 = vmul.f32 %v2018_v40, %v2340_v12  ;;  %v2020_v55 = vpop.eup %2019  ;;  %v380_v43 = vpop.xlane.xlu1 %379  ;;  %v541_v62 = vadd.f32 %v1788_v38, %v493_v46  ;;  %v415_v30 = vadd.f32 1e-05, %v399_v51  ;;  %v1819_v37 = vld [vmem:[%s3508_s2 + $0x10] sm:$0xff]  }
 0x235   :  { %v479_v63 = vadd.f32 %v2473_v16, %v459_v39  ;;  %v441_v4 = vmul.f32 %v2020_v55, %v2349_v23  ;;  %2027 = vrsqrt.f32 %v414_v56  ;;  %v400_v12 = vmul.f32 0.03125, %v380_v43  ;;  %v382_v31 = vpop.xlane.xlu0 %381 }
 0x236   :  { %v494_v58 = vmax.f32 %v478_v49, 0.0  ;;  %v460_v7 = vmul.f32 %v2469_v9, %v440_v10  ;;  %2029 = vrsqrt.f32 %v413_v61  ;;  %v1797_v45 = vunpack.c.h.bf16 %v1819_v37 }
 0x237   :  { %v2022_v59 = vpop.eup %2021  ;;  %v495_v20 = vmax.f32 %v479_v63, 0.0  ;;  %v461_v23 = vmul.f32 %v2469_v9, %v441_v4  ;;  %v416_v50 = vadd.f32 1e-05, %v400_v12 }
 0x238   :  { %v542_v1 = vadd.f32 %v1789_v53, %v494_v58  ;;  %v480_v2 = vadd.f32 %v2473_v16, %v460_v7  ;;  %v442_v44 = vmul.f32 %v2022_v59, %v2357_v29  ;;  %v384_v25 = vpop.xlane.xlu1 %383  ;;  %v1796_v53 = vunpack.c.l.bf16 %v1819_v37 }
 0x239   :  { %v543_v32 = vadd.f32 %v1792_v22, %v495_v20  ;;  %v481_v3 = vadd.f32 %v2473_v16, %v461_v23  ;;  %2031 = vrsqrt.f32 %v416_v50  ;;  %v402_v34 = vmul.f32 0.03125, %v384_v25  ;;  %v386_v61 = vpop.xlane.xlu0 %385 }
 0x23a   :  { %v557_v8 = vpack.c.bf16 %v542_v1, %v541_v62  ;;  %v496_v47 = vmax.f32 %v480_v2, 0.0  ;;  %v462_v14 = vmul.f32 %v2469_v9, %v442_v44  ;;  %2033 = vrsqrt.f32 %v415_v30  ;;  %v1820_v2 = vld [vmem:[%s3508_s2 + $0x18] sm:$0xff]  }
 0x23b   :  { %v2024_v15 = vpop.eup %2023  ;;  %v497_v49 = vmax.f32 %v481_v3, 0.0  ;;  %v418_v55 = vadd.f32 1e-05, %v402_v34  ;;  %v1801_v12 = vunpack.c.h.bf16 %v1820_v2 }
 0x23c   :  { %702 = vmatmul.mubr.bf16.vlgmr.msra.gmra.mrb[0].mxu1 %v557_v8  ;;  %v2026_v29 = vpop.eup %2025  ;;  %v544_v26 = vadd.f32 %v1793_v13, %v496_v47  ;;  %v482_v27 = vadd.f32 %v2473_v16, %v462_v14  ;;  %v444_v28 = vmul.f32 %v2024_v15, %v2369_v41  ;;  %v401_v41 = vmul.f32 0.03125, %v382_v31  ;;  %v388_v56 = vpop.xlane.xlu1 %387 }
 0x23d   :  { %711 = vmatprep.mubr.bf16.mxu1 %v2173_v36  ;;  %v443_v35 = vmul.f32 %v2026_v29, %v2361_v33  ;;  %v545_v62 = vadd.f32 %v1796_v53, %v497_v49  ;;  %2035 = vrsqrt.f32 %v418_v55  ;;  %v404_v1 = vmul.f32 0.03125, %v388_v56 }
 0x23e   :  { %v558_v38 = vpack.c.bf16 %v544_v26, %v543_v32  ;;  %v498_v40 = vmax.f32 %v482_v27, 0.0  ;;  %v464_v46 = vmul.f32 %v2469_v9, %v444_v28  ;;  %v417_v59 = vadd.f32 1e-05, %v401_v41  ;;  %v1821_v26 = vld [vmem:[%s3508_s2 + $0x20] sm:$0xff]  }
 0x23f   :  { %v2028_v39 = vpop.eup %2027  ;;  %v463_v10 = vmul.f32 %v2469_v9, %v443_v35  ;;  %v1800_v13 = vunpack.c.l.bf16 %v1820_v2  ;;  %v420_v15 = vadd.f32 1e-05, %v404_v1  ;;  %v1805_v30 = vunpack.c.h.bf16 %v1821_v26 }
 0x240   :  { %v2030_v33 = vpop.eup %2029  ;;  %v546_v43 = vadd.f32 %v1797_v45, %v498_v40  ;;  %v484_v58 = vadd.f32 %v2473_v16, %v464_v46  ;;  %v446_v7 = vmul.f32 %v2028_v39, %v2384_v57  ;;  %2037 = vrsqrt.f32 %v417_v59  ;;  %v1822_v39 = vld [vmem:[%s3508_s2 + $0x28] sm:$0xff]  }
 0x241   :  { %v483_v63 = vadd.f32 %v2473_v16, %v463_v10  ;;  %v445_v0 = vmul.f32 %v2030_v33, %v2373_v48  ;;  %v403_v57 = vmul.f32 0.03125, %v386_v61  ;;  %2039 = vrsqrt.f32 %v420_v15 }
 0x242   :  { %v559_v4 = vpack.c.bf16 %v546_v43, %v545_v62  ;;  %v500_v44 = vmax.f32 %v484_v58, 0.0  ;;  %v466_v6 = vmul.f32 %v2469_v9, %v446_v7  ;;  %v1804_v3 = vunpack.c.l.bf16 %v1821_v26 }
 0x243   :  { %v2032_v8 = vpop.eup %2031  ;;  %v499_v47 = vmax.f32 %v483_v63, 0.0  ;;  %v465_v14 = vmul.f32 %v2469_v9, %v445_v0  ;;  %v419_v23 = vadd.f32 1e-05, %v403_v57  ;;  %v1809_v53 = vunpack.c.h.bf16 %v1822_v39  ;;  %v1823_v63 = vld [vmem:[%s3508_s2 + $0x30] sm:$0xff]  }
 0x244   :  { %712 = vmatmul.mubr.bf16.gmra.mrb[4].mxu1 %v558_v38  ;;  %v2034_v48 = vpop.eup %2033  ;;  %v548_v51 = vadd.f32 %v1801_v12, %v500_v44  ;;  %v486_v20 = vadd.f32 %v2473_v16, %v466_v6  ;;  %v448_v22 = vmul.f32 %v2032_v8, %v2402_v5  ;;  %v1808_v56 = vunpack.c.l.bf16 %v1822_v39 }
 0x245   :  { %721 = vmatprep.mubr.bf16.mxu1 %v2173_v36  ;;  %v547_v29 = vadd.f32 %v1800_v13, %v499_v47  ;;  %v485_v50 = vadd.f32 %v2473_v16, %v465_v14  ;;  %v447_v25 = vmul.f32 %v2034_v48, %v2391_v42  ;;  %2041 = vrsqrt.f32 %v419_v23  ;;  %v1824_v47 = vld [vmem:[%s3508_s2 + $0x38] sm:$0xff]  }
 0x246   :  { %v502_v28 = vmax.f32 %v486_v20, 0.0  ;;  %v468_v31 = vmul.f32 %v2469_v9, %v448_v22  ;;  %v1813_v2 = vunpack.c.h.bf16 %v1823_v63  ;;  %v1812_v12 = vunpack.c.l.bf16 %v1823_v63 }
 0x247   :  { %v560_v27 = vpack.c.bf16 %v548_v51, %v547_v29  ;;  %v2036_v32 = vpop.eup %2035  ;;  %v501_v5 = vmax.f32 %v485_v50, 0.0  ;;  %v467_v35 = vmul.f32 %v2469_v9, %v447_v25  ;;  %v1817_v48 = vunpack.c.h.bf16 %v1824_v47 }
 0x248   :  { %v550_v42 = vadd.f32 %v1805_v30, %v502_v28  ;;  %v488_v37 = vadd.f32 %v2473_v16, %v468_v31  ;;  %v450_v38 = vmul.f32 %v2036_v32, %v2420_v21  ;;  %v1816_v51 = vunpack.c.l.bf16 %v1824_v47 }
 0x249   :  { %v549_v40 = vadd.f32 %v1804_v3, %v501_v5  ;;  %v487_v45 = vadd.f32 %v2473_v16, %v467_v35  ;;  %v583_v23 = vsub.s32 6, %v2257_v17 }
 0x24a   :  { %v2038_v34 = vpop.eup %2037  ;;  %v504_v49 = vmax.f32 %v488_v37, 0.0  ;;  %v470_v10 = vmul.f32 %v2469_v9, %v450_v38 }
 0x24b   :  { %v449_v46 = vmul.f32 %v2038_v34, %v2406_v11  ;;  %v561_v41 = vpack.c.bf16 %v550_v42, %v549_v40  ;;  %v2040_v33 = vpop.eup %2039  ;;  %v503_v55 = vmax.f32 %v487_v45, 0.0  ;;  %v2558_v29 = vrot.slane %v2263_v19, %v583_v23 }
 0x24c   :  { %722 = vmatmul.mubr.bf16.gmra.mrb[8].mxu1 %v559_v4  ;;  %v552_v58 = vadd.f32 %v1809_v53, %v504_v49  ;;  %v490_v11 = vadd.f32 %v2473_v16, %v470_v10  ;;  %v452_v7 = vmul.f32 %v2040_v33, %v2437_v52 }
 0x24d   :  { %731 = vmatprep.mubr.bf16.mxu1 %v2173_v36  ;;  %v469_v21 = vmul.f32 %v2469_v9, %v449_v46  ;;  %v551_v59 = vadd.f32 %v1808_v56, %v503_v55 }
 0x24e   :  { %v506_v1 = vmax.f32 %v490_v11, 0.0  ;;  %v472_v4 = vmul.f32 %v2469_v9, %v452_v7 }
 0x24f   :  { %v2042_v43 = vpop.eup %2041  ;;  %v489_v61 = vadd.f32 %v2473_v16, %v469_v21  ;;  %v562_v0 = vpack.c.bf16 %v552_v58, %v551_v59 }
 0x250   :  { %v451_v62 = vmul.f32 %v2042_v43, %v2424_v24  ;;  %v554_v52 = vadd.f32 %v1813_v2, %v506_v1  ;;  %v492_v8 = vadd.f32 %v2473_v16, %v472_v4 }
 0x251   :  { %v505_v44 = vmax.f32 %v489_v61, 0.0 }
 0x252   :  { %v471_v6 = vmul.f32 %v2469_v9, %v451_v62  ;;  %v508_v14 = vmax.f32 %v492_v8, 0.0 }
 0x253   :  { %v553_v24 = vadd.f32 %v1812_v12, %v505_v44 }
 0x254   :  { %732 = vmatmul.mubr.bf16.gmra.mrb[12].mxu1 %v560_v27  ;;  %v491_v57 = vadd.f32 %v2473_v16, %v471_v6  ;;  %v556_v9 = vadd.f32 %v1817_v48, %v508_v14  ;;  %v25_v16 = vld [vmem:[%s3506_s5 + $0x8] sm:$0xff] }
 0x255   :  { %741 = vmatprep.mubr.bf16.mxu1 %v2173_v36  ;;  %v563_v13 = vpack.c.bf16 %v554_v52, %v553_v24  ;;  %v2560_v50 = vrot.slane %v25_v16, %v583_v23 }
 0x256   :  { %v507_v15 = vmax.f32 %v491_v57, 0.0 }
 0x258   :  { %v555_v20 = vadd.f32 %v1816_v51, %v507_v15 }
 0x25a   :  { %v564_v22 = vpack.c.bf16 %v556_v9, %v555_v20 }
 0x25c   :  { %742 = vmatmul.mubr.bf16.gmra.mrb[16].mxu1 %v561_v41 }
 0x25d   :  { %751 = vmatprep.mubr.bf16.mxu1 %v2173_v36 }
 0x264   :  { %752 = vmatmul.mubr.bf16.gmra.mrb[20].mxu1 %v562_v0 }
 0x265   :  { %761 = vmatprep.mubr.bf16.mxu1 %v2173_v36 }
 0x26c   :  { %762 = vmatmul.mubr.bf16.gmra.mrb[24].mxu1 %v563_v13 }
 0x26d   :  { %771 = vmatprep.mubr.bf16.mxu1 %v2173_v36 }
 0x274   :  { %772 = vmatmul.mubr.bf16.gmra.mrb[28].mxu1 %v564_v22 }
 0x30f   :  { %v703_v25 = vpop.f32.mrb[0].mxu1 }
 0x310   :  { %v2563_v26 = vadd.f32 %v703_v25, %v2558_v29  ;;  %v705_v36 = vpop.f32.mrb[1].mxu1 }
 0x311   :  { %v707_v27 = vpop.f32.mrb[2].mxu1  ;;  %v2567_v30 = vadd.f32 %v705_v36, %v2560_v50 }
 0x312   :  { %v782_v28 = vmax.f32 %v2563_v26, 0.0  ;;  %v2570_v31 = vadd.f32 %v707_v27, %v2558_v29  ;;  %v709_v32 = vpop.f32.mrb[3].mxu1 }
 0x313   :  { %v2574_v5 = vadd.f32 %v709_v32, %v2560_v50  ;;  %v783_v3 = vmax.f32 %v2567_v30, 0.0 }
 0x314   :  { %v784_v19 = vmax.f32 %v2570_v31, 0.0  ;;  %814 = vadd.xlane.f32.xlu0 %v782_v28 }
 0x315   :  { %v785_v34 = vmax.f32 %v2574_v5, 0.0 }
 0x316   :  { %816 = vadd.xlane.f32.xlu1 %v784_v19 }
 0x317   :  { %v713_v35 = vpop.f32.mrb[4].mxu1 }
 0x318   :  { %v2583_v42 = vadd.f32 %v713_v35, %v2558_v29  ;;  %1046 = vadd.xlane.f32.xlu0 %v783_v3  ;;  %v715_v37 = vpop.f32.mrb[5].mxu1 }
 0x319   :  { %v717_v38 = vpop.f32.mrb[6].mxu1  ;;  %v2589_v45 = vadd.f32 %v715_v37, %v2560_v50 }
 0x31a   :  { %v786_v40 = vmax.f32 %v2583_v42, 0.0  ;;  %v2592_v46 = vadd.f32 %v717_v38, %v2558_v29  ;;  %1048 = vadd.xlane.f32.xlu1 %v785_v34  ;;  %v719_v39 = vpop.f32.mrb[7].mxu1 }
 0x31b   :  { %v2598_v49 = vadd.f32 %v719_v39, %v2560_v50  ;;  %v787_v53 = vmax.f32 %v2589_v45, 0.0 }
 0x31c   :  { %v788_v41 = vmax.f32 %v2592_v46, 0.0  ;;  %818 = vadd.xlane.f32.xlu0 %v786_v40 }
 0x31d   :  { %v789_v33 = vmax.f32 %v2598_v49, 0.0 }
 0x31e   :  { %820 = vadd.xlane.f32.xlu1 %v788_v41 }
 0x31f   :  { %v723_v10 = vpop.f32.mrb[8].mxu1 }
 0x320   :  { %v2607_v55 = vadd.f32 %v723_v10, %v2558_v29  ;;  %1050 = vadd.xlane.f32.xlu0 %v787_v53  ;;  %v725_v56 = vpop.f32.mrb[9].mxu1 }
 0x321   :  { %v727_v21 = vpop.f32.mrb[10].mxu1  ;;  %v2613_v58 = vadd.f32 %v725_v56, %v2560_v50 }
 0x322   :  { %v790_v43 = vmax.f32 %v2607_v55, 0.0  ;;  %v2616_v11 = vadd.f32 %v727_v21, %v2558_v29  ;;  %1052 = vadd.xlane.f32.xlu1 %v789_v33  ;;  %v729_v7 = vpop.f32.mrb[11].mxu1 }
 0x323   :  { %v2622_v61 = vadd.f32 %v729_v7, %v2560_v50  ;;  %v791_v62 = vmax.f32 %v2613_v58, 0.0 }
 0x324   :  { %v792_v59 = vmax.f32 %v2616_v11, 0.0  ;;  %822 = vadd.xlane.f32.xlu0 %v790_v43 }
 0x325   :  { %v793_v0 = vmax.f32 %v2622_v61, 0.0 }
 0x326   :  { %824 = vadd.xlane.f32.xlu1 %v792_v59 }
 0x327   :  { %v733_v63 = vpop.f32.mrb[12].mxu1 }
 0x328   :  { %v2631_v1 = vadd.f32 %v733_v63, %v2558_v29  ;;  %1054 = vadd.xlane.f32.xlu0 %v791_v62  ;;  %v735_v2 = vpop.f32.mrb[13].mxu1 }
 0x329   :  { %v737_v4 = vpop.f32.mrb[14].mxu1  ;;  %v2637_v12 = vadd.f32 %v735_v2, %v2560_v50 }
 0x32a   :  { %v794_v44 = vmax.f32 %v2631_v1, 0.0  ;;  %v2640_v6 = vadd.f32 %v737_v4, %v2558_v29  ;;  %1056 = vadd.xlane.f32.xlu1 %v793_v0  ;;  %v739_v52 = vpop.f32.mrb[15].mxu1 }
 0x32b   :  { %v2646_v24 = vadd.f32 %v739_v52, %v2560_v50  ;;  %v795_v57 = vmax.f32 %v2637_v12, 0.0 }
 0x32c   :  { %v796_v8 = vmax.f32 %v2640_v6, 0.0  ;;  %826 = vadd.xlane.f32.xlu0 %v794_v44 }
 0x32d   :  { %v797_v13 = vmax.f32 %v2646_v24, 0.0 }
 0x32e   :  { %828 = vadd.xlane.f32.xlu1 %v796_v8 }
 0x32f   :  { %v743_v47 = vpop.f32.mrb[16].mxu1 }
 0x330   :  { %v2655_v14 = vadd.f32 %v743_v47, %v2558_v29  ;;  %1058 = vadd.xlane.f32.xlu0 %v795_v57  ;;  %v745_v48 = vpop.f32.mrb[17].mxu1 }
 0x331   :  { %v747_v15 = vpop.f32.mrb[18].mxu1  ;;  %v2661_v9 = vadd.f32 %v745_v48, %v2560_v50 }
 0x332   :  { %v798_v51 = vmax.f32 %v2655_v14, 0.0  ;;  %v2664_v20 = vadd.f32 %v747_v15, %v2558_v29  ;;  %1060 = vadd.xlane.f32.xlu1 %v797_v13  ;;  %v749_v22 = vpop.f32.mrb[19].mxu1 }
 0x333   :  { %v2670_v16 = vadd.f32 %v749_v22, %v2560_v50  ;;  %v3525_v25 = vmax.f32 %v2661_v9, 0.0 }
 0x334   :  { %v3526_v23 = vmax.f32 %v2664_v20, 0.0  ;;  %830 = vadd.xlane.f32.xlu0 %v798_v51 }
 0x335   :  { %v3524_v27 = vmax.f32 %v2670_v16, 0.0 }
 0x336   :  { %832 = vadd.xlane.f32.xlu1 %v3526_v23 }
 0x337   :  { %v753_v36 = vpop.f32.mrb[20].mxu1 }
 0x338   :  { %1062 = vadd.xlane.f32.xlu0 %v3525_v25  ;;  %v755_v32 = vpop.f32.mrb[21].mxu1 }
 0x339   :  { %v2681_v35 = vadd.f32 %v755_v32, %v2560_v50  ;;  %v757_v37 = vpop.f32.mrb[22].mxu1  ;;  %v2711_v32 = vadd.f32 %v753_v36, %v2558_v29 }
 0x33a   :  { %1064 = vadd.xlane.f32.xlu1 %v3524_v27  ;;  %v759_v38 = vpop.f32.mrb[23].mxu1 }
 0x33b   :  { %v3515_v39 = vmax.f32 %v2681_v35, 0.0  ;;  %v2687_v10 = vadd.f32 %v759_v38, %v2560_v50 }
 0x33d   :  { %v3513_v56 = vmax.f32 %v2687_v10, 0.0  ;;  %1066 = vadd.xlane.f32.xlu0 %v3515_v39 }
 0x33f   :  { %1068 = vadd.xlane.f32.xlu1 %v3513_v56  ;;  %v763_v21 = vpop.f32.mrb[24].mxu1 }
 0x340   :  { %v2695_v7 = vadd.f32 %v763_v21, %v2558_v29  ;;  %v765_v63 = vpop.f32.mrb[25].mxu1 }
 0x341   :  { %v767_v2 = vpop.f32.mrb[26].mxu1  ;;  %v2699_v52 = vadd.f32 %v765_v63, %v2560_v50  ;;  %v2717_v63 = vadd.f32 %v757_v37, %v2558_v29 }
 0x342   :  { %v3512_v4 = vmax.f32 %v2695_v7, 0.0  ;;  %v2702_v47 = vadd.f32 %v767_v2, %v2558_v29  ;;  %v769_v48 = vpop.f32.mrb[27].mxu1 }
 0x343   :  { %v2706_v22 = vadd.f32 %v769_v48, %v2560_v50  ;;  %v3516_v38 = vmax.f32 %v2699_v52, 0.0 }
 0x344   :  { %v3514_v15 = vmax.f32 %v2702_v47, 0.0  ;;  %838 = vadd.xlane.f32.xlu0 %v3512_v4  ;;  %v3521_v4 = vmax.f32 %v2711_v32, 0.0 }
 0x345   :  { %v3523_v2 = vmax.f32 %v2706_v22, 0.0 }
 0x346   :  { %840 = vadd.xlane.f32.xlu1 %v3514_v15 }
 0x347   :  { %v773_v21 = vpop.f32.mrb[28].mxu1 }
 0x348   :  { %v2721_v48 = vadd.f32 %v773_v21, %v2558_v29  ;;  %1070 = vadd.xlane.f32.xlu0 %v3516_v38  ;;  %v775_v18 = vpop.f32.mrb[29].mxu1  ;;  %v3519_v21 = vmax.f32 %v2717_v63, 0.0 }
 0x349   :  { %v777_v36 = vpop.f32.mrb[30].mxu1  ;;  %v2727_v56 = vadd.f32 %v775_v18, %v2560_v50 }
 0x34a   :  { %v2730_v15 = vadd.f32 %v777_v36, %v2558_v29  ;;  %1072 = vadd.xlane.f32.xlu1 %v3523_v2  ;;  %v779_v37 = vpop.f32.mrb[31].mxu1  ;;  %v3520_v29 = vmax.f32 %v2721_v48, 0.0  ;;  %v1995_v36 = vld [vmem:[%s3509_s4 + $0x40] sm:$0xff]  }
 0x34b   :  { %v2736_v39 = vadd.f32 %v779_v37, %v2560_v50  ;;  %v3518_v38 = vmax.f32 %v2727_v56, 0.0  ;;  %v1996_v37 = vld [vmem:[%s3509_s4] sm:$0xff]   ;;  %1841 = vmatprep.subr.bf16.mxu0 %v1995_v36  ;;  %1937 = vmatprep.subr.bf16.mxu1 %v1995_v36 }
 0x34c   :  { %834 = vadd.xlane.f32.xlu0 %v3521_v4  ;;  %v3522_v50 = vmax.f32 %v2730_v15, 0.0  ;;  %1842 = vmatpush3.bf16.msra.mxu0 %v1996_v37 }
 0x34d   :  { %v3517_v18 = vmax.f32 %v2736_v39, 0.0  ;;  %1945 = vmatpush3.bf16.msra.mxu1 %v1996_v37 }
 0x34e   :  { %836 = vadd.xlane.f32.xlu1 %v3519_v21 }
 0x350   :  { %1074 = vadd.xlane.f32.xlu0 %v3518_v38 }
 0x352   :  { %1076 = vadd.xlane.f32.xlu1 %v3517_v18 }
 0x354   :  { %842 = vadd.xlane.f32.xlu0 %v3520_v29 }
 0x356   :  { %844 = vadd.xlane.f32.xlu1 %v3522_v50 }
 0x3a1   :  { %v815_v18 = vpop.xlane.xlu0 %814 }
 0x3a2   :  { %v846_v38 = vmul.f32 0.03125, %v815_v18 }
 0x3a3   :  { %v817_v21 = vpop.xlane.xlu1 %816 }
 0x3a4   :  { %v862_v29 = vsub.f32 %v782_v28, %v846_v38  ;;  %v847_v4 = vmul.f32 0.03125, %v817_v21 }
 0x3a5   :  { %v1047_v50 = vpop.xlane.xlu0 %1046 }
 0x3a6   :  { %v863_v2 = vsub.f32 %v784_v19, %v847_v4  ;;  %v1078_v27 = vmul.f32 0.03125, %v1047_v50  ;;  %v2765_v25 = vmul.f32 %v2322_v60, %v862_v29 }
 0x3a7   :  { %v1049_v23 = vpop.xlane.xlu1 %1048 }
 0x3a8   :  { %v1094_v36 = vsub.f32 %v783_v3, %v1078_v27  ;;  %v1079_v37 = vmul.f32 0.03125, %v1049_v23  ;;  %v894_v18 = vmul.f32 %v2765_v25, %v2765_v25  ;;  %v2772_v26 = vmul.f32 %v2322_v60, %v863_v2 }
 0x3a9   :  { %v819_v28 = vpop.xlane.xlu0 %818 }
 0x3aa   :  { %v1095_v31 = vsub.f32 %v785_v34, %v1079_v37  ;;  %v848_v19 = vmul.f32 0.03125, %v819_v28  ;;  %910 = vadd.xlane.f32.xlu0 %v894_v18  ;;  %v895_v4 = vmul.f32 %v2772_v26, %v2772_v26  ;;  %v2779_v38 = vmul.f32 %v2322_v60, %v1094_v36 }
 0x3ab   :  { %v821_v30 = vpop.xlane.xlu1 %820 }
 0x3ac   :  { %v864_v3 = vsub.f32 %v786_v40, %v848_v19  ;;  %v849_v23 = vmul.f32 0.03125, %v821_v30  ;;  %912 = vadd.xlane.f32.xlu1 %v895_v4  ;;  %v1126_v27 = vmul.f32 %v2779_v38, %v2779_v38  ;;  %v2786_v5 = vmul.f32 %v2322_v60, %v1095_v31 }
 0x3ad   :  { %v1051_v34 = vpop.xlane.xlu0 %1050 }
 0x3ae   :  { %v865_v2 = vsub.f32 %v788_v41, %v849_v23  ;;  %v1080_v21 = vmul.f32 0.03125, %v1051_v34  ;;  %1142 = vadd.xlane.f32.xlu0 %v1126_v27  ;;  %v1127_v29 = vmul.f32 %v2786_v5, %v2786_v5  ;;  %v2793_v42 = vmul.f32 %v2322_v60, %v864_v3 }
 0x3af   :  { %v1053_v40 = vpop.xlane.xlu1 %1052 }
 0x3b0   :  { %v1096_v50 = vsub.f32 %v787_v53, %v1080_v21  ;;  %v1081_v36 = vmul.f32 0.03125, %v1053_v40  ;;  %1144 = vadd.xlane.f32.xlu1 %v1127_v29  ;;  %v896_v37 = vmul.f32 %v2793_v42, %v2793_v42  ;;  %v2800_v46 = vmul.f32 %v2322_v60, %v865_v2 }
 0x3b1   :  { %v823_v41 = vpop.xlane.xlu0 %822 }
 0x3b2   :  { %v1097_v18 = vsub.f32 %v789_v33, %v1081_v36  ;;  %v850_v28 = vmul.f32 0.03125, %v823_v41  ;;  %914 = vadd.xlane.f32.xlu0 %v896_v37  ;;  %v897_v31 = vmul.f32 %v2800_v46, %v2800_v46  ;;  %v2807_v45 = vmul.f32 %v2322_v60, %v1096_v50  ;;  %v1997_v36 = vld [vmem:[%s3509_s4 + $0x48] sm:$0xff]  }
 0x3b3   :  { %v825_v53 = vpop.xlane.xlu1 %824  ;;  %1843 = vmatprep.subr.bf16.mxu0 %v1997_v36  ;;  %1938 = vmatprep.subr.bf16.mxu1 %v1997_v36 }
 0x3b4   :  { %v866_v19 = vsub.f32 %v790_v43, %v850_v28  ;;  %v851_v4 = vmul.f32 0.03125, %v825_v53  ;;  %916 = vadd.xlane.f32.xlu1 %v897_v31  ;;  %v1128_v30 = vmul.f32 %v2807_v45, %v2807_v45  ;;  %v2814_v49 = vmul.f32 %v2322_v60, %v1097_v18  ;;  %v1998_v18 = vld [vmem:[%s3509_s4 + $0x8] sm:$0xff]  }
 0x3b5   :  { %v1055_v33 = vpop.xlane.xlu0 %1054  ;;  %1844 = vmatpush3.bf16.msra.mxu0 %v1998_v18  ;;  %1946 = vmatpush3.bf16.msra.mxu1 %v1998_v18 }
 0x3b6   :  { %v867_v3 = vsub.f32 %v792_v59, %v851_v4  ;;  %v1082_v23 = vmul.f32 0.03125, %v1055_v33  ;;  %1146 = vadd.xlane.f32.xlu0 %v1128_v30  ;;  %v1129_v27 = vmul.f32 %v2814_v49, %v2814_v49  ;;  %v2821_v55 = vmul.f32 %v2322_v60, %v866_v19  ;;  %v1999_v4 = vld [vmem:[%s3509_s4 + $0x50] sm:$0xff]  }
 0x3b7   :  { %v1057_v43 = vpop.xlane.xlu1 %1056  ;;  %1845 = vmatprep.subr.bf16.mxu0 %v1999_v4  ;;  %1939 = vmatprep.subr.bf16.mxu1 %v1999_v4 }
 0x3b8   :  { %v1098_v34 = vsub.f32 %v791_v62, %v1082_v23  ;;  %v1083_v2 = vmul.f32 0.03125, %v1057_v43  ;;  %1148 = vadd.xlane.f32.xlu1 %v1129_v27  ;;  %v898_v21 = vmul.f32 %v2821_v55, %v2821_v55  ;;  %v2828_v11 = vmul.f32 %v2322_v60, %v867_v3  ;;  %v2000_v3 = vld [vmem:[%s3509_s4 + $0x10] sm:$0xff]  }
 0x3b9   :  { %v827_v59 = vpop.xlane.xlu0 %826  ;;  %1846 = vmatpush3.bf16.msra.mxu0 %v2000_v3  ;;  %1947 = vmatpush3.bf16.msra.mxu1 %v2000_v3 }
 0x3ba   :  { %v1099_v29 = vsub.f32 %v793_v0, %v1083_v2  ;;  %v852_v40 = vmul.f32 0.03125, %v827_v59  ;;  %918 = vadd.xlane.f32.xlu0 %v898_v21  ;;  %v899_v50 = vmul.f32 %v2828_v11, %v2828_v11  ;;  %v2835_v58 = vmul.f32 %v2322_v60, %v1098_v34  ;;  %v2001_v2 = vld [vmem:[%s3509_s4 + $0x58] sm:$0xff]  }
 0x3bb   :  { %v829_v62 = vpop.xlane.xlu1 %828  ;;  %1847 = vmatprep.subr.bf16.mxu0 %v2001_v2  ;;  %1940 = vmatprep.subr.bf16.mxu1 %v2001_v2 }
 0x3bc   :  { %v868_v37 = vsub.f32 %v794_v44, %v852_v40  ;;  %v853_v41 = vmul.f32 0.03125, %v829_v62  ;;  %920 = vadd.xlane.f32.xlu1 %v899_v50  ;;  %v1130_v61 = vmul.f32 %v2835_v58, %v2835_v58  ;;  %v2845_v0 = vmul.f32 %v2322_v60, %v1099_v29  ;;  %v2002_v29 = vld [vmem:[%s3509_s4 + $0x18] sm:$0xff]  }
 0x3bd   :  { %v1059_v28 = vpop.xlane.xlu0 %1058  ;;  %v3527_v50 = vmax.f32 %v2664_v20, 0.0  ;;  %1848 = vmatpush3.bf16.msra.mxu0 %v2002_v29  ;;  %1948 = vmatpush3.bf16.msra.mxu1 %v2002_v29  ;;  %v2007_v29 = vld [vmem:[%s3509_s4 + $0x70] sm:$0xff]  }
 0x3be   :  { %v869_v31 = vsub.f32 %v796_v8, %v853_v41  ;;  %v1084_v1 = vmul.f32 0.03125, %v1059_v28  ;;  %1150 = vadd.xlane.f32.xlu0 %v1130_v61  ;;  %v1131_v44 = vmul.f32 %v2845_v0, %v2845_v0  ;;  %v2855_v53 = vmul.f32 %v2322_v60, %v868_v37  ;;  %v2003_v41 = vld [vmem:[%s3509_s4 + $0x60] sm:$0xff]  }
 0x3bf   :  { %v1061_v19 = vpop.xlane.xlu1 %1060  ;;  %v3528_v61 = vmax.f32 %v2661_v9, 0.0  ;;  %1849 = vmatprep.subr.bf16.mxu0 %v2003_v41  ;;  %1941 = vmatprep.subr.bf16.mxu1 %v2003_v41  ;;  %v3532_v41 = vmax.f32 %v2695_v7, 0.0  ;;  %v3534_v7 = vmax.f32 %v2699_v52, 0.0 }
 0x3c0   :  { %v1100_v30 = vsub.f32 %v795_v57, %v1084_v1  ;;  %v1085_v6 = vmul.f32 0.03125, %v1061_v19  ;;  %1152 = vadd.xlane.f32.xlu1 %v1131_v44  ;;  %v900_v8 = vmul.f32 %v2855_v53, %v2855_v53  ;;  %v2865_v33 = vmul.f32 %v2322_v60, %v869_v31  ;;  %v2004_v1 = vld [vmem:[%s3509_s4 + $0x20] sm:$0xff]  }
 0x3c1   :  { %v831_v23 = vpop.xlane.xlu0 %830  ;;  %v3529_v44 = vmax.f32 %v2670_v16, 0.0  ;;  %1850 = vmatpush3.bf16.msra.mxu0 %v2004_v1  ;;  %1949 = vmatpush3.bf16.msra.mxu1 %v2004_v1  ;;  %v3533_v1 = vmax.f32 %v2702_v47, 0.0 }
 0x3c2   :  { %v1101_v27 = vsub.f32 %v797_v13, %v1085_v6  ;;  %v854_v12 = vmul.f32 0.03125, %v831_v23  ;;  %922 = vadd.xlane.f32.xlu0 %v900_v8  ;;  %v901_v57 = vmul.f32 %v2865_v33, %v2865_v33  ;;  %v2875_v43 = vmul.f32 %v2322_v60, %v1100_v30  ;;  %v2005_v8 = vld [vmem:[%s3509_s4 + $0x68] sm:$0xff]  }
 0x3c3   :  { %v833_v34 = vpop.xlane.xlu1 %832  ;;  %1851 = vmatprep.subr.bf16.mxu0 %v2005_v8  ;;  %1942 = vmatprep.subr.bf16.mxu1 %v2005_v8 }
 0x3c4   :  { %v870_v21 = vsub.f32 %v798_v51, %v854_v12  ;;  %v855_v24 = vmul.f32 0.03125, %v833_v34  ;;  %924 = vadd.xlane.f32.xlu1 %v901_v57  ;;  %v1132_v13 = vmul.f32 %v2875_v43, %v2875_v43  ;;  %v2885_v59 = vmul.f32 %v2322_v60, %v1101_v27  ;;  %v2006_v27 = vld [vmem:[%s3509_s4 + $0x28] sm:$0xff]  }
 0x3c5   :  { %v1063_v40 = vpop.xlane.xlu0 %1062  ;;  %v3530_v12 = vmax.f32 %v2681_v35, 0.0  ;;  %1852 = vmatpush3.bf16.msra.mxu0 %v2006_v27  ;;  %1950 = vmatpush3.bf16.msra.mxu1 %v2006_v27  ;;  %v2008_v35 = vld [vmem:[%s3509_s4 + $0x30] sm:$0xff]   ;;  %v3535_v27 = vmax.f32 %v2706_v22, 0.0 }
 0x3c6   :  { %v871_v62 = vsub.f32 %v3527_v50, %v855_v24  ;;  %v1086_v14 = vmul.f32 0.03125, %v1063_v40  ;;  %1154 = vadd.xlane.f32.xlu0 %v1132_v13  ;;  %v1133_v51 = vmul.f32 %v2885_v59, %v2885_v59  ;;  %v2895_v36 = vmul.f32 %v2322_v60, %v870_v21  ;;  %1853 = vmatprep.subr.bf16.mxu0 %v2007_v29 }
 0x3c7   :  { %v1065_v37 = vpop.xlane.xlu1 %1064  ;;  %v3531_v21 = vmax.f32 %v2687_v10, 0.0  ;;  %1943 = vmatprep.subr.bf16.mxu1 %v2007_v29 }
 0x3c8   :  { %v1102_v18 = vsub.f32 %v3528_v61, %v1086_v14  ;;  %v1087_v20 = vmul.f32 0.03125, %v1065_v37  ;;  %1156 = vadd.xlane.f32.xlu1 %v1133_v51  ;;  %v902_v28 = vmul.f32 %v2895_v36, %v2895_v36  ;;  %v2905_v31 = vmul.f32 %v2322_v60, %v871_v62  ;;  %v2009_v37 = vld [vmem:[%s3509_s4 + $0x78] sm:$0xff]  }
 0x3c9   :  { %1854 = vmatpush3.bf16.msra.mxu0 %v2008_v35  ;;  %1951 = vmatpush3.bf16.msra.mxu1 %v2008_v35 }
 0x3ca   :  { %v1103_v19 = vsub.f32 %v3529_v44, %v1087_v20  ;;  %926 = vadd.xlane.f32.xlu0 %v902_v28  ;;  %v1067_v9 = vpop.xlane.xlu0 %1066  ;;  %v903_v4 = vmul.f32 %v2905_v31, %v2905_v31  ;;  %v2915_v30 = vmul.f32 %v2322_v60, %v1102_v18  ;;  %v2010_v20 = vld [vmem:[%s3509_s4 + $0x38] sm:$0xff]   ;;  %1855 = vmatprep.subr.bf16.mxu0 %v2009_v37 }
 0x3cb   :  { %v1088_v6 = vmul.f32 0.03125, %v1067_v9  ;;  %1944 = vmatprep.subr.bf16.mxu1 %v2009_v37 }
 0x3cc   :  { %v1069_v3 = vpop.xlane.xlu1 %1068  ;;  %928 = vadd.xlane.f32.xlu1 %v903_v4  ;;  %v1134_v16 = vmul.f32 %v2915_v30, %v2915_v30  ;;  %v2923_v23 = vmul.f32 %v2322_v60, %v1103_v19 }
 0x3cd   :  { %v1104_v57 = vsub.f32 %v3530_v12, %v1088_v6  ;;  %v1089_v34 = vmul.f32 0.03125, %v1069_v3  ;;  %1856 = vmatpush3.bf16.msra.mxu0 %v2010_v20  ;;  %1952 = vmatpush3.bf16.msra.mxu1 %v2010_v20 }
 0x3ce   :  { %1158 = vadd.xlane.f32.xlu0 %v1134_v16  ;;  %v1135_v2 = vmul.f32 %v2923_v23, %v2923_v23 }
 0x3cf   :  { %v1105_v24 = vsub.f32 %v3531_v21, %v1089_v34  ;;  %v2935_v13 = vmul.f32 %v2322_v60, %v1104_v57  ;;  %v3536_v21 = vmax.f32 %v2711_v32, 0.0 }
 0x3d0   :  { %1160 = vadd.xlane.f32.xlu1 %v1135_v2 }
 0x3d1   :  { %v839_v40 = vpop.xlane.xlu0 %838  ;;  %v1136_v50 = vmul.f32 %v2935_v13, %v2935_v13  ;;  %v2946_v10 = vmul.f32 %v2322_v60, %v1105_v24 }
 0x3d2   :  { %v858_v62 = vmul.f32 0.03125, %v839_v40 }
 0x3d3   :  { %v841_v14 = vpop.xlane.xlu1 %840  ;;  %1162 = vadd.xlane.f32.xlu0 %v1136_v50  ;;  %v1137_v51 = vmul.f32 %v2946_v10, %v2946_v10  ;;  %v3537_v50 = vmax.f32 %v2717_v63, 0.0 }
 0x3d4   :  { %v874_v61 = vsub.f32 %v3532_v41, %v858_v62  ;;  %v859_v18 = vmul.f32 0.03125, %v841_v14  ;;  %v3538_v41 = vmax.f32 %v2727_v56, 0.0 }
 0x3d5   :  { %1164 = vadd.xlane.f32.xlu1 %v1137_v51  ;;  %v1071_v28 = vpop.xlane.xlu0 %1070 }
 0x3d6   :  { %v875_v44 = vsub.f32 %v3533_v1, %v859_v18  ;;  %v1090_v19 = vmul.f32 0.03125, %v1071_v28  ;;  %v2961_v9 = vmul.f32 %v2322_v60, %v874_v61  ;;  %v3539_v1 = vmax.f32 %v2736_v39, 0.0 }
 0x3d7   :  { %v1073_v4 = vpop.xlane.xlu1 %1072 }
 0x3d8   :  { %v1106_v6 = vsub.f32 %v3534_v7, %v1090_v19  ;;  %v1091_v8 = vmul.f32 0.03125, %v1073_v4  ;;  %v906_v3 = vmul.f32 %v2961_v9, %v2961_v9  ;;  %v2968_v16 = vmul.f32 %v2322_v60, %v875_v44 }
 0x3d9   :  { %v835_v47 = vpop.xlane.xlu0 %834 }
 0x3da   :  { %v1107_v12 = vsub.f32 %v3535_v27, %v1091_v8  ;;  %v856_v57 = vmul.f32 0.03125, %v835_v47  ;;  %934 = vadd.xlane.f32.xlu0 %v906_v3  ;;  %v907_v34 = vmul.f32 %v2968_v16, %v2968_v16  ;;  %v2975_v2 = vmul.f32 %v2322_v60, %v1106_v6 }
 0x3db   :  { %v837_v52 = vpop.xlane.xlu1 %836  ;;  %v3540_v6 = vmax.f32 %v2721_v48, 0.0  ;;  %v3541_v27 = vmax.f32 %v2730_v15, 0.0 }
 0x3dc   :  { %v872_v24 = vsub.f32 %v3536_v21, %v856_v57  ;;  %v857_v29 = vmul.f32 0.03125, %v837_v52  ;;  %936 = vadd.xlane.f32.xlu1 %v907_v34  ;;  %v1138_v35 = vmul.f32 %v2975_v2, %v2975_v2  ;;  %v2982_v22 = vmul.f32 %v2322_v60, %v1107_v12 }
 0x3dd   :  { %v1075_v40 = vpop.xlane.xlu0 %1074 }
 0x3de   :  { %v873_v62 = vsub.f32 %v3537_v50, %v857_v29  ;;  %v1092_v14 = vmul.f32 0.03125, %v1075_v40  ;;  %1166 = vadd.xlane.f32.xlu0 %v1138_v35  ;;  %v1139_v51 = vmul.f32 %v2982_v22, %v2982_v22  ;;  %v2989_v32 = vmul.f32 %v2322_v60, %v872_v24 }
 0x3df   :  { %v1077_v37 = vpop.xlane.xlu1 %1076 }
 0x3e0   :  { %v1108_v61 = vsub.f32 %v3538_v41, %v1092_v14  ;;  %v1093_v18 = vmul.f32 0.03125, %v1077_v37  ;;  %1168 = vadd.xlane.f32.xlu1 %v1139_v51  ;;  %v904_v20 = vmul.f32 %v2989_v32, %v2989_v32  ;;  %v2996_v63 = vmul.f32 %v2322_v60, %v873_v62 }
 0x3e1   :  { %v843_v28 = vpop.xlane.xlu0 %842 }
 0x3e2   :  { %v1109_v44 = vsub.f32 %v3539_v1, %v1093_v18  ;;  %v860_v19 = vmul.f32 0.03125, %v843_v28  ;;  %930 = vadd.xlane.f32.xlu0 %v904_v20  ;;  %v905_v4 = vmul.f32 %v2996_v63, %v2996_v63  ;;  %v3003_v56 = vmul.f32 %v2322_v60, %v1108_v61 }
 0x3e3   :  { %v845_v7 = vpop.xlane.xlu1 %844 }
 0x3e4   :  { %v876_v8 = vsub.f32 %v3540_v6, %v860_v19  ;;  %v861_v3 = vmul.f32 0.03125, %v845_v7  ;;  %932 = vadd.xlane.f32.xlu1 %v905_v4  ;;  %v1140_v47 = vmul.f32 %v3003_v56, %v3003_v56  ;;  %v3010_v39 = vmul.f32 %v2322_v60, %v1109_v44 }
 0x3e5   :  { %v1008_v7 = vsub.s32 7, %v2257_v17 }
 0x3e6   :  { %v877_v12 = vsub.f32 %v3541_v27, %v861_v3  ;;  %1170 = vadd.xlane.f32.xlu0 %v1140_v47  ;;  %v1141_v57 = vmul.f32 %v3010_v39, %v3010_v39  ;;  %v3017_v34 = vmul.f32 %v2322_v60, %v876_v8  ;;  %v1240_v8 = vsub.s32 1, %v2257_v17 }
 0x3e8   :  { %1172 = vadd.xlane.f32.xlu1 %v1141_v57  ;;  %v908_v48 = vmul.f32 %v3017_v34, %v3017_v34  ;;  %v3022_v52 = vmul.f32 %v2322_v60, %v877_v12 }
 0x3ea   :  { %938 = vadd.xlane.f32.xlu0 %v908_v48  ;;  %v909_v21 = vmul.f32 %v3022_v52, %v3022_v52 }
 0x3ec   :  { %940 = vadd.xlane.f32.xlu1 %v909_v21 }
 0x437   :  { %v911_v15 = vpop.xlane.xlu0 %910 }
 0x438   :  { %v942_v24 = vmul.f32 0.03125, %v911_v15  ;;  %v3031_v15 = vld [vmem:[%s3506_s5 + $0x10] sm:$0xff] }
 0x439   :  { %v913_v29 = vpop.xlane.xlu1 %912 }
 0x43a   :  { %v958_v35 = vadd.f32 1e-05, %v942_v24  ;;  %v943_v40 = vmul.f32 0.03125, %v913_v29  ;;  %v1028_v24 = vsub.s32 0, %v2257_v17  ;;  %v2171_v29 = vld [vmem:[%s3506_s5] sm:$0xff] }
 0x43b   :  { %v1143_v50 = vpop.xlane.xlu0 %1142 }
 0x43c   :  { %v959_v62 = vadd.f32 1e-05, %v943_v40  ;;  %v1174_v14 = vmul.f32 0.03125, %v1143_v50  ;;  %2043 = vrsqrt.f32 %v958_v35  ;;  %v3037_v35 = vrot.slane %v2171_v29, %v1008_v7 }
 0x43d   :  { %v1145_v51 = vpop.xlane.xlu1 %1144 }
 0x43e   :  { %2045 = vrsqrt.f32 %v959_v62  ;;  %v1190_v37 = vadd.f32 1e-05, %v1174_v14  ;;  %v1175_v41 = vmul.f32 0.03125, %v1145_v51  ;;  %v3041_v62 = vrot.slane %v3031_v15, %v1240_v8 }
 0x43f   :  { %v915_v60 = vpop.xlane.xlu0 %914  ;;  %v1260_v14 = vsub.s32 2, %v2257_v17 }
 0x440   :  { %2047 = vrsqrt.f32 %v1190_v37  ;;  %v1191_v61 = vadd.f32 1e-05, %v1175_v41  ;;  %v944_v18 = vmul.f32 0.03125, %v915_v60 }
 0x441   :  { %v917_v20 = vpop.xlane.xlu1 %916  ;;  %v3053_v7 = vrot.slane %v3031_v15, %v1260_v14 }
 0x442   :  { %2049 = vrsqrt.f32 %v1191_v61  ;;  %v960_v28 = vadd.f32 1e-05, %v944_v18  ;;  %v945_v1 = vmul.f32 0.03125, %v917_v20 }
 0x443   :  { %v1147_v44 = vpop.xlane.xlu0 %1146 }
 0x444   :  { %2051 = vrsqrt.f32 %v960_v28  ;;  %v961_v19 = vadd.f32 1e-05, %v945_v1  ;;  %v1176_v4 = vmul.f32 0.03125, %v1147_v44  ;;  %v3048_v44 = vrot.slane %v3031_v15, %v1028_v24 }
 0x445   :  { %v1149_v6 = vpop.xlane.xlu1 %1148 }
 0x446   :  { %2053 = vrsqrt.f32 %v961_v19  ;;  %v1192_v3 = vadd.f32 1e-05, %v1176_v4  ;;  %v1177_v47 = vmul.f32 0.03125, %v1149_v6  ;;  %v2044_v27 = vpop.eup %2043 }
 0x447   :  { %v919_v12 = vpop.xlane.xlu0 %918  ;;  %v990_v37 = vmul.f32 %v2044_v27, %v2765_v25 }
 0x448   :  { %v2046_v57 = vpop.eup %2045  ;;  %2055 = vrsqrt.f32 %v1192_v3  ;;  %v1193_v48 = vadd.f32 1e-05, %v1177_v47  ;;  %v946_v21 = vmul.f32 0.03125, %v919_v12 }
 0x449   :  { %v991_v40 = vmul.f32 %v2046_v57, %v2772_v26  ;;  %v921_v50 = vpop.xlane.xlu1 %920 }
 0x44a   :  { %v2048_v51 = vpop.eup %2047  ;;  %2057 = vrsqrt.f32 %v1193_v48  ;;  %v962_v41 = vadd.f32 1e-05, %v946_v21  ;;  %v947_v60 = vmul.f32 0.03125, %v921_v50 }
 0x44b   :  { %v1151_v61 = vpop.xlane.xlu0 %1150  ;;  %v1222_v18 = vmul.f32 %v2048_v51, %v2779_v38  ;;  %v1011_v28 = vmul.f32 %v3037_v35, %v991_v40  ;;  %v1010_v38 = vmul.f32 %v3037_v35, %v990_v37 }
 0x44c   :  { %v2050_v20 = vpop.eup %2049  ;;  %v963_v1 = vadd.f32 1e-05, %v947_v60  ;;  %v1178_v26 = vmul.f32 0.03125, %v1151_v61  ;;  %2059 = vrsqrt.f32 %v962_v41 }
 0x44d   :  { %v1153_v19 = vpop.xlane.xlu1 %1152  ;;  %v1223_v4 = vmul.f32 %v2050_v20, %v2786_v5  ;;  %v1242_v25 = vmul.f32 %v3041_v62, %v1222_v18  ;;  %v1031_v5 = vadd.f32 %v3048_v44, %v1011_v28  ;;  %v1030_v41 = vadd.f32 %v3048_v44, %v1010_v38 }
 0x44e   :  { %v2052_v6 = vpop.eup %2051  ;;  %2061 = vrsqrt.f32 %v963_v1  ;;  %v1194_v8 = vadd.f32 1e-05, %v1178_v26  ;;  %v1179_v3 = vmul.f32 0.03125, %v1153_v19 }
 0x44f   :  { %v923_v47 = vpop.xlane.xlu0 %922  ;;  %v1243_v27 = vmul.f32 %v3041_v62, %v1223_v4  ;;  %v1262_v24 = vadd.f32 %v3053_v7, %v1242_v25  ;;  %v992_v40 = vmul.f32 %v2052_v6, %v2793_v42  ;;  %v1278_v19 = vpack.c.bf16 %v1031_v5, %v1030_v41 }
 0x450   :  { %v2054_v12 = vpop.eup %2053  ;;  %2063 = vrsqrt.f32 %v1194_v8  ;;  %v1195_v57 = vadd.f32 1e-05, %v1179_v3  ;;  %v948_v48 = vmul.f32 0.03125, %v923_v47 }
 0x451   :  { %v925_v21 = vpop.xlane.xlu1 %924  ;;  %v1263_v29 = vadd.f32 %v3053_v7, %v1243_v27  ;;  %v993_v50 = vmul.f32 %v2054_v12, %v2800_v46  ;;  %v1012_v25 = vmul.f32 %v3037_v35, %v992_v40 }
 0x452   :  { %v2056_v14 = vpop.eup %2055  ;;  %2065 = vrsqrt.f32 %v1195_v57  ;;  %v964_v51 = vadd.f32 1e-05, %v948_v48  ;;  %v949_v37 = vmul.f32 0.03125, %v925_v21 }
 0x453   :  { %v1155_v60 = vpop.xlane.xlu0 %1154  ;;  %v1279_v61 = vpack.c.bf16 %v1263_v29, %v1262_v24  ;;  %v1224_v18 = vmul.f32 %v2056_v14, %v2807_v45  ;;  %v1013_v20 = vmul.f32 %v3037_v35, %v993_v50  ;;  %v1032_v21 = vadd.f32 %v3048_v44, %v1012_v25 }
 0x454   :  { %v2058_v28 = vpop.eup %2057  ;;  %v965_v1 = vadd.f32 1e-05, %v949_v37  ;;  %v1180_v26 = vmul.f32 0.03125, %v1155_v60  ;;  %2067 = vrsqrt.f32 %v964_v51 }
 0x455   :  { %v1157_v42 = vpop.xlane.xlu1 %1156  ;;  %1458 = vmatprep.mubr.bf16.mxu0 %v1279_v61  ;;  %v1225_v46 = vmul.f32 %v2058_v28, %v2814_v49  ;;  %v1244_v4 = vmul.f32 %v3041_v62, %v1224_v18  ;;  %v1033_v47 = vadd.f32 %v3048_v44, %v1013_v20 }
 0x456   :  { %2069 = vrsqrt.f32 %v965_v1  ;;  %v1196_v6 = vadd.f32 1e-05, %v1180_v26  ;;  %v1181_v38 = vmul.f32 0.03125, %v1157_v42  ;;  %1459 = vmatmul.mubr.bf16.vlgmr.msra.gmra.mrb[16].mxu0 %v1278_v19  ;;  %v2060_v45 = vpop.eup %2059 }
 0x457   :  { %v927_v8 = vpop.xlane.xlu0 %926  ;;  %v1245_v3 = vmul.f32 %v3041_v62, %v1225_v46  ;;  %v1264_v49 = vadd.f32 %v3053_v7, %v1244_v4  ;;  %v994_v14 = vmul.f32 %v2060_v45, %v2821_v55  ;;  %v1280_v41 = vpack.c.bf16 %v1033_v47, %v1032_v21 }
 0x458   :  { %v2062_v27 = vpop.eup %2061  ;;  %2071 = vrsqrt.f32 %v1196_v6  ;;  %v1197_v12 = vadd.f32 1e-05, %v1181_v38  ;;  %v950_v57 = vmul.f32 0.03125, %v927_v8 }
 0x459   :  { %v929_v48 = vpop.xlane.xlu1 %928  ;;  %v1265_v5 = vadd.f32 %v3053_v7, %v1245_v3  ;;  %v995_v24 = vmul.f32 %v2062_v27, %v2828_v11  ;;  %v1014_v42 = vmul.f32 %v3037_v35, %v994_v14 }
 0x45a   :  { %v2064_v29 = vpop.eup %2063  ;;  %2073 = vrsqrt.f32 %v1197_v12  ;;  %v966_v40 = vadd.f32 1e-05, %v950_v57  ;;  %v951_v50 = vmul.f32 0.03125, %v929_v48 }
 0x45b   :  { %v1159_v51 = vpop.xlane.xlu0 %1158  ;;  %v1281_v37 = vpack.c.bf16 %v1265_v5, %v1264_v49  ;;  %v1226_v60 = vmul.f32 %v2064_v29, %v2835_v58  ;;  %v1015_v28 = vmul.f32 %v3037_v35, %v995_v24  ;;  %v1034_v12 = vadd.f32 %v3048_v44, %v1014_v42 }
 0x45c   :  { %v2066_v61 = vpop.eup %2065  ;;  %2075 = vrsqrt.f32 %v966_v40  ;;  %v967_v18 = vadd.f32 1e-05, %v951_v50  ;;  %v1182_v20 = vmul.f32 0.03125, %v1159_v51 }
 0x45d   :  { %v1161_v1 = vpop.xlane.xlu1 %1160  ;;  %1466 = vmatprep.mubr.bf16.mxu0 %v1281_v37  ;;  %v1227_v11 = vmul.f32 %v2066_v61, %v2845_v0  ;;  %v1246_v26 = vmul.f32 %v3041_v62, %v1226_v60  ;;  %v1035_v38 = vadd.f32 %v3048_v44, %v1015_v28 }
 0x45e   :  { %2077 = vrsqrt.f32 %v967_v18  ;;  %v1198_v19 = vadd.f32 1e-05, %v1182_v20  ;;  %v1183_v55 = vmul.f32 0.03125, %v1161_v1  ;;  %1467 = vmatmul.mubr.bf16.gmra.mrb[20].mxu0 %v1280_v41  ;;  %v2068_v46 = vpop.eup %2067 }
 0x45f   :  { %v1247_v58 = vmul.f32 %v3041_v62, %v1227_v11  ;;  %v1266_v0 = vadd.f32 %v3053_v7, %v1246_v26  ;;  %v996_v57 = vmul.f32 %v2068_v46, %v2855_v53  ;;  %v1282_v29 = vpack.c.bf16 %v1035_v38, %v1034_v12 }
 0x460   :  { %v2070_v4 = vpop.eup %2069  ;;  %2079 = vrsqrt.f32 %v1198_v19  ;;  %v1199_v25 = vadd.f32 1e-05, %v1183_v55  ;;  %v1163_v6 = vpop.xlane.xlu0 %1162 }
 0x461   :  { %v1184_v45 = vmul.f32 0.03125, %v1163_v6  ;;  %v1267_v8 = vadd.f32 %v3053_v7, %v1247_v58  ;;  %v997_v3 = vmul.f32 %v2070_v4, %v2865_v33  ;;  %v1016_v53 = vmul.f32 %v3037_v35, %v996_v57 }
 0x462   :  { %v2072_v47 = vpop.eup %2071  ;;  %2081 = vrsqrt.f32 %v1199_v25  ;;  %v1165_v27 = vpop.xlane.xlu1 %1164 }
 0x463   :  { %v1200_v48 = vadd.f32 1e-05, %v1184_v45  ;;  %v1185_v49 = vmul.f32 0.03125, %v1165_v27  ;;  %v1283_v5 = vpack.c.bf16 %v1267_v8, %v1266_v0  ;;  %v1228_v21 = vmul.f32 %v2072_v47, %v2875_v43 }
 0x464   :  { %v2074_v24 = vpop.eup %2073  ;;  %v1017_v40 = vmul.f32 %v3037_v35, %v997_v3  ;;  %v1036_v55 = vadd.f32 %v3048_v44, %v1016_v53 }
 0x465   :  { %2083 = vrsqrt.f32 %v1200_v48  ;;  %v1201_v50 = vadd.f32 1e-05, %v1185_v49  ;;  %1474 = vmatprep.mubr.bf16.mxu0 %v1283_v5  ;;  %v1229_v33 = vmul.f32 %v2074_v24, %v2885_v59  ;;  %v1248_v14 = vmul.f32 %v3041_v62, %v1228_v21 }
 0x466   :  { %v2076_v51 = vpop.eup %2075  ;;  %1475 = vmatmul.mubr.bf16.gmra.mrb[24].mxu0 %v1282_v29  ;;  %v1037_v61 = vadd.f32 %v3048_v44, %v1017_v40 }
 0x467   :  { %2085 = vrsqrt.f32 %v1201_v50  ;;  %v935_v37 = vpop.xlane.xlu0 %934  ;;  %v1249_v41 = vmul.f32 %v3041_v62, %v1229_v33  ;;  %v1268_v20 = vadd.f32 %v3053_v7, %v1248_v14  ;;  %v998_v59 = vmul.f32 %v2076_v51, %v2895_v36 }
 0x468   :  { %v2078_v43 = vpop.eup %2077  ;;  %v954_v60 = vmul.f32 0.03125, %v935_v37  ;;  %v1284_v45 = vpack.c.bf16 %v1037_v61, %v1036_v55 }
 0x469   :  { %v937_v18 = vpop.xlane.xlu1 %936  ;;  %v1269_v28 = vadd.f32 %v3053_v7, %v1249_v41  ;;  %v999_v1 = vmul.f32 %v2078_v43, %v2905_v31  ;;  %v1018_v8 = vmul.f32 %v3037_v35, %v998_v59 }
 0x46a   :  { %v2080_v11 = vpop.eup %2079  ;;  %v970_v26 = vadd.f32 1e-05, %v954_v60  ;;  %v955_v19 = vmul.f32 0.03125, %v937_v18 }
 0x46b   :  { %v1167_v42 = vpop.xlane.xlu0 %1166  ;;  %v1285_v46 = vpack.c.bf16 %v1269_v28, %v1268_v20  ;;  %v1230_v58 = vmul.f32 %v2080_v11, %v2915_v30  ;;  %v1019_v4 = vmul.f32 %v3037_v35, %v999_v1  ;;  %v1038_v40 = vadd.f32 %v3048_v44, %v1018_v8 }
 0x46c   :  { %v2082_v25 = vpop.eup %2081  ;;  %v971_v6 = vadd.f32 1e-05, %v955_v19  ;;  %v1186_v38 = vmul.f32 0.03125, %v1167_v42  ;;  %2087 = vrsqrt.f32 %v970_v26 }
 0x46d   :  { %v1169_v0 = vpop.xlane.xlu1 %1168  ;;  %1482 = vmatprep.mubr.bf16.mxu0 %v1285_v46  ;;  %v1231_v36 = vmul.f32 %v2082_v25, %v2923_v23  ;;  %v1250_v31 = vmul.f32 %v3041_v62, %v1230_v58  ;;  %v1039_v57 = vadd.f32 %v3048_v44, %v1019_v4 }
 0x46e   :  { %2089 = vrsqrt.f32 %v971_v6  ;;  %v1202_v3 = vadd.f32 1e-05, %v1186_v38  ;;  %v1187_v47 = vmul.f32 0.03125, %v1169_v0  ;;  %1483 = vmatmul.mubr.bf16.gmra.mrb[28].mxu0 %v1284_v45 }
 0x46f   :  { %v2084_v30 = vpop.eup %2083  ;;  %v931_v27 = vpop.xlane.xlu0 %930  ;;  %v1251_v12 = vmul.f32 %v3041_v62, %v1231_v36  ;;  %v1270_v24 = vadd.f32 %v3053_v7, %v1250_v31  ;;  %v1286_v37 = vpack.c.bf16 %v1039_v57, %v1038_v40 }
 0x470   :  { %2091 = vrsqrt.f32 %v1202_v3  ;;  %v1203_v48 = vadd.f32 1e-05, %v1187_v47  ;;  %v952_v49 = vmul.f32 0.03125, %v931_v27  ;;  %v1232_v5 = vmul.f32 %v2084_v30, %v2935_v13 }
 0x471   :  { %v2086_v23 = vpop.eup %2085  ;;  %v933_v21 = vpop.xlane.xlu1 %932  ;;  %v1271_v29 = vadd.f32 %v3053_v7, %v1251_v12 }
 0x472   :  { %2093 = vrsqrt.f32 %v1203_v48  ;;  %v968_v50 = vadd.f32 1e-05, %v952_v49  ;;  %v953_v33 = vmul.f32 0.03125, %v933_v21  ;;  %v1233_v14 = vmul.f32 %v2086_v23, %v2946_v10 }
 0x473   :  { %v1171_v51 = vpop.xlane.xlu0 %1170  ;;  %v1287_v53 = vpack.c.bf16 %v1271_v29, %v1270_v24  ;;  %v1252_v41 = vmul.f32 %v3041_v62, %v1232_v5 }
 0x474   :  { %2095 = vrsqrt.f32 %v968_v50  ;;  %v969_v13 = vadd.f32 1e-05, %v953_v33  ;;  %v1188_v43 = vmul.f32 0.03125, %v1171_v51  ;;  %v1253_v60 = vmul.f32 %v3041_v62, %v1233_v14 }
 0x475   :  { %v1173_v61 = vpop.xlane.xlu1 %1172  ;;  %1490 = vmatprep.mubr.bf16.mxu0 %v1287_v53  ;;  %v1272_v18 = vadd.f32 %v3053_v7, %v1252_v41 }
 0x476   :  { %2097 = vrsqrt.f32 %v969_v13  ;;  %v1204_v20 = vadd.f32 1e-05, %v1188_v43  ;;  %v1189_v28 = vmul.f32 0.03125, %v1173_v61  ;;  %1491 = vmatmul.mubr.bf16.gmra.mrb[32].mxu0 %v1286_v37  ;;  %v1273_v10 = vadd.f32 %v3053_v7, %v1253_v60  ;;  %v2088_v59 = vpop.eup %2087 }
 0x477   :  { %v939_v1 = vpop.xlane.xlu0 %938  ;;  %v1002_v4 = vmul.f32 %v2088_v59, %v2961_v9 }
 0x478   :  { %v2090_v11 = vpop.eup %2089  ;;  %2099 = vrsqrt.f32 %v1204_v20  ;;  %v1205_v26 = vadd.f32 1e-05, %v1189_v28  ;;  %v956_v19 = vmul.f32 0.03125, %v939_v1  ;;  %v1289_v55 = vpack.c.bf16 %v1273_v10, %v1272_v18 }
 0x479   :  { %v1003_v42 = vmul.f32 %v2090_v11, %v2968_v16  ;;  %v941_v46 = vpop.xlane.xlu1 %940  ;;  %v1022_v3 = vmul.f32 %v3037_v35, %v1002_v4  ;;  %v3542_v20 = vsub.s32 3, %v2257_v17 }
 0x47a   :  { %v2092_v58 = vpop.eup %2091  ;;  %2101 = vrsqrt.f32 %v1205_v26  ;;  %v972_v25 = vadd.f32 1e-05, %v956_v19  ;;  %v957_v6 = vmul.f32 0.03125, %v941_v46  ;;  %1498 = vmatprep.mubr.bf16.mxu0 %v1289_v55 }
 0x47b   :  { %v1234_v38 = vmul.f32 %v2092_v58, %v2975_v2  ;;  %v1023_v0 = vmul.f32 %v3037_v35, %v1003_v42  ;;  %v1042_v49 = vadd.f32 %v3048_v44, %v1022_v3  ;;  %v3148_v28 = vrot.slane %v3031_v15, %v3542_v20 }
 0x47c   :  { %v2094_v45 = vpop.eup %2093  ;;  %2103 = vrsqrt.f32 %v972_v25  ;;  %v973_v36 = vadd.f32 1e-05, %v957_v6 }
 0x47d   :  { %v1235_v31 = vmul.f32 %v2094_v45, %v2982_v22  ;;  %v1254_v8 = vmul.f32 %v3041_v62, %v1234_v38  ;;  %v1043_v2 = vadd.f32 %v3048_v44, %v1023_v0 }
 0x47e   :  { %v2096_v16 = vpop.eup %2095  ;;  %2105 = vrsqrt.f32 %v973_v36 }
 0x47f   :  { %v1255_v9 = vmul.f32 %v3041_v62, %v1235_v31  ;;  %v1000_v47 = vmul.f32 %v2096_v16, %v2989_v32  ;;  %v1274_v27 = vadd.f32 %v3053_v7, %v1254_v8  ;;  %v1290_v24 = vpack.c.bf16 %v1043_v2, %v1042_v49 }
 0x480   :  { %v2098_v30 = vpop.eup %2097 }
 0x481   :  { %v1275_v12 = vadd.f32 %v3053_v7, %v1255_v9  ;;  %v1001_v57 = vmul.f32 %v2098_v30, %v2996_v63  ;;  %v1020_v22 = vmul.f32 %v3037_v35, %v1000_v47 }
 0x482   :  { %v2100_v48 = vpop.eup %2099 }
 0x483   :  { %v1291_v5 = vpack.c.bf16 %v1275_v12, %v1274_v27  ;;  %v1021_v23 = vmul.f32 %v3037_v35, %v1001_v57  ;;  %v1236_v21 = vmul.f32 %v2100_v48, %v3003_v56  ;;  %v1040_v29 = vadd.f32 %v3048_v44, %v1020_v22 }
 0x484   :  { %v2102_v32 = vpop.eup %2101 }
 0x485   :  { %1506 = vmatprep.mubr.bf16.mxu1 %v1291_v5  ;;  %v1041_v40 = vadd.f32 %v3048_v44, %v1021_v23  ;;  %v1237_v50 = vmul.f32 %v2102_v32, %v3010_v39  ;;  %v1256_v63 = vmul.f32 %v3041_v62, %v1236_v21 }
 0x486   :  { %v2104_v33 = vpop.eup %2103  ;;  %1507 = vmatmul.mubr.bf16.vlgmr.msra.gmra.mrb[32].mxu1 %v1290_v24 }
 0x487   :  { %v1288_v14 = vpack.c.bf16 %v1041_v40, %v1040_v29  ;;  %v1257_v51 = vmul.f32 %v3041_v62, %v1237_v50  ;;  %v1004_v53 = vmul.f32 %v2104_v33, %v3017_v34  ;;  %v1276_v56 = vadd.f32 %v3053_v7, %v1256_v63 }
 0x488   :  { %v2106_v37 = vpop.eup %2105 }
 0x489   :  { %1499 = vmatmul.mubr.bf16.gmra.mrb[36].mxu0 %v1288_v14  ;;  %v1277_v41 = vadd.f32 %v3053_v7, %v1257_v51  ;;  %v1005_v13 = vmul.f32 %v2106_v37, %v3022_v52  ;;  %v1024_v43 = vmul.f32 %v3037_v35, %v1004_v53 }
 0x48b   :  { %v1293_v39 = vpack.c.bf16 %v1277_v41, %v1276_v56  ;;  %v1025_v60 = vmul.f32 %v3037_v35, %v1005_v13  ;;  %v1044_v61 = vadd.f32 %v3048_v44, %v1024_v43 }
 0x48d   :  { %1514 = vmatprep.mubr.bf16.mxu1 %v1293_v39  ;;  %v1045_v62 = vadd.f32 %v3048_v44, %v1025_v60 }
 0x48f   :  { %v1292_v18 = vpack.c.bf16 %v1045_v62, %v1044_v61 }
 0x491   :  { %1515 = vmatmul.mubr.bf16.gmra.mrb[36].mxu1 %v1292_v18 }
 0x529   :  { %v1857_v34 = vpop.f32.mrb[16].mxu0 }
 0x52a   :  { %v1858_v7 = vpop.f32.mrb[17].mxu0 }
 0x52b   :  { %v1859_v52 = vadd.f32 %v1858_v7, %v1857_v34  ;;  %v1860_v10 = vpop.f32.mrb[18].mxu0 }
 0x52c   :  { %v1861_v59 = vpop.f32.mrb[19].mxu0 }
 0x52d   :  { %v1862_v35 = vadd.f32 %v1861_v59, %v1860_v10  ;;  %v3152_v1 = vadd.f32 %v1859_v52, %v3148_v28 }
 0x52f   :  { %v3157_v44 = vsel %vm1523_vm1, %v3152_v1, -inf  ;;  %v3160_v17 = vadd.f32 %v1862_v35, %v3148_v28 }
 0x530   :  { %1540 = vmax.xlane.f32.xlu0 %v3157_v44 }
 0x531   :  { %v1863_v15 = vpop.f32.mrb[20].mxu0  ;;  %v3166_v11 = vsel %vm1523_vm1, %v3160_v17, -inf }
 0x532   :  { %1542 = vmax.xlane.f32.xlu1 %v3166_v11  ;;  %v1864_v26 = vpop.f32.mrb[21].mxu0 }
 0x533   :  { %v1865_v19 = vadd.f32 %v1864_v26, %v1863_v15  ;;  %v1866_v55 = vpop.f32.mrb[22].mxu0 }
 0x534   :  { %v1867_v42 = vpop.f32.mrb[23].mxu0 }
 0x535   :  { %v3170_v46 = vadd.f32 %v1865_v19, %v3148_v28  ;;  %v1868_v58 = vadd.f32 %v1867_v42, %v1866_v55 }
 0x537   :  { %v3173_v4 = vadd.f32 %v1868_v58, %v3148_v28  ;;  %v3178_v25 = vsel %vm1523_vm1, %v3170_v46, -inf }
 0x538   :  { %1544 = vmax.xlane.f32.xlu0 %v3178_v25 }
 0x539   :  { %v1869_v6 = vpop.f32.mrb[24].mxu0  ;;  %v3184_v38 = vsel %vm1523_vm1, %v3173_v4, -inf }
 0x53a   :  { %1546 = vmax.xlane.f32.xlu1 %v3184_v38  ;;  %v1870_v45 = vpop.f32.mrb[25].mxu0 }
 0x53b   :  { %v1871_v0 = vadd.f32 %v1870_v45, %v1869_v6  ;;  %v1872_v36 = vpop.f32.mrb[26].mxu0 }
 0x53c   :  { %v1873_v31 = vpop.f32.mrb[27].mxu0 }
 0x53d   :  { %v3188_v8 = vadd.f32 %v1871_v0, %v3148_v28  ;;  %v1874_v16 = vadd.f32 %v1873_v31, %v1872_v36 }
 0x53f   :  { %v3191_v3 = vadd.f32 %v1874_v16, %v3148_v28  ;;  %v3196_v9 = vsel %vm1523_vm1, %v3188_v8, -inf }
 0x540   :  { %1548 = vmax.xlane.f32.xlu0 %v3196_v9 }
 0x541   :  { %v1875_v47 = vpop.f32.mrb[28].mxu0  ;;  %v3202_v30 = vsel %vm1523_vm1, %v3191_v3, -inf }
 0x542   :  { %1550 = vmax.xlane.f32.xlu1 %v3202_v30  ;;  %v1876_v2 = vpop.f32.mrb[29].mxu0 }
 0x543   :  { %v1877_v27 = vadd.f32 %v1876_v2, %v1875_v47  ;;  %v1878_v12 = vpop.f32.mrb[30].mxu0 }
 0x544   :  { %v1879_v57 = vpop.f32.mrb[31].mxu0 }
 0x545   :  { %v3206_v22 = vadd.f32 %v1877_v27, %v3148_v28  ;;  %v1880_v48 = vadd.f32 %v1879_v57, %v1878_v12 }
 0x547   :  { %v3209_v49 = vadd.f32 %v1880_v48, %v3148_v28  ;;  %v3214_v5 = vsel %vm1523_vm1, %v3206_v22, -inf }
 0x548   :  { %1552 = vmax.xlane.f32.xlu0 %v3214_v5 }
 0x549   :  { %v1881_v23 = vpop.f32.mrb[32].mxu0  ;;  %v3220_v21 = vsel %vm1523_vm1, %v3209_v49, -inf }
 0x54a   :  { %1554 = vmax.xlane.f32.xlu1 %v3220_v21  ;;  %v1882_v32 = vpop.f32.mrb[33].mxu0 }
 0x54b   :  { %v1883_v24 = vadd.f32 %v1882_v32, %v1881_v23  ;;  %v1884_v29 = vpop.f32.mrb[34].mxu0 }
 0x54c   :  { %v1885_v40 = vpop.f32.mrb[35].mxu0 }
 0x54d   :  { %v3224_v50 = vadd.f32 %v1883_v24, %v3148_v28  ;;  %v1886_v63 = vadd.f32 %v1885_v40, %v1884_v29 }
 0x54f   :  { %v3227_v33 = vadd.f32 %v1886_v63, %v3148_v28  ;;  %v3232_v14 = vsel %vm1523_vm1, %v3224_v50, -inf }
 0x550   :  { %1556 = vmax.xlane.f32.xlu0 %v3232_v14 }
 0x551   :  { %v3238_v51 = vsel %vm1523_vm1, %v3227_v33, -inf }
 0x552   :  { %1558 = vmax.xlane.f32.xlu1 %v3238_v51 }
 0x559   :  { %v1893_v53 = vpop.f32.mrb[32].mxu1 }
 0x55a   :  { %v1894_v37 = vpop.f32.mrb[33].mxu1 }
 0x55b   :  { %v1895_v56 = vadd.f32 %v1894_v37, %v1893_v53  ;;  %v1896_v41 = vpop.f32.mrb[34].mxu1 }
 0x55c   :  { %v1887_v13 = vpop.f32.mrb[36].mxu0  ;;  %v1897_v43 = vpop.f32.mrb[35].mxu1 }
 0x55d   :  { %v1898_v39 = vadd.f32 %v1897_v43, %v1896_v41  ;;  %v1888_v60 = vpop.f32.mrb[37].mxu0  ;;  %v3245_v7 = vadd.f32 %v1895_v56, %v3148_v28 }
 0x55e   :  { %v1889_v61 = vadd.f32 %v1888_v60, %v1887_v13  ;;  %v1890_v62 = vpop.f32.mrb[38].mxu0 }
 0x55f   :  { %v1891_v18 = vpop.f32.mrb[39].mxu0  ;;  %v3257_v59 = vadd.f32 %v1898_v39, %v3148_v28  ;;  %v3268_v42 = vsel %vm1523_vm1, %v3245_v7, -inf }
 0x560   :  { %v3242_v34 = vadd.f32 %v1889_v61, %v3148_v28  ;;  %v1892_v20 = vadd.f32 %v1891_v18, %v1890_v62 }
 0x561   :  { %v3277_v0 = vsel %vm1523_vm1, %v3257_v59, -inf }
 0x562   :  { %v3248_v52 = vadd.f32 %v1892_v20, %v3148_v28  ;;  %v3253_v10 = vsel %vm1523_vm1, %v3242_v34, -inf }
 0x563   :  { %1560 = vmax.xlane.f32.xlu0 %v3253_v10 }
 0x564   :  { %v1899_v35 = vpop.f32.mrb[36].mxu1  ;;  %v3262_v15 = vsel %vm1523_vm1, %v3248_v52, -inf }
 0x565   :  { %1562 = vmax.xlane.f32.xlu1 %v3262_v15  ;;  %v1900_v26 = vpop.f32.mrb[37].mxu1 }
 0x566   :  { %v1901_v19 = vadd.f32 %v1900_v26, %v1899_v35  ;;  %v1902_v55 = vpop.f32.mrb[38].mxu1 }
 0x567   :  { %1564 = vmax.xlane.f32.xlu0 %v3268_v42  ;;  %v1903_v58 = vpop.f32.mrb[39].mxu1 }
 0x568   :  { %v3272_v6 = vadd.f32 %v1901_v19, %v3148_v28  ;;  %v1904_v45 = vadd.f32 %v1903_v58, %v1902_v55 }
 0x569   :  { %1566 = vmax.xlane.f32.xlu1 %v3277_v0 }
 0x56a   :  { %v3281_v36 = vadd.f32 %v1904_v45, %v3148_v28  ;;  %v3286_v31 = vsel %vm1523_vm1, %v3272_v6, -inf }
 0x56b   :  { %1568 = vmax.xlane.f32.xlu0 %v3286_v31 }
 0x56c   :  { %v3292_v16 = vsel %vm1523_vm1, %v3281_v36, -inf }
 0x56d   :  { %1570 = vmax.xlane.f32.xlu1 %v3292_v16 }
 0x5bd   :  { %v1541_v47 = vpop.xlane.xlu0 %1540 }
 0x5be   :  { %v1572_v2 = vsub.f32 %v3157_v44, %v1541_v47 }
 0x5bf   :  { %v1543_v27 = vpop.xlane.xlu1 %1542 }
 0x5c0   :  { %v1588_v28 = vmul.f32 1.442695, %v1572_v2  ;;  %v1573_v12 = vsub.f32 %v3166_v11, %v1543_v27 }
 0x5c2   :  { %2107 = vpow2.f32 %v1588_v28  ;;  %v1590_v57 = vmul.f32 1.442695, %v1573_v12 }
 0x5c4   :  { %2109 = vpow2.f32 %v1590_v57 }
 0x5c5   :  { %v1545_v48 = vpop.xlane.xlu0 %1544 }
 0x5c6   :  { %v1574_v23 = vsub.f32 %v3178_v25, %v1545_v48 }
 0x5c7   :  { %v1547_v32 = vpop.xlane.xlu1 %1546 }
 0x5c8   :  { %v1592_v24 = vmul.f32 1.442695, %v1574_v23  ;;  %v1575_v29 = vsub.f32 %v3184_v38, %v1547_v32 }
 0x5ca   :  { %2111 = vpow2.f32 %v1592_v24  ;;  %v1594_v40 = vmul.f32 1.442695, %v1575_v29 }
 0x5cc   :  { %v3299_v63 = vpop.eup %2107  ;;  %2113 = vpow2.f32 %v1594_v40 }
 0x5cd   :  { %1620 = vadd.xlane.f32.xlu0 %v3299_v63  ;;  %v1549_v44 = vpop.xlane.xlu0 %1548 }
 0x5ce   :  { %v3302_v53 = vpop.eup %2109  ;;  %v1576_v11 = vsub.f32 %v3196_v9, %v1549_v44 }
 0x5cf   :  { %v1551_v37 = vpop.xlane.xlu1 %1550  ;;  %1622 = vadd.xlane.f32.xlu1 %v3302_v53 }
 0x5d0   :  { %v1596_v25 = vmul.f32 1.442695, %v1576_v11  ;;  %v1577_v56 = vsub.f32 %v3202_v30, %v1551_v37 }
 0x5d2   :  { %2115 = vpow2.f32 %v1596_v25  ;;  %v1598_v38 = vmul.f32 1.442695, %v1577_v56 }
 0x5d4   :  { %v3307_v41 = vpop.eup %2111  ;;  %2117 = vpow2.f32 %v1598_v38 }
 0x5d5   :  { %1624 = vadd.xlane.f32.xlu0 %v3307_v41  ;;  %v1553_v13 = vpop.xlane.xlu0 %1552 }
 0x5d6   :  { %v3310_v43 = vpop.eup %2113  ;;  %v1578_v39 = vsub.f32 %v3214_v5, %v1553_v13 }
 0x5d7   :  { %v1555_v60 = vpop.xlane.xlu1 %1554  ;;  %1626 = vadd.xlane.f32.xlu1 %v3310_v43 }
 0x5d8   :  { %v1600_v9 = vmul.f32 1.442695, %v1578_v39  ;;  %v1579_v61 = vsub.f32 %v3220_v21, %v1555_v60 }
 0x5da   :  { %2119 = vpow2.f32 %v1600_v9  ;;  %v1602_v30 = vmul.f32 1.442695, %v1579_v61 }
 0x5dc   :  { %v3315_v62 = vpop.eup %2115  ;;  %2121 = vpow2.f32 %v1602_v30 }
 0x5dd   :  { %1628 = vadd.xlane.f32.xlu0 %v3315_v62  ;;  %v1557_v18 = vpop.xlane.xlu0 %1556 }
 0x5de   :  { %v3318_v20 = vpop.eup %2117  ;;  %v1580_v35 = vsub.f32 %v3232_v14, %v1557_v18  ;;  %v1685_v18 = vsel %vm1684_vm2, %v3152_v1, 0.0 }
 0x5df   :  { %v1559_v26 = vpop.xlane.xlu1 %1558  ;;  %1630 = vadd.xlane.f32.xlu1 %v3318_v20 }
 0x5e0   :  { %v1604_v5 = vmul.f32 1.442695, %v1580_v35  ;;  %v1581_v19 = vsub.f32 %v3238_v51, %v1559_v26 }
 0x5e2   :  { %2123 = vpow2.f32 %v1604_v5  ;;  %v1606_v21 = vmul.f32 1.442695, %v1581_v19  ;;  %v1686_v5 = vsel %vm1684_vm2, %v3160_v17, 0.0  ;;  %v1687_v17 = vsel %vm1684_vm2, %v3170_v46, 0.0 }
 0x5e4   :  { %v3323_v55 = vpop.eup %2119  ;;  %2125 = vpow2.f32 %v1606_v21 }
 0x5e5   :  { %1632 = vadd.xlane.f32.xlu0 %v3323_v55 }
 0x5e6   :  { %v3326_v58 = vpop.eup %2121 }
 0x5e7   :  { %1634 = vadd.xlane.f32.xlu1 %v3326_v58 }
 0x5ec   :  { %v3329_v45 = vpop.eup %2123 }
 0x5ed   :  { %1636 = vadd.xlane.f32.xlu0 %v3329_v45 }
 0x5ee   :  { %v3332_v14 = vpop.eup %2125 }
 0x5ef   :  { %1638 = vadd.xlane.f32.xlu1 %v3332_v14 }
 0x5f0   :  { %v1561_v51 = vpop.xlane.xlu0 %1560 }
 0x5f1   :  { %v1582_v47 = vsub.f32 %v3253_v10, %v1561_v51 }
 0x5f2   :  { %v1563_v2 = vpop.xlane.xlu1 %1562 }
 0x5f3   :  { %v1608_v27 = vmul.f32 1.442695, %v1582_v47  ;;  %v1583_v28 = vsub.f32 %v3262_v15, %v1563_v2 }
 0x5f4   :  { %v1565_v12 = vpop.xlane.xlu0 %1564 }
 0x5f5   :  { %2127 = vpow2.f32 %v1608_v27  ;;  %v1610_v57 = vmul.f32 1.442695, %v1583_v28  ;;  %v1584_v48 = vsub.f32 %v3268_v42, %v1565_v12  ;;  %v1688_v27 = vsel %vm1684_vm2, %v3173_v4, 0.0 }
 0x5f6   :  { %v1567_v23 = vpop.xlane.xlu1 %1566  ;;  %v1689_v4 = vsel %vm1684_vm2, %v3188_v8, 0.0 }
 0x5f7   :  { %2129 = vpow2.f32 %v1610_v57  ;;  %v1612_v32 = vmul.f32 1.442695, %v1584_v48  ;;  %v1585_v24 = vsub.f32 %v3277_v0, %v1567_v23 }
 0x5f8   :  { %v1569_v29 = vpop.xlane.xlu0 %1568 }
 0x5f9   :  { %2131 = vpow2.f32 %v1612_v32  ;;  %v1614_v40 = vmul.f32 1.442695, %v1585_v24  ;;  %v1586_v44 = vsub.f32 %v3286_v31, %v1569_v29  ;;  %v1690_v32 = vsel %vm1684_vm2, %v3191_v3, 0.0 }
 0x5fa   :  { %v1571_v10 = vpop.xlane.xlu1 %1570  ;;  %v1691_v3 = vsel %vm1684_vm2, %v3206_v22, 0.0 }
 0x5fb   :  { %2133 = vpow2.f32 %v1614_v40  ;;  %v1616_v11 = vmul.f32 1.442695, %v1586_v44  ;;  %v1587_v15 = vsub.f32 %v3292_v16, %v1571_v10 }
 0x5fd   :  { %2135 = vpow2.f32 %v1616_v11  ;;  %v1618_v37 = vmul.f32 1.442695, %v1587_v15  ;;  %v1692_v11 = vsel %vm1684_vm2, %v3209_v49, 0.0 }
 0x5ff   :  { %v3341_v25 = vpop.eup %2127  ;;  %2137 = vpow2.f32 %v1618_v37 }
 0x600   :  { %1640 = vadd.xlane.f32.xlu0 %v3341_v25 }
 0x601   :  { %v3344_v42 = vpop.eup %2129 }
 0x602   :  { %1642 = vadd.xlane.f32.xlu1 %v3344_v42 }
 0x603   :  { %v3347_v0 = vpop.eup %2131 }
 0x604   :  { %1644 = vadd.xlane.f32.xlu0 %v3347_v0 }
 0x605   :  { %v3350_v31 = vpop.eup %2133 }
 0x606   :  { %1646 = vadd.xlane.f32.xlu1 %v3350_v31 }
 0x607   :  { %v3353_v16 = vpop.eup %2135 }
 0x608   :  { %1648 = vadd.xlane.f32.xlu0 %v3353_v16 }
 0x609   :  { %v3356_v56 = vpop.eup %2137 }
 0x60a   :  { %1650 = vadd.xlane.f32.xlu1 %v3356_v56 }
 0x65a   :  { %v1621_v38 = vpop.xlane.xlu0 %1620 }
 0x65b   :  { %2139 = vrcp.f32 %v1621_v38 }
 0x65c   :  { %v1623_v13 = vpop.xlane.xlu1 %1622 }
 0x65d   :  { %2141 = vrcp.f32 %v1623_v13  ;;  %v1694_v13 = vsel %vm1684_vm2, %v3227_v33, 0.0 }
 0x662   :  { %v1625_v39 = vpop.xlane.xlu0 %1624 }
 0x663   :  { %2143 = vrcp.f32 %v1625_v39 }
 0x664   :  { %v1627_v60 = vpop.xlane.xlu1 %1626 }
 0x665   :  { %v2140_v9 = vpop.eup %2139  ;;  %2145 = vrcp.f32 %v1627_v60 }
 0x666   :  { %v1653_v61 = vmul.f32 %v2140_v9, %v3299_v63 }
 0x667   :  { %v2142_v30 = vpop.eup %2141 }
 0x668   :  { %v1701_v35 = vsel %vm1523_vm1, %v1653_v61, %v1685_v18  ;;  %v1655_v26 = vmul.f32 %v2142_v30, %v3302_v53 }
 0x669   :  { %1717 = vst [vmem:[%s3510_s6] sm:$0xff] %v1701_v35  ;;  %v1695_v35 = vsel %vm1684_vm2, %v3242_v34, 0.0 }
 0x66a   :  { %v1702_v63 = vsel %vm1523_vm1, %v1655_v26, %v1686_v5  ;;  %v1629_v19 = vpop.xlane.xlu0 %1628 }
 0x66b   :  { %1718 = vst [vmem:[%s3510_s6 + $0x8] sm:$0xff] %v1702_v63  ;;  %2147 = vrcp.f32 %v1629_v19  ;;  %v1696_v19 = vsel %vm1684_vm2, %v3248_v52, 0.0 }
 0x66c   :  { %v1631_v1 = vpop.xlane.xlu1 %1630 }
 0x66d   :  { %v2144_v21 = vpop.eup %2143  ;;  %2149 = vrcp.f32 %v1631_v1 }
 0x66e   :  { %v1657_v53 = vmul.f32 %v2144_v21, %v3307_v41  ;;  %v1697_v21 = vsel %vm1684_vm2, %v3245_v7, 0.0 }
 0x66f   :  { %v2146_v51 = vpop.eup %2145 }
 0x670   :  { %v1703_v47 = vsel %vm1523_vm1, %v1657_v53, %v1687_v17  ;;  %v1659_v2 = vmul.f32 %v2146_v51, %v3310_v43  ;;  %v1698_v51 = vsel %vm1684_vm2, %v3257_v59, 0.0 }
 0x671   :  { %1719 = vst [vmem:[%s3510_s6 + $0x10] sm:$0xff] %v1703_v47  ;;  %v1699_v47 = vsel %vm1684_vm2, %v3272_v6, 0.0 }
 0x672   :  { %v1704_v41 = vsel %vm1523_vm1, %v1659_v2, %v1688_v27  ;;  %v1633_v28 = vpop.xlane.xlu0 %1632  ;;  %v1700_v2 = vsel %vm1684_vm2, %v3281_v36, 0.0 }
 0x673   :  { %1720 = vst [vmem:[%s3510_s6 + $0x18] sm:$0xff] %v1704_v41  ;;  %2151 = vrcp.f32 %v1633_v28 }
 0x674   :  { %v1635_v46 = vpop.xlane.xlu1 %1634 }
 0x675   :  { %v2148_v12 = vpop.eup %2147  ;;  %2153 = vrcp.f32 %v1635_v46 }
 0x676   :  { %v1661_v43 = vmul.f32 %v2148_v12, %v3315_v62 }
 0x677   :  { %v2150_v57 = vpop.eup %2149 }
 0x678   :  { %v1705_v48 = vsel %vm1523_vm1, %v1661_v43, %v1689_v4  ;;  %v1663_v23 = vmul.f32 %v2150_v57, %v3318_v20 }
 0x679   :  { %1721 = vst [vmem:[%s3510_s6 + $0x20] sm:$0xff] %v1705_v48 }
 0x67a   :  { %v1706_v62 = vsel %vm1523_vm1, %v1663_v23, %v1690_v32  ;;  %v1637_v24 = vpop.xlane.xlu0 %1636 }
 0x67b   :  { %1722 = vst [vmem:[%s3510_s6 + $0x28] sm:$0xff] %v1706_v62  ;;  %2155 = vrcp.f32 %v1637_v24 }
 0x67c   :  { %v1639_v8 = vpop.xlane.xlu1 %1638 }
 0x67d   :  { %v2152_v29 = vpop.eup %2151  ;;  %2157 = vrcp.f32 %v1639_v8 }
 0x67e   :  { %v1665_v20 = vmul.f32 %v2152_v29, %v3323_v55 }
 0x67f   :  { %v2154_v40 = vpop.eup %2153 }
 0x680   :  { %v1707_v44 = vsel %vm1523_vm1, %v1665_v20, %v1691_v3  ;;  %v1667_v10 = vmul.f32 %v2154_v40, %v3326_v58  ;;  %v1693_v58 = vsel %vm1684_vm2, %v3224_v50, 0.0 }
 0x681   :  { %1723 = vst [vmem:[%s3510_s6 + $0x30] sm:$0xff] %v1707_v44 }
 0x682   :  { %v1708_v55 = vsel %vm1523_vm1, %v1667_v10, %v1692_v11 }
 0x683   :  { %1724 = vst [vmem:[%s3510_s6 + $0x38] sm:$0xff] %v1708_v55 }
 0x685   :  { %v2156_v22 = vpop.eup %2155 }
 0x686   :  { %v1669_v15 = vmul.f32 %v2156_v22, %v3329_v45 }
 0x687   :  { %v2158_v37 = vpop.eup %2157 }
 0x688   :  { %v1709_v49 = vsel %vm1523_vm1, %v1669_v15, %v1693_v58  ;;  %v1671_v38 = vmul.f32 %v2158_v37, %v3332_v14 }
 0x689   :  { %1725 = vst [vmem:[%s3510_s6 + $0x40] sm:$0xff] %v1709_v49 }
 0x68a   :  { %v1710_v45 = vsel %vm1523_vm1, %v1671_v38, %v1694_v13 }
 0x68b   :  { %1726 = vst [vmem:[%s3510_s6 + $0x48] sm:$0xff] %v1710_v45 }
 0x68d   :  { %v1641_v50 = vpop.xlane.xlu0 %1640 }
 0x68e   :  { %2159 = vrcp.f32 %v1641_v50 }
 0x68f   :  { %v1643_v39 = vpop.xlane.xlu1 %1642 }
 0x690   :  { %2161 = vrcp.f32 %v1643_v39 }
 0x691   :  { %v1645_v14 = vpop.xlane.xlu0 %1644 }
 0x692   :  { %2163 = vrcp.f32 %v1645_v14 }
 0x693   :  { %v1647_v60 = vpop.xlane.xlu1 %1646 }
 0x694   :  { %2165 = vrcp.f32 %v1647_v60 }
 0x695   :  { %v1649_v33 = vpop.xlane.xlu0 %1648 }
 0x696   :  { %2167 = vrcp.f32 %v1649_v33 }
 0x697   :  { %v1651_v9 = vpop.xlane.xlu1 %1650 }
 0x698   :  { %v2160_v61 = vpop.eup %2159  ;;  %2169 = vrcp.f32 %v1651_v9 }
 0x699   :  { %v1673_v30 = vmul.f32 %v2160_v61, %v3341_v25 }
 0x69a   :  { %v2162_v18 = vpop.eup %2161 }
 0x69b   :  { %v1711_v26 = vsel %vm1523_vm1, %v1673_v30, %v1695_v35  ;;  %v1675_v5 = vmul.f32 %v2162_v18, %v3344_v42 }
 0x69c   :  { %v2164_v63 = vpop.eup %2163  ;;  %1727 = vst [vmem:[%s3510_s6 + $0x50] sm:$0xff] %v1711_v26 }
 0x69d   :  { %v1712_v25 = vsel %vm1523_vm1, %v1675_v5, %v1696_v19  ;;  %v1677_v1 = vmul.f32 %v2164_v63, %v3347_v0 }
 0x69e   :  { %v2166_v34 = vpop.eup %2165  ;;  %1728 = vst [vmem:[%s3510_s6 + $0x58] sm:$0xff] %v1712_v25 }
 0x69f   :  { %v1713_v52 = vsel %vm1523_vm1, %v1677_v1, %v1697_v21  ;;  %v1679_v42 = vmul.f32 %v2166_v34, %v3350_v31 }
 0x6a0   :  { %v2168_v53 = vpop.eup %2167  ;;  %1729 = vst [vmem:[%s3510_s6 + $0x60] sm:$0xff] %v1713_v52 }
 0x6a1   :  { %v1714_v7 = vsel %vm1523_vm1, %v1679_v42, %v1698_v51  ;;  %v1681_v0 = vmul.f32 %v2168_v53, %v3353_v16 }
 0x6a2   :  { %v2170_v17 = vpop.eup %2169  ;;  %1730 = vst [vmem:[%s3510_s6 + $0x68] sm:$0xff] %v1714_v7 }
 0x6a3   :  { %v1715_v59 = vsel %vm1523_vm1, %v1681_v0, %v1699_v47  ;;  %v1683_v31 = vmul.f32 %v2170_v17, %v3356_v56 }
 0x6a4   :  { %1731 = vst [vmem:[%s3510_s6 + $0x70] sm:$0xff] %v1715_v59 }
 0x6a5   :  { %v1716_v6 = vsel %vm1523_vm1, %v1683_v31, %v1700_v2 }
 0x6a6   :  { %1732 = vst [vmem:[%s3510_s6 + $0x78] sm:$0xff] %v1716_v6 }

</bundles_post_ra>
